<compile_context>
chip_gen: v5e
topology: v5e:2x2
jax: 0.10.0
libtpu: 0.0.40
codegen_flags: <defaults>
</compile_context>

<pallas_src>
import jax
import jax.numpy as jnp
from jax import lax
from jax.experimental import pallas as pl
from jax.experimental.pallas import tpu as pltpu


def encoder_kernel(
    # activations
    emb_ref,    # [S, TB, E]      bf16
    len_ref,    # [TB, 1]         int32 (sequence lengths)
    # forward / backward GRU params (gates lane-stacked in order r | z | n)
    wif_ref,    # [E,  3*EH]      bf16
    wib_ref,    # [E,  3*EH]      bf16
    bgif_ref,   # [1,  3*EH]      f32  (bi_r+bh_r | bi_z+bh_z | bi_n)
    bgib_ref,   # [1,  3*EH]      f32
    whf_ref,    # [EH, 3*EH]      bf16
    whb_ref,    # [EH, 3*EH]      bf16
    bhn_ref,    # [2, 1, EH]      f32  (bh_n for fwd / bwd)
    # fc params
    wfc_ref,    # [2*EH, DH]      bf16
    bfc_ref,    # [1, DH]         f32
    # outputs
    out_ref,    # [S, TB, 2*EH]   f32
    hid_ref,    # [TB, DH]        f32
    # VMEM scratch: precomputed input projections per direction
    gif_ref,    # [S, TB, 3*EH]   f32
    gib_ref,    # [S, TB, 3*EH]   f32
):
    S, TB, E = emb_ref.shape
    EH = whf_ref.shape[0]
    G3 = 3 * EH

    # ---- Hoisted input projections: one big (M = S*TB) matmul per direction, biases folded in.
    x2d = emb_ref[...].reshape(S * TB, E)
    gif_ref[...] = (jnp.dot(x2d, wif_ref[...], preferred_element_type=jnp.float32)
                    + bgif_ref[...]).reshape(S, TB, G3)
    gib_ref[...] = (jnp.dot(x2d, wib_ref[...], preferred_element_type=jnp.float32)
                    + bgib_ref[...]).reshape(S, TB, G3)

    # ---- Loop-invariant loads hoisted once (no per-unrolled-step broadcasts / casts).
    wh_f = whf_ref[...]
    wh_b = whb_ref[...]
    bhn_f = bhn_ref[0]          # [1, EH] f32
    bhn_b = bhn_ref[1]
    lens = len_ref[...]         # [TB, 1] int32

    def gru_step(gi_t, h, wh, bhn):
        # gi_t: [TB, 3*EH] f32 (already contains bi_{r,z,n} and bh_{r,z}); h: [TB, EH] f32
        gh = jnp.dot(h.astype(wh.dtype), wh, preferred_element_type=jnp.float32)   # [TB, 3*EH]
        r = jax.nn.sigmoid(gi_t[:, :EH] + gh[:, :EH])
        z = jax.nn.sigmoid(gi_t[:, EH:2 * EH] + gh[:, EH:2 * EH])
        n = jnp.tanh(gi_t[:, 2 * EH:] + r * (gh[:, 2 * EH:] + bhn))
        return (1.0 - z) * n + z * h

    def body(t, carry):
        h_f, h_b = carry
        tb = S - 1 - t
        # forward direction at step t
        vf = lens > t                                           # [TB, 1] bool
        hf_new = gru_step(gif_ref[t], h_f, wh_f, bhn_f)
        h_f = jnp.where(vf, hf_new, h_f)                        # freeze past sequence end
        out_ref[t, :, :EH] = jnp.where(vf, hf_new, 0.0)         # padded rows -> exact zeros
        # backward direction at step S-1-t (packed semantics: carry stays 0 while invalid)
        vb = lens > tb
        hb_new = gru_step(gib_ref[tb], h_b, wh_b, bhn_b)
        h_b = jnp.where(vb, hb_new, h_b)
        out_ref[tb, :, EH:] = jnp.where(vb, hb_new, 0.0)
        return h_f, h_b

    h0 = jnp.zeros((TB, EH), jnp.float32)
    h_f, h_b = lax.fori_loop(0, S, body, (h0, h0),
                             unroll=True if S <= 16 else 4)

    # hidden = tanh(cat(h_fwd, h_bwd) @ W_fc + b_fc), single MXU dot
    hcat = jnp.concatenate([h_f, h_b], axis=-1).astype(wfc_ref.dtype)   # [TB, 2*EH]
    hid_ref[...] = jnp.tanh(
        jnp.dot(hcat, wfc_ref[...], preferred_element_type=jnp.float32) + bfc_ref[...]
    )


def encoder_forward(params, src, src_len):
    """src [S, B] int32 token ids, src_len [B] int32. Returns (outputs [S,B,2*EH], hidden [B,DH])."""
    # Embedding lookup (XLA gather) + dropout identity (inference / p = 0); bf16 for the MXU.
    emb = jnp.take(params["embedding"], src, axis=0).astype(jnp.bfloat16)   # [S, B, E]
    S, B, E = emb.shape
    EH = params["Wh_f"].shape[-1]
    DH = params["Wfc_f"].shape[-1]
    f32 = jnp.float32

    # ---- Gate-fused weight / bias preprocessing (lane order r | z | n).
    def cat_gates(w):                      # [3, in, EH] -> [in, 3*EH] bf16
        return jnp.concatenate([w[0], w[1], w[2]], axis=-1).astype(jnp.bfloat16)

    def fused_in_bias(bi, bh):             # -> [1, 3*EH] f32 (bh_n stays separate)
        bi = bi.astype(f32)
        bh = bh.astype(f32)
        return jnp.concatenate([bi[0] + bh[0], bi[1] + bh[1], bi[2]], axis=-1)

    wif, wib = cat_gates(params["Wi_f"]), cat_gates(params["Wi_b"])
    whf, whb = cat_gates(params["Wh_f"]), cat_gates(params["Wh_b"])
    bgif = fused_in_bias(params["bi_f"], params["bh_f"])
    bgib = fused_in_bias(params["bi_b"], params["bh_b"])
    bhn = jnp.stack([params["bh_f"][2], params["bh_b"][2]], axis=0).astype(f32)     # [2, 1, EH]
    wfc = jnp.concatenate([params["Wfc_f"], params["Wfc_b"]], axis=0).astype(jnp.bfloat16)  # [2*EH, DH]
    bfc = params["b_fc"].astype(f32)

    lens = src_len.astype(jnp.int32).reshape(B, 1)

    # ---- Batch tiling: single resident tile on 1-TC parts (v5e/v6e); one tile per TC on v7x.
    try:
        kind = jax.devices()[0].device_kind.lower()
    except Exception:
        kind = ""
    if ("v7" in kind) and (B % 2 == 0) and ((B // 2) % 8 == 0):
        TB = B // 2
    else:
        TB = B
    grid = (B // TB,)

    def const_spec(arr):
        nd = arr.ndim
        return pl.BlockSpec(arr.shape, lambda b, _nd=nd: (0,) * _nd)   # resident weights

    in_specs = [
        pl.BlockSpec((S, TB, E), lambda b: (0, b, 0)),
        pl.BlockSpec((TB, 1), lambda b: (b, 0)),
        const_spec(wif), const_spec(wib),
        const_spec(bgif), const_spec(bgib),
        const_spec(whf), const_spec(whb), const_spec(bhn),
        const_spec(wfc), const_spec(bfc),
    ]
    out_specs = (
        pl.BlockSpec((S, TB, 2 * EH), lambda b: (0, b, 0)),
        pl.BlockSpec((TB, DH), lambda b: (b, 0)),
    )

    outputs, hidden = pl.pallas_call(
        encoder_kernel,
        grid=grid,
        in_specs=in_specs,
        out_specs=out_specs,
        out_shape=(
            jax.ShapeDtypeStruct((S, B, 2 * EH), jnp.float32),
            jax.ShapeDtypeStruct((B, DH), jnp.float32),
        ),
        scratch_shapes=[
            pltpu.VMEM((S, TB, 3 * EH), jnp.float32),
            pltpu.VMEM((S, TB, 3 * EH), jnp.float32),
        ],
        compiler_params=pltpu.CompilerParams(
            dimension_semantics=("parallel",),     # batch tiles are independent (v7x 2nd TC)
            vmem_limit_bytes=32 * 1024 * 1024,     # explicit scoped-VMEM budget
        ),
    )(emb, lens, wif, wib, bgif, bgib, whf, whb, bhn, wfc, bfc)
    return outputs, hidden


def encoder_reference(params, src, src_len):
    """Pure-JAX fp32 mirror of the PyTorch Encoder forward (packing emulated by masking)."""
    p = {k: v.astype(jnp.float32) for k, v in params.items()}
    emb = jnp.take(p["embedding"], src, axis=0)                      # [S, B, E]
    S, B, _ = emb.shape
    EH = p["Wh_f"].shape[-1]
    mask = (jnp.arange(S)[:, None] < src_len[None, :]).astype(jnp.float32)[:, :, None]

    def cell(x, h, wi, wh, bi, bh):
        r = jax.nn.sigmoid(x @ wi[0] + bi[0] + h @ wh[0] + bh[0])
        z = jax.nn.sigmoid(x @ wi[1] + bi[1] + h @ wh[1] + bh[1])
        n = jnp.tanh(x @ wi[2] + bi[2] + r * (h @ wh[2] + bh[2]))
        return (1.0 - z) * n + z * h

    h_f = jnp.zeros((B, EH), jnp.float32)
    h_b = jnp.zeros((B, EH), jnp.float32)
    out_f, out_b = [], [None] * S
    for t in range(S):
        m = mask[t]
        hn = cell(emb[t], h_f, p["Wi_f"], p["Wh_f"], p["bi_f"], p["bh_f"])
        h_f = m * hn + (1.0 - m) * h_f
        out_f.append(m * hn)
    for t in range(S - 1, -1, -1):
        m = mask[t]
        hn = cell(emb[t], h_b, p["Wi_b"], p["Wh_b"], p["bi_b"], p["bh_b"])
        h_b = m * hn + (1.0 - m) * h_b
        out_b[t] = m * hn
    outputs = jnp.concatenate([jnp.stack(out_f), jnp.stack(out_b)], axis=-1)
    hidden = jnp.tanh(h_f @ p["Wfc_f"] + h_b @ p["Wfc_b"] + p["b_fc"])
    return outputs, hidden


if __name__ == "__main__":
    # Small, module-consistent shapes.
    V = 64      # input_dim (vocab)
    E = 32      # emb_dim
    EH = 32     # enc_hid_dim (bidirectional -> output features = 2*EH)
    DH = 32     # dec_hid_dim
    S, B = 8, 16

    key = jax.random.PRNGKey(0)
    ks = jax.random.split(key, 20)

    def init(k, shape, scale=0.1):
        return (jax.random.normal(k, shape, jnp.float32) * scale).astype(jnp.bfloat16)

    params = {
        "embedding": init(ks[0], (V, E), 0.5),
        # forward GRU: gate order r, z, n; weights pre-transposed to [in, out]
        "Wi_f": init(ks[1], (3, E, EH)),
        "Wh_f": init(ks[2], (3, EH, EH)),
        "bi_f": init(ks[3], (3, 1, EH)),
        "bh_f": init(ks[4], (3, 1, EH)),
        # backward GRU
        "Wi_b": init(ks[5], (3, E, EH)),
        "Wh_b": init(ks[6], (3, EH, EH)),
        "bi_b": init(ks[7], (3, 1, EH)),
        "bh_b": init(ks[8], (3, 1, EH)),
        # fc: Linear(2*EH -> DH) split by concat order (forward part, backward part)
        "Wfc_f": init(ks[9], (EH, DH)),
        "Wfc_b": init(ks[10], (EH, DH)),
        "b_fc": init(ks[11], (1, DH)),
    }

    src = jax.random.randint(ks[12], (S, B), 0, V, dtype=jnp.int32)
    # descending lengths (pack_padded_sequence default enforce_sorted=True)
    src_len = jnp.array([8, 8, 7, 7, 6, 6, 5, 5, 4, 4, 3, 3, 2, 2, 1, 1], dtype=jnp.int32)

    # NOTE: nn.Dropout is identity here (inference / p = 0).
    outputs, hidden = jax.jit(encoder_forward)(params, src, src_len)
    jax.block_until_ready((outputs, hidden))

    out_r, hid_r = encoder_reference(params, src, src_len)
    assert outputs.shape == (S, B, 2 * EH) and hidden.shape == (B, DH)
    for got, ref in ((outputs, out_r), (hidden, hid_r)):
        err = float(jnp.max(jnp.abs(got - ref)))
        assert jnp.allclose(got, ref, rtol=2e-2, atol=2e-2), err

    print("KERNEL_OK")
</pallas_src>

<mosaic_0001>
module attributes {stable_mosaic.version = 11 : i64} {
  func.func @encoder_kernel(%arg0: i32, %arg1: memref<8x16x32xbf16, #tpu.memory_space<vmem>>, %arg2: memref<16x1xi32, #tpu.memory_space<vmem>>, %arg3: memref<32x96xbf16, #tpu.memory_space<vmem>>, %arg4: memref<32x96xbf16, #tpu.memory_space<vmem>>, %arg5: memref<1x96xf32, #tpu.memory_space<vmem>>, %arg6: memref<1x96xf32, #tpu.memory_space<vmem>>, %arg7: memref<32x96xbf16, #tpu.memory_space<vmem>>, %arg8: memref<32x96xbf16, #tpu.memory_space<vmem>>, %arg9: memref<2x1x32xf32, #tpu.memory_space<vmem>>, %arg10: memref<64x32xbf16, #tpu.memory_space<vmem>>, %arg11: memref<1x32xf32, #tpu.memory_space<vmem>>, %arg12: memref<8x16x64xf32, #tpu.memory_space<vmem>>, %arg13: memref<16x32xf32, #tpu.memory_space<vmem>>, %arg14: memref<8x16x96xf32, #tpu.memory_space<vmem>>, %arg15: memref<8x16x96xf32, #tpu.memory_space<vmem>>) attributes {dimension_semantics = [#tpu.dimension_semantics<parallel>], iteration_bounds = array<i64: 1>, scalar_prefetch = 0 : i64, scratch_operands = 2 : i64, tpu.core_type = #tpu.core_type<tc>, window_params = [{transform_indices = @transform_0, window_bounds = array<i64: 8, 16, 32>}, {transform_indices = @transform_1, window_bounds = array<i64: 16, 1>}, {pipeline_mode = #tpu.pipeline_mode<synchronous>, transform_indices = @transform_2, window_bounds = array<i64: 32, 96>}, {pipeline_mode = #tpu.pipeline_mode<synchronous>, transform_indices = @transform_3, window_bounds = array<i64: 32, 96>}, {pipeline_mode = #tpu.pipeline_mode<synchronous>, transform_indices = @transform_4, window_bounds = array<i64: 1, 96>}, {pipeline_mode = #tpu.pipeline_mode<synchronous>, transform_indices = @transform_5, window_bounds = array<i64: 1, 96>}, {pipeline_mode = #tpu.pipeline_mode<synchronous>, transform_indices = @transform_6, window_bounds = array<i64: 32, 96>}, {pipeline_mode = #tpu.pipeline_mode<synchronous>, transform_indices = @transform_7, window_bounds = array<i64: 32, 96>}, {pipeline_mode = #tpu.pipeline_mode<synchronous>, transform_indices = @transform_8, window_bounds = array<i64: 2, 1, 32>}, {pipeline_mode = #tpu.pipeline_mode<synchronous>, transform_indices = @transform_9, window_bounds = array<i64: 64, 32>}, {pipeline_mode = #tpu.pipeline_mode<synchronous>, transform_indices = @transform_10, window_bounds = array<i64: 1, 32>}, {transform_indices = @transform_11, window_bounds = array<i64: 8, 16, 64>}, {transform_indices = @transform_12, window_bounds = array<i64: 16, 32>}]} {
    %c0 = arith.constant 0 : index
    %c0_0 = arith.constant 0 : index
    %c0_1 = arith.constant 0 : index
    %0 = vector.load %arg1[%c0, %c0_0, %c0_1] : memref<8x16x32xbf16, #tpu.memory_space<vmem>>, vector<8x16x32xbf16>
    %1 = vector.shape_cast %0 : vector<8x16x32xbf16> to vector<128x32xbf16>
    %c0_2 = arith.constant 0 : index
    %c0_3 = arith.constant 0 : index
    %2 = vector.load %arg3[%c0_2, %c0_3] : memref<32x96xbf16, #tpu.memory_space<vmem>>, vector<32x96xbf16>
    %cst = arith.constant dense<0.000000e+00> : vector<128x96xf32>
    %3 = tpu.matmul %1, %2, %cst {dimension_numbers = #tpu.dot_dimension_numbers<[1], [0], [0], [1], [0, 0, 1, 1], [], []>} : vector<128x32xbf16>, vector<32x96xbf16>, vector<128x96xf32> -> vector<128x96xf32>
    %c0_4 = arith.constant 0 : index
    %c0_5 = arith.constant 0 : index
    %4 = vector.load %arg5[%c0_4, %c0_5] : memref<1x96xf32, #tpu.memory_space<vmem>>, vector<1x96xf32>
    %5 = vector.broadcast %4 : vector<1x96xf32> to vector<128x96xf32>
    %6 = arith.addf %3, %5 : vector<128x96xf32>
    %7 = vector.shape_cast %6 : vector<128x96xf32> to vector<8x16x96xf32>
    %c0_6 = arith.constant 0 : index
    %c0_7 = arith.constant 0 : index
    %c0_8 = arith.constant 0 : index
    %8 = vector.load %arg14[%c0_6, %c0_7, %c0_8] : memref<8x16x96xf32, #tpu.memory_space<vmem>>, vector<8x16x96xf32>
    tpu.vector_store %arg14[%c0_6, %c0_7, %c0_8], %7 {strides = array<i32>} : memref<8x16x96xf32, #tpu.memory_space<vmem>>, vector<8x16x96xf32>,
    %c0_9 = arith.constant 0 : index
    %c0_10 = arith.constant 0 : index
    %9 = vector.load %arg4[%c0_9, %c0_10] : memref<32x96xbf16, #tpu.memory_space<vmem>>, vector<32x96xbf16>
    %cst_11 = arith.constant dense<0.000000e+00> : vector<128x96xf32>
    %10 = tpu.matmul %1, %9, %cst_11 {dimension_numbers = #tpu.dot_dimension_numbers<[1], [0], [0], [1], [0, 0, 1, 1], [], []>} : vector<128x32xbf16>, vector<32x96xbf16>, vector<128x96xf32> -> vector<128x96xf32>
    %c0_12 = arith.constant 0 : index
    %c0_13 = arith.constant 0 : index
    %11 = vector.load %arg6[%c0_12, %c0_13] : memref<1x96xf32, #tpu.memory_space<vmem>>, vector<1x96xf32>
    %12 = vector.broadcast %11 : vector<1x96xf32> to vector<128x96xf32>
    %13 = arith.addf %10, %12 : vector<128x96xf32>
    %14 = vector.shape_cast %13 : vector<128x96xf32> to vector<8x16x96xf32>
    %c0_14 = arith.constant 0 : index
    %c0_15 = arith.constant 0 : index
    %c0_16 = arith.constant 0 : index
    %15 = vector.load %arg15[%c0_14, %c0_15, %c0_16] : memref<8x16x96xf32, #tpu.memory_space<vmem>>, vector<8x16x96xf32>
    tpu.vector_store %arg15[%c0_14, %c0_15, %c0_16], %14 {strides = array<i32>} : memref<8x16x96xf32, #tpu.memory_space<vmem>>, vector<8x16x96xf32>,
    %c0_17 = arith.constant 0 : index
    %c0_18 = arith.constant 0 : index
    %16 = vector.load %arg7[%c0_17, %c0_18] : memref<32x96xbf16, #tpu.memory_space<vmem>>, vector<32x96xbf16>
    %c0_19 = arith.constant 0 : index
    %c0_20 = arith.constant 0 : index
    %17 = vector.load %arg8[%c0_19, %c0_20] : memref<32x96xbf16, #tpu.memory_space<vmem>>, vector<32x96xbf16>
    %c0_21 = arith.constant 0 : index
    %c0_22 = arith.constant 0 : index
    %c0_23 = arith.constant 0 : index
    %18 = vector.load %arg9[%c0_21, %c0_22, %c0_23] : memref<2x1x32xf32, #tpu.memory_space<vmem>>, vector<1x1x32xf32>
    %19 = vector.shape_cast %18 : vector<1x1x32xf32> to vector<1x32xf32>
    %c1 = arith.constant 1 : index
    %c0_24 = arith.constant 0 : index
    %c0_25 = arith.constant 0 : index
    %20 = vector.load %arg9[%c1, %c0_24, %c0_25] : memref<2x1x32xf32, #tpu.memory_space<vmem>>, vector<1x1x32xf32>
    %21 = vector.shape_cast %20 : vector<1x1x32xf32> to vector<1x32xf32>
    %c0_26 = arith.constant 0 : index
    %c0_27 = arith.constant 0 : index
    %22 = vector.load %arg2[%c0_26, %c0_27] : memref<16x1xi32, #tpu.memory_space<vmem>>, vector<16x1xi32>
    %cst_28 = arith.constant 0.000000e+00 : f32
    %23 = vector.broadcast %cst_28 : f32 to vector<16x32xf32>
    %c0_i32 = arith.constant 0 : i32
    %c7_i32 = arith.constant 7 : i32
    %24 = arith.subi %c7_i32, %c0_i32 : i32
    %25 = vector.broadcast %c0_i32 : i32 to vector<16x1xi32>
    %26 = arith.cmpi sgt, %22, %25 : vector<16x1xi32>
    %27 = arith.index_cast %c0_i32 : i32 to index
    %c0_29 = arith.constant 0 : index
    %c0_30 = arith.constant 0 : index
    %28 = vector.load %arg14[%27, %c0_29, %c0_30] : memref<8x16x96xf32, #tpu.memory_space<vmem>>, vector<1x16x96xf32>
    %29 = vector.shape_cast %28 : vector<1x16x96xf32> to vector<16x96xf32>
    %30 = arith.truncf %23 : vector<16x32xf32> to vector<16x32xbf16>
    %cst_31 = arith.constant dense<0.000000e+00> : vector<16x96xf32>
    %31 = tpu.matmul %30, %16, %cst_31 {dimension_numbers = #tpu.dot_dimension_numbers<[1], [0], [0], [1], [0, 0, 1, 1], [], []>} : vector<16x32xbf16>, vector<32x96xbf16>, vector<16x96xf32> -> vector<16x96xf32>
    %32 = vector.extract_strided_slice %29 {offsets = [0, 0], sizes = [16, 32], strides = [1, 1]} : vector<16x96xf32> to vector<16x32xf32>
    %33 = vector.extract_strided_slice %31 {offsets = [0, 0], sizes = [16, 32], strides = [1, 1]} : vector<16x96xf32> to vector<16x32xf32>
    %34 = arith.addf %32, %33 : vector<16x32xf32>
    %35 = arith.negf %34 : vector<16x32xf32>
    %36 = math.exp %35 : vector<16x32xf32>
    %cst_32 = arith.constant 1.000000e+00 : f32
    %37 = vector.broadcast %cst_32 : f32 to vector<16x32xf32>
    %38 = arith.addf %37, %36 : vector<16x32xf32>
    %39 = arith.divf %37, %38 : vector<16x32xf32>
    %40 = vector.extract_strided_slice %29 {offsets = [0, 32], sizes = [16, 32], strides = [1, 1]} : vector<16x96xf32> to vector<16x32xf32>
    %41 = vector.extract_strided_slice %31 {offsets = [0, 32], sizes = [16, 32], strides = [1, 1]} : vector<16x96xf32> to vector<16x32xf32>
    %42 = arith.addf %40, %41 : vector<16x32xf32>
    %43 = arith.negf %42 : vector<16x32xf32>
    %44 = math.exp %43 : vector<16x32xf32>
    %cst_33 = arith.constant 1.000000e+00 : f32
    %45 = vector.broadcast %cst_33 : f32 to vector<16x32xf32>
    %46 = arith.addf %45, %44 : vector<16x32xf32>
    %47 = arith.divf %45, %46 : vector<16x32xf32>
    %48 = vector.extract_strided_slice %29 {offsets = [0, 64], sizes = [16, 32], strides = [1, 1]} : vector<16x96xf32> to vector<16x32xf32>
    %49 = vector.extract_strided_slice %31 {offsets = [0, 64], sizes = [16, 32], strides = [1, 1]} : vector<16x96xf32> to vector<16x32xf32>
    %50 = vector.broadcast %19 : vector<1x32xf32> to vector<16x32xf32>
    %51 = arith.addf %49, %50 : vector<16x32xf32>
    %52 = arith.mulf %39, %51 : vector<16x32xf32>
    %53 = arith.addf %48, %52 : vector<16x32xf32>
    %54 = math.tanh %53 : vector<16x32xf32>
    %cst_34 = arith.constant 1.000000e+00 : f32
    %55 = vector.broadcast %cst_34 : f32 to vector<16x32xf32>
    %56 = arith.subf %55, %47 : vector<16x32xf32>
    %57 = arith.mulf %56, %54 : vector<16x32xf32>
    %58 = arith.mulf %47, %23 : vector<16x32xf32>
    %59 = arith.addf %57, %58 : vector<16x32xf32>
    %60 = vector.shape_cast %26 : vector<16x1xi1> to vector<16x1xi1>
    %61 = vector.broadcast %60 : vector<16x1xi1> to vector<16x32xi1>
    %62 = arith.select %61, %59, %23 : vector<16x32xi1>, vector<16x32xf32>
    %cst_35 = arith.constant 0.000000e+00 : f32
    %63 = vector.shape_cast %26 : vector<16x1xi1> to vector<16x1xi1>
    %64 = vector.broadcast %63 : vector<16x1xi1> to vector<16x32xi1>
    %65 = vector.broadcast %cst_35 : f32 to vector<16x32xf32>
    %66 = arith.select %64, %59, %65 : vector<16x32xi1>, vector<16x32xf32>
    %67 = arith.index_cast %c0_i32 : i32 to index
    %c0_36 = arith.constant 0 : index
    %c0_37 = arith.constant 0 : index
    %68 = vector.load %arg12[%67, %c0_36, %c0_37] : memref<8x16x64xf32, #tpu.memory_space<vmem>>, vector<1x16x32xf32>
    %69 = vector.shape_cast %68 : vector<1x16x32xf32> to vector<16x32xf32>
    %70 = vector.shape_cast %66 : vector<16x32xf32> to vector<1x16x32xf32>
    tpu.vector_store %arg12[%67, %c0_36, %c0_37], %70 {strides = array<i32>} : memref<8x16x64xf32, #tpu.memory_space<vmem>>, vector<1x16x32xf32>,
    %71 = vector.broadcast %24 : i32 to vector<16x1xi32>
    %72 = arith.cmpi sgt, %22, %71 : vector<16x1xi32>
    %73 = arith.index_cast %24 : i32 to index
    %c0_38 = arith.constant 0 : index
    %c0_39 = arith.constant 0 : index
    %74 = vector.load %arg15[%73, %c0_38, %c0_39] : memref<8x16x96xf32, #tpu.memory_space<vmem>>, vector<1x16x96xf32>
    %75 = vector.shape_cast %74 : vector<1x16x96xf32> to vector<16x96xf32>
    %76 = arith.truncf %23 : vector<16x32xf32> to vector<16x32xbf16>
    %cst_40 = arith.constant dense<0.000000e+00> : vector<16x96xf32>
    %77 = tpu.matmul %76, %17, %cst_40 {dimension_numbers = #tpu.dot_dimension_numbers<[1], [0], [0], [1], [0, 0, 1, 1], [], []>} : vector<16x32xbf16>, vector<32x96xbf16>, vector<16x96xf32> -> vector<16x96xf32>
    %78 = vector.extract_strided_slice %75 {offsets = [0, 0], sizes = [16, 32], strides = [1, 1]} : vector<16x96xf32> to vector<16x32xf32>
    %79 = vector.extract_strided_slice %77 {offsets = [0, 0], sizes = [16, 32], strides = [1, 1]} : vector<16x96xf32> to vector<16x32xf32>
    %80 = arith.addf %78, %79 : vector<16x32xf32>
    %81 = arith.negf %80 : vector<16x32xf32>
    %82 = math.exp %81 : vector<16x32xf32>
    %cst_41 = arith.constant 1.000000e+00 : f32
    %83 = vector.broadcast %cst_41 : f32 to vector<16x32xf32>
    %84 = arith.addf %83, %82 : vector<16x32xf32>
    %85 = arith.divf %83, %84 : vector<16x32xf32>
    %86 = vector.extract_strided_slice %75 {offsets = [0, 32], sizes = [16, 32], strides = [1, 1]} : vector<16x96xf32> to vector<16x32xf32>
    %87 = vector.extract_strided_slice %77 {offsets = [0, 32], sizes = [16, 32], strides = [1, 1]} : vector<16x96xf32> to vector<16x32xf32>
    %88 = arith.addf %86, %87 : vector<16x32xf32>
    %89 = arith.negf %88 : vector<16x32xf32>
    %90 = math.exp %89 : vector<16x32xf32>
    %cst_42 = arith.constant 1.000000e+00 : f32
    %91 = vector.broadcast %cst_42 : f32 to vector<16x32xf32>
    %92 = arith.addf %91, %90 : vector<16x32xf32>
    %93 = arith.divf %91, %92 : vector<16x32xf32>
    %94 = vector.extract_strided_slice %75 {offsets = [0, 64], sizes = [16, 32], strides = [1, 1]} : vector<16x96xf32> to vector<16x32xf32>
    %95 = vector.extract_strided_slice %77 {offsets = [0, 64], sizes = [16, 32], strides = [1, 1]} : vector<16x96xf32> to vector<16x32xf32>
    %96 = vector.broadcast %21 : vector<1x32xf32> to vector<16x32xf32>
    %97 = arith.addf %95, %96 : vector<16x32xf32>
    %98 = arith.mulf %85, %97 : vector<16x32xf32>
    %99 = arith.addf %94, %98 : vector<16x32xf32>
    %100 = math.tanh %99 : vector<16x32xf32>
    %cst_43 = arith.constant 1.000000e+00 : f32
    %101 = vector.broadcast %cst_43 : f32 to vector<16x32xf32>
    %102 = arith.subf %101, %93 : vector<16x32xf32>
    %103 = arith.mulf %102, %100 : vector<16x32xf32>
    %104 = arith.mulf %93, %23 : vector<16x32xf32>
    %105 = arith.addf %103, %104 : vector<16x32xf32>
    %106 = vector.shape_cast %72 : vector<16x1xi1> to vector<16x1xi1>
    %107 = vector.broadcast %106 : vector<16x1xi1> to vector<16x32xi1>
    %108 = arith.select %107, %105, %23 : vector<16x32xi1>, vector<16x32xf32>
    %cst_44 = arith.constant 0.000000e+00 : f32
    %109 = vector.shape_cast %72 : vector<16x1xi1> to vector<16x1xi1>
    %110 = vector.broadcast %109 : vector<16x1xi1> to vector<16x32xi1>
    %111 = vector.broadcast %cst_44 : f32 to vector<16x32xf32>
    %112 = arith.select %110, %105, %111 : vector<16x32xi1>, vector<16x32xf32>
    %113 = arith.index_cast %24 : i32 to index
    %c0_45 = arith.constant 0 : index
    %c32 = arith.constant 32 : index
    %114 = vector.load %arg12[%113, %c0_45, %c32] : memref<8x16x64xf32, #tpu.memory_space<vmem>>, vector<1x16x32xf32>
    %115 = vector.shape_cast %114 : vector<1x16x32xf32> to vector<16x32xf32>
    %116 = vector.shape_cast %112 : vector<16x32xf32> to vector<1x16x32xf32>
    tpu.vector_store %arg12[%113, %c0_45, %c32], %116 {strides = array<i32>} : memref<8x16x64xf32, #tpu.memory_space<vmem>>, vector<1x16x32xf32>,
    %c1_i32 = arith.constant 1 : i32
    %c7_i32_46 = arith.constant 7 : i32
    %117 = arith.subi %c7_i32_46, %c1_i32 : i32
    %118 = vector.broadcast %c1_i32 : i32 to vector<16x1xi32>
    %119 = arith.cmpi sgt, %22, %118 : vector<16x1xi32>
    %120 = arith.index_cast %c1_i32 : i32 to index
    %c0_47 = arith.constant 0 : index
    %c0_48 = arith.constant 0 : index
    %121 = vector.load %arg14[%120, %c0_47, %c0_48] : memref<8x16x96xf32, #tpu.memory_space<vmem>>, vector<1x16x96xf32>
    %122 = vector.shape_cast %121 : vector<1x16x96xf32> to vector<16x96xf32>
    %123 = arith.truncf %62 : vector<16x32xf32> to vector<16x32xbf16>
    %cst_49 = arith.constant dense<0.000000e+00> : vector<16x96xf32>
    %124 = tpu.matmul %123, %16, %cst_49 {dimension_numbers = #tpu.dot_dimension_numbers<[1], [0], [0], [1], [0, 0, 1, 1], [], []>} : vector<16x32xbf16>, vector<32x96xbf16>, vector<16x96xf32> -> vector<16x96xf32>
    %125 = vector.extract_strided_slice %122 {offsets = [0, 0], sizes = [16, 32], strides = [1, 1]} : vector<16x96xf32> to vector<16x32xf32>
    %126 = vector.extract_strided_slice %124 {offsets = [0, 0], sizes = [16, 32], strides = [1, 1]} : vector<16x96xf32> to vector<16x32xf32>
    %127 = arith.addf %125, %126 : vector<16x32xf32>
    %128 = arith.negf %127 : vector<16x32xf32>
    %129 = math.exp %128 : vector<16x32xf32>
    %cst_50 = arith.constant 1.000000e+00 : f32
    %130 = vector.broadcast %cst_50 : f32 to vector<16x32xf32>
    %131 = arith.addf %130, %129 : vector<16x32xf32>
    %132 = arith.divf %130, %131 : vector<16x32xf32>
    %133 = vector.extract_strided_slice %122 {offsets = [0, 32], sizes = [16, 32], strides = [1, 1]} : vector<16x96xf32> to vector<16x32xf32>
    %134 = vector.extract_strided_slice %124 {offsets = [0, 32], sizes = [16, 32], strides = [1, 1]} : vector<16x96xf32> to vector<16x32xf32>
    %135 = arith.addf %133, %134 : vector<16x32xf32>
    %136 = arith.negf %135 : vector<16x32xf32>
    %137 = math.exp %136 : vector<16x32xf32>
    %cst_51 = arith.constant 1.000000e+00 : f32
    %138 = vector.broadcast %cst_51 : f32 to vector<16x32xf32>
    %139 = arith.addf %138, %137 : vector<16x32xf32>
    %140 = arith.divf %138, %139 : vector<16x32xf32>
    %141 = vector.extract_strided_slice %122 {offsets = [0, 64], sizes = [16, 32], strides = [1, 1]} : vector<16x96xf32> to vector<16x32xf32>
    %142 = vector.extract_strided_slice %124 {offsets = [0, 64], sizes = [16, 32], strides = [1, 1]} : vector<16x96xf32> to vector<16x32xf32>
    %143 = vector.broadcast %19 : vector<1x32xf32> to vector<16x32xf32>
    %144 = arith.addf %142, %143 : vector<16x32xf32>
    %145 = arith.mulf %132, %144 : vector<16x32xf32>
    %146 = arith.addf %141, %145 : vector<16x32xf32>
    %147 = math.tanh %146 : vector<16x32xf32>
    %cst_52 = arith.constant 1.000000e+00 : f32
    %148 = vector.broadcast %cst_52 : f32 to vector<16x32xf32>
    %149 = arith.subf %148, %140 : vector<16x32xf32>
    %150 = arith.mulf %149, %147 : vector<16x32xf32>
    %151 = arith.mulf %140, %62 : vector<16x32xf32>
    %152 = arith.addf %150, %151 : vector<16x32xf32>
    %153 = vector.shape_cast %119 : vector<16x1xi1> to vector<16x1xi1>
    %154 = vector.broadcast %153 : vector<16x1xi1> to vector<16x32xi1>
    %155 = arith.select %154, %152, %62 : vector<16x32xi1>, vector<16x32xf32>
    %cst_53 = arith.constant 0.000000e+00 : f32
    %156 = vector.shape_cast %119 : vector<16x1xi1> to vector<16x1xi1>
    %157 = vector.broadcast %156 : vector<16x1xi1> to vector<16x32xi1>
    %158 = vector.broadcast %cst_53 : f32 to vector<16x32xf32>
    %159 = arith.select %157, %152, %158 : vector<16x32xi1>, vector<16x32xf32>
    %160 = arith.index_cast %c1_i32 : i32 to index
    %c0_54 = arith.constant 0 : index
    %c0_55 = arith.constant 0 : index
    %161 = vector.load %arg12[%160, %c0_54, %c0_55] : memref<8x16x64xf32, #tpu.memory_space<vmem>>, vector<1x16x32xf32>
    %162 = vector.shape_cast %161 : vector<1x16x32xf32> to vector<16x32xf32>
    %163 = vector.shape_cast %159 : vector<16x32xf32> to vector<1x16x32xf32>
    tpu.vector_store %arg12[%160, %c0_54, %c0_55], %163 {strides = array<i32>} : memref<8x16x64xf32, #tpu.memory_space<vmem>>, vector<1x16x32xf32>,
    %164 = vector.broadcast %117 : i32 to vector<16x1xi32>
    %165 = arith.cmpi sgt, %22, %164 : vector<16x1xi32>
    %166 = arith.index_cast %117 : i32 to index
    %c0_56 = arith.constant 0 : index
    %c0_57 = arith.constant 0 : index
    %167 = vector.load %arg15[%166, %c0_56, %c0_57] : memref<8x16x96xf32, #tpu.memory_space<vmem>>, vector<1x16x96xf32>
    %168 = vector.shape_cast %167 : vector<1x16x96xf32> to vector<16x96xf32>
    %169 = arith.truncf %108 : vector<16x32xf32> to vector<16x32xbf16>
    %cst_58 = arith.constant dense<0.000000e+00> : vector<16x96xf32>
    %170 = tpu.matmul %169, %17, %cst_58 {dimension_numbers = #tpu.dot_dimension_numbers<[1], [0], [0], [1], [0, 0, 1, 1], [], []>} : vector<16x32xbf16>, vector<32x96xbf16>, vector<16x96xf32> -> vector<16x96xf32>
    %171 = vector.extract_strided_slice %168 {offsets = [0, 0], sizes = [16, 32], strides = [1, 1]} : vector<16x96xf32> to vector<16x32xf32>
    %172 = vector.extract_strided_slice %170 {offsets = [0, 0], sizes = [16, 32], strides = [1, 1]} : vector<16x96xf32> to vector<16x32xf32>
    %173 = arith.addf %171, %172 : vector<16x32xf32>
    %174 = arith.negf %173 : vector<16x32xf32>
    %175 = math.exp %174 : vector<16x32xf32>
    %cst_59 = arith.constant 1.000000e+00 : f32
    %176 = vector.broadcast %cst_59 : f32 to vector<16x32xf32>
    %177 = arith.addf %176, %175 : vector<16x32xf32>
    %178 = arith.divf %176, %177 : vector<16x32xf32>
    %179 = vector.extract_strided_slice %168 {offsets = [0, 32], sizes = [16, 32], strides = [1, 1]} : vector<16x96xf32> to vector<16x32xf32>
    %180 = vector.extract_strided_slice %170 {offsets = [0, 32], sizes = [16, 32], strides = [1, 1]} : vector<16x96xf32> to vector<16x32xf32>
    %181 = arith.addf %179, %180 : vector<16x32xf32>
    %182 = arith.negf %181 : vector<16x32xf32>
    %183 = math.exp %182 : vector<16x32xf32>
    %cst_60 = arith.constant 1.000000e+00 : f32
    %184 = vector.broadcast %cst_60 : f32 to vector<16x32xf32>
    %185 = arith.addf %184, %183 : vector<16x32xf32>
    %186 = arith.divf %184, %185 : vector<16x32xf32>
    %187 = vector.extract_strided_slice %168 {offsets = [0, 64], sizes = [16, 32], strides = [1, 1]} : vector<16x96xf32> to vector<16x32xf32>
    %188 = vector.extract_strided_slice %170 {offsets = [0, 64], sizes = [16, 32], strides = [1, 1]} : vector<16x96xf32> to vector<16x32xf32>
    %189 = vector.broadcast %21 : vector<1x32xf32> to vector<16x32xf32>
    %190 = arith.addf %188, %189 : vector<16x32xf32>
    %191 = arith.mulf %178, %190 : vector<16x32xf32>
    %192 = arith.addf %187, %191 : vector<16x32xf32>
    %193 = math.tanh %192 : vector<16x32xf32>
    %cst_61 = arith.constant 1.000000e+00 : f32
    %194 = vector.broadcast %cst_61 : f32 to vector<16x32xf32>
    %195 = arith.subf %194, %186 : vector<16x32xf32>
    %196 = arith.mulf %195, %193 : vector<16x32xf32>
    %197 = arith.mulf %186, %108 : vector<16x32xf32>
    %198 = arith.addf %196, %197 : vector<16x32xf32>
    %199 = vector.shape_cast %165 : vector<16x1xi1> to vector<16x1xi1>
    %200 = vector.broadcast %199 : vector<16x1xi1> to vector<16x32xi1>
    %201 = arith.select %200, %198, %108 : vector<16x32xi1>, vector<16x32xf32>
    %cst_62 = arith.constant 0.000000e+00 : f32
    %202 = vector.shape_cast %165 : vector<16x1xi1> to vector<16x1xi1>
    %203 = vector.broadcast %202 : vector<16x1xi1> to vector<16x32xi1>
    %204 = vector.broadcast %cst_62 : f32 to vector<16x32xf32>
    %205 = arith.select %203, %198, %204 : vector<16x32xi1>, vector<16x32xf32>
    %206 = arith.index_cast %117 : i32 to index
    %c0_63 = arith.constant 0 : index
    %c32_64 = arith.constant 32 : index
    %207 = vector.load %arg12[%206, %c0_63, %c32_64] : memref<8x16x64xf32, #tpu.memory_space<vmem>>, vector<1x16x32xf32>
    %208 = vector.shape_cast %207 : vector<1x16x32xf32> to vector<16x32xf32>
    %209 = vector.shape_cast %205 : vector<16x32xf32> to vector<1x16x32xf32>
    tpu.vector_store %arg12[%206, %c0_63, %c32_64], %209 {strides = array<i32>} : memref<8x16x64xf32, #tpu.memory_space<vmem>>, vector<1x16x32xf32>,
    %c2_i32 = arith.constant 2 : i32
    %c7_i32_65 = arith.constant 7 : i32
    %210 = arith.subi %c7_i32_65, %c2_i32 : i32
    %211 = vector.broadcast %c2_i32 : i32 to vector<16x1xi32>
    %212 = arith.cmpi sgt, %22, %211 : vector<16x1xi32>
    %213 = arith.index_cast %c2_i32 : i32 to index
    %c0_66 = arith.constant 0 : index
    %c0_67 = arith.constant 0 : index
    %214 = vector.load %arg14[%213, %c0_66, %c0_67] : memref<8x16x96xf32, #tpu.memory_space<vmem>>, vector<1x16x96xf32>
    %215 = vector.shape_cast %214 : vector<1x16x96xf32> to vector<16x96xf32>
    %216 = arith.truncf %155 : vector<16x32xf32> to vector<16x32xbf16>
    %cst_68 = arith.constant dense<0.000000e+00> : vector<16x96xf32>
    %217 = tpu.matmul %216, %16, %cst_68 {dimension_numbers = #tpu.dot_dimension_numbers<[1], [0], [0], [1], [0, 0, 1, 1], [], []>} : vector<16x32xbf16>, vector<32x96xbf16>, vector<16x96xf32> -> vector<16x96xf32>
    %218 = vector.extract_strided_slice %215 {offsets = [0, 0], sizes = [16, 32], strides = [1, 1]} : vector<16x96xf32> to vector<16x32xf32>
    %219 = vector.extract_strided_slice %217 {offsets = [0, 0], sizes = [16, 32], strides = [1, 1]} : vector<16x96xf32> to vector<16x32xf32>
    %220 = arith.addf %218, %219 : vector<16x32xf32>
    %221 = arith.negf %220 : vector<16x32xf32>
    %222 = math.exp %221 : vector<16x32xf32>
    %cst_69 = arith.constant 1.000000e+00 : f32
    %223 = vector.broadcast %cst_69 : f32 to vector<16x32xf32>
    %224 = arith.addf %223, %222 : vector<16x32xf32>
    %225 = arith.divf %223, %224 : vector<16x32xf32>
    %226 = vector.extract_strided_slice %215 {offsets = [0, 32], sizes = [16, 32], strides = [1, 1]} : vector<16x96xf32> to vector<16x32xf32>
    %227 = vector.extract_strided_slice %217 {offsets = [0, 32], sizes = [16, 32], strides = [1, 1]} : vector<16x96xf32> to vector<16x32xf32>
    %228 = arith.addf %226, %227 : vector<16x32xf32>
    %229 = arith.negf %228 : vector<16x32xf32>
    %230 = math.exp %229 : vector<16x32xf32>
    %cst_70 = arith.constant 1.000000e+00 : f32
    %231 = vector.broadcast %cst_70 : f32 to vector<16x32xf32>
    %232 = arith.addf %231, %230 : vector<16x32xf32>
    %233 = arith.divf %231, %232 : vector<16x32xf32>
    %234 = vector.extract_strided_slice %215 {offsets = [0, 64], sizes = [16, 32], strides = [1, 1]} : vector<16x96xf32> to vector<16x32xf32>
    %235 = vector.extract_strided_slice %217 {offsets = [0, 64], sizes = [16, 32], strides = [1, 1]} : vector<16x96xf32> to vector<16x32xf32>
    %236 = vector.broadcast %19 : vector<1x32xf32> to vector<16x32xf32>
    %237 = arith.addf %235, %236 : vector<16x32xf32>
    %238 = arith.mulf %225, %237 : vector<16x32xf32>
    %239 = arith.addf %234, %238 : vector<16x32xf32>
    %240 = math.tanh %239 : vector<16x32xf32>
    %cst_71 = arith.constant 1.000000e+00 : f32
    %241 = vector.broadcast %cst_71 : f32 to vector<16x32xf32>
    %242 = arith.subf %241, %233 : vector<16x32xf32>
    %243 = arith.mulf %242, %240 : vector<16x32xf32>
    %244 = arith.mulf %233, %155 : vector<16x32xf32>
    %245 = arith.addf %243, %244 : vector<16x32xf32>
    %246 = vector.shape_cast %212 : vector<16x1xi1> to vector<16x1xi1>
    %247 = vector.broadcast %246 : vector<16x1xi1> to vector<16x32xi1>
    %248 = arith.select %247, %245, %155 : vector<16x32xi1>, vector<16x32xf32>
    %cst_72 = arith.constant 0.000000e+00 : f32
    %249 = vector.shape_cast %212 : vector<16x1xi1> to vector<16x1xi1>
    %250 = vector.broadcast %249 : vector<16x1xi1> to vector<16x32xi1>
    %251 = vector.broadcast %cst_72 : f32 to vector<16x32xf32>
    %252 = arith.select %250, %245, %251 : vector<16x32xi1>, vector<16x32xf32>
    %253 = arith.index_cast %c2_i32 : i32 to index
    %c0_73 = arith.constant 0 : index
    %c0_74 = arith.constant 0 : index
    %254 = vector.load %arg12[%253, %c0_73, %c0_74] : memref<8x16x64xf32, #tpu.memory_space<vmem>>, vector<1x16x32xf32>
    %255 = vector.shape_cast %254 : vector<1x16x32xf32> to vector<16x32xf32>
    %256 = vector.shape_cast %252 : vector<16x32xf32> to vector<1x16x32xf32>
    tpu.vector_store %arg12[%253, %c0_73, %c0_74], %256 {strides = array<i32>} : memref<8x16x64xf32, #tpu.memory_space<vmem>>, vector<1x16x32xf32>,
    %257 = vector.broadcast %210 : i32 to vector<16x1xi32>
    %258 = arith.cmpi sgt, %22, %257 : vector<16x1xi32>
    %259 = arith.index_cast %210 : i32 to index
    %c0_75 = arith.constant 0 : index
    %c0_76 = arith.constant 0 : index
    %260 = vector.load %arg15[%259, %c0_75, %c0_76] : memref<8x16x96xf32, #tpu.memory_space<vmem>>, vector<1x16x96xf32>
    %261 = vector.shape_cast %260 : vector<1x16x96xf32> to vector<16x96xf32>
    %262 = arith.truncf %201 : vector<16x32xf32> to vector<16x32xbf16>
    %cst_77 = arith.constant dense<0.000000e+00> : vector<16x96xf32>
    %263 = tpu.matmul %262, %17, %cst_77 {dimension_numbers = #tpu.dot_dimension_numbers<[1], [0], [0], [1], [0, 0, 1, 1], [], []>} : vector<16x32xbf16>, vector<32x96xbf16>, vector<16x96xf32> -> vector<16x96xf32>
    %264 = vector.extract_strided_slice %261 {offsets = [0, 0], sizes = [16, 32], strides = [1, 1]} : vector<16x96xf32> to vector<16x32xf32>
    %265 = vector.extract_strided_slice %263 {offsets = [0, 0], sizes = [16, 32], strides = [1, 1]} : vector<16x96xf32> to vector<16x32xf32>
    %266 = arith.addf %264, %265 : vector<16x32xf32>
    %267 = arith.negf %266 : vector<16x32xf32>
    %268 = math.exp %267 : vector<16x32xf32>
    %cst_78 = arith.constant 1.000000e+00 : f32
    %269 = vector.broadcast %cst_78 : f32 to vector<16x32xf32>
    %270 = arith.addf %269, %268 : vector<16x32xf32>
    %271 = arith.divf %269, %270 : vector<16x32xf32>
    %272 = vector.extract_strided_slice %261 {offsets = [0, 32], sizes = [16, 32], strides = [1, 1]} : vector<16x96xf32> to vector<16x32xf32>
    %273 = vector.extract_strided_slice %263 {offsets = [0, 32], sizes = [16, 32], strides = [1, 1]} : vector<16x96xf32> to vector<16x32xf32>
    %274 = arith.addf %272, %273 : vector<16x32xf32>
    %275 = arith.negf %274 : vector<16x32xf32>
    %276 = math.exp %275 : vector<16x32xf32>
    %cst_79 = arith.constant 1.000000e+00 : f32
    %277 = vector.broadcast %cst_79 : f32 to vector<16x32xf32>
    %278 = arith.addf %277, %276 : vector<16x32xf32>
    %279 = arith.divf %277, %278 : vector<16x32xf32>
    %280 = vector.extract_strided_slice %261 {offsets = [0, 64], sizes = [16, 32], strides = [1, 1]} : vector<16x96xf32> to vector<16x32xf32>
    %281 = vector.extract_strided_slice %263 {offsets = [0, 64], sizes = [16, 32], strides = [1, 1]} : vector<16x96xf32> to vector<16x32xf32>
    %282 = vector.broadcast %21 : vector<1x32xf32> to vector<16x32xf32>
    %283 = arith.addf %281, %282 : vector<16x32xf32>
    %284 = arith.mulf %271, %283 : vector<16x32xf32>
    %285 = arith.addf %280, %284 : vector<16x32xf32>
    %286 = math.tanh %285 : vector<16x32xf32>
    %cst_80 = arith.constant 1.000000e+00 : f32
    %287 = vector.broadcast %cst_80 : f32 to vector<16x32xf32>
    %288 = arith.subf %287, %279 : vector<16x32xf32>
    %289 = arith.mulf %288, %286 : vector<16x32xf32>
    %290 = arith.mulf %279, %201 : vector<16x32xf32>
    %291 = arith.addf %289, %290 : vector<16x32xf32>
    %292 = vector.shape_cast %258 : vector<16x1xi1> to vector<16x1xi1>
    %293 = vector.broadcast %292 : vector<16x1xi1> to vector<16x32xi1>
    %294 = arith.select %293, %291, %201 : vector<16x32xi1>, vector<16x32xf32>
    %cst_81 = arith.constant 0.000000e+00 : f32
    %295 = vector.shape_cast %258 : vector<16x1xi1> to vector<16x1xi1>
    %296 = vector.broadcast %295 : vector<16x1xi1> to vector<16x32xi1>
    %297 = vector.broadcast %cst_81 : f32 to vector<16x32xf32>
    %298 = arith.select %296, %291, %297 : vector<16x32xi1>, vector<16x32xf32>
    %299 = arith.index_cast %210 : i32 to index
    %c0_82 = arith.constant 0 : index
    %c32_83 = arith.constant 32 : index
    %300 = vector.load %arg12[%299, %c0_82, %c32_83] : memref<8x16x64xf32, #tpu.memory_space<vmem>>, vector<1x16x32xf32>
    %301 = vector.shape_cast %300 : vector<1x16x32xf32> to vector<16x32xf32>
    %302 = vector.shape_cast %298 : vector<16x32xf32> to vector<1x16x32xf32>
    tpu.vector_store %arg12[%299, %c0_82, %c32_83], %302 {strides = array<i32>} : memref<8x16x64xf32, #tpu.memory_space<vmem>>, vector<1x16x32xf32>,
    %c3_i32 = arith.constant 3 : i32
    %c7_i32_84 = arith.constant 7 : i32
    %303 = arith.subi %c7_i32_84, %c3_i32 : i32
    %304 = vector.broadcast %c3_i32 : i32 to vector<16x1xi32>
    %305 = arith.cmpi sgt, %22, %304 : vector<16x1xi32>
    %306 = arith.index_cast %c3_i32 : i32 to index
    %c0_85 = arith.constant 0 : index
    %c0_86 = arith.constant 0 : index
    %307 = vector.load %arg14[%306, %c0_85, %c0_86] : memref<8x16x96xf32, #tpu.memory_space<vmem>>, vector<1x16x96xf32>
    %308 = vector.shape_cast %307 : vector<1x16x96xf32> to vector<16x96xf32>
    %309 = arith.truncf %248 : vector<16x32xf32> to vector<16x32xbf16>
    %cst_87 = arith.constant dense<0.000000e+00> : vector<16x96xf32>
    %310 = tpu.matmul %309, %16, %cst_87 {dimension_numbers = #tpu.dot_dimension_numbers<[1], [0], [0], [1], [0, 0, 1, 1], [], []>} : vector<16x32xbf16>, vector<32x96xbf16>, vector<16x96xf32> -> vector<16x96xf32>
    %311 = vector.extract_strided_slice %308 {offsets = [0, 0], sizes = [16, 32], strides = [1, 1]} : vector<16x96xf32> to vector<16x32xf32>
    %312 = vector.extract_strided_slice %310 {offsets = [0, 0], sizes = [16, 32], strides = [1, 1]} : vector<16x96xf32> to vector<16x32xf32>
    %313 = arith.addf %311, %312 : vector<16x32xf32>
    %314 = arith.negf %313 : vector<16x32xf32>
    %315 = math.exp %314 : vector<16x32xf32>
    %cst_88 = arith.constant 1.000000e+00 : f32
    %316 = vector.broadcast %cst_88 : f32 to vector<16x32xf32>
    %317 = arith.addf %316, %315 : vector<16x32xf32>
    %318 = arith.divf %316, %317 : vector<16x32xf32>
    %319 = vector.extract_strided_slice %308 {offsets = [0, 32], sizes = [16, 32], strides = [1, 1]} : vector<16x96xf32> to vector<16x32xf32>
    %320 = vector.extract_strided_slice %310 {offsets = [0, 32], sizes = [16, 32], strides = [1, 1]} : vector<16x96xf32> to vector<16x32xf32>
    %321 = arith.addf %319, %320 : vector<16x32xf32>
    %322 = arith.negf %321 : vector<16x32xf32>
    %323 = math.exp %322 : vector<16x32xf32>
    %cst_89 = arith.constant 1.000000e+00 : f32
    %324 = vector.broadcast %cst_89 : f32 to vector<16x32xf32>
    %325 = arith.addf %324, %323 : vector<16x32xf32>
    %326 = arith.divf %324, %325 : vector<16x32xf32>
    %327 = vector.extract_strided_slice %308 {offsets = [0, 64], sizes = [16, 32], strides = [1, 1]} : vector<16x96xf32> to vector<16x32xf32>
    %328 = vector.extract_strided_slice %310 {offsets = [0, 64], sizes = [16, 32], strides = [1, 1]} : vector<16x96xf32> to vector<16x32xf32>
    %329 = vector.broadcast %19 : vector<1x32xf32> to vector<16x32xf32>
    %330 = arith.addf %328, %329 : vector<16x32xf32>
    %331 = arith.mulf %318, %330 : vector<16x32xf32>
    %332 = arith.addf %327, %331 : vector<16x32xf32>
    %333 = math.tanh %332 : vector<16x32xf32>
    %cst_90 = arith.constant 1.000000e+00 : f32
    %334 = vector.broadcast %cst_90 : f32 to vector<16x32xf32>
    %335 = arith.subf %334, %326 : vector<16x32xf32>
    %336 = arith.mulf %335, %333 : vector<16x32xf32>
    %337 = arith.mulf %326, %248 : vector<16x32xf32>
    %338 = arith.addf %336, %337 : vector<16x32xf32>
    %339 = vector.shape_cast %305 : vector<16x1xi1> to vector<16x1xi1>
    %340 = vector.broadcast %339 : vector<16x1xi1> to vector<16x32xi1>
    %341 = arith.select %340, %338, %248 : vector<16x32xi1>, vector<16x32xf32>
    %cst_91 = arith.constant 0.000000e+00 : f32
    %342 = vector.shape_cast %305 : vector<16x1xi1> to vector<16x1xi1>
    %343 = vector.broadcast %342 : vector<16x1xi1> to vector<16x32xi1>
    %344 = vector.broadcast %cst_91 : f32 to vector<16x32xf32>
    %345 = arith.select %343, %338, %344 : vector<16x32xi1>, vector<16x32xf32>
    %346 = arith.index_cast %c3_i32 : i32 to index
    %c0_92 = arith.constant 0 : index
    %c0_93 = arith.constant 0 : index
    %347 = vector.load %arg12[%346, %c0_92, %c0_93] : memref<8x16x64xf32, #tpu.memory_space<vmem>>, vector<1x16x32xf32>
    %348 = vector.shape_cast %347 : vector<1x16x32xf32> to vector<16x32xf32>
    %349 = vector.shape_cast %345 : vector<16x32xf32> to vector<1x16x32xf32>
    tpu.vector_store %arg12[%346, %c0_92, %c0_93], %349 {strides = array<i32>} : memref<8x16x64xf32, #tpu.memory_space<vmem>>, vector<1x16x32xf32>,
    %350 = vector.broadcast %303 : i32 to vector<16x1xi32>
    %351 = arith.cmpi sgt, %22, %350 : vector<16x1xi32>
    %352 = arith.index_cast %303 : i32 to index
    %c0_94 = arith.constant 0 : index
    %c0_95 = arith.constant 0 : index
    %353 = vector.load %arg15[%352, %c0_94, %c0_95] : memref<8x16x96xf32, #tpu.memory_space<vmem>>, vector<1x16x96xf32>
    %354 = vector.shape_cast %353 : vector<1x16x96xf32> to vector<16x96xf32>
    %355 = arith.truncf %294 : vector<16x32xf32> to vector<16x32xbf16>
    %cst_96 = arith.constant dense<0.000000e+00> : vector<16x96xf32>
    %356 = tpu.matmul %355, %17, %cst_96 {dimension_numbers = #tpu.dot_dimension_numbers<[1], [0], [0], [1], [0, 0, 1, 1], [], []>} : vector<16x32xbf16>, vector<32x96xbf16>, vector<16x96xf32> -> vector<16x96xf32>
    %357 = vector.extract_strided_slice %354 {offsets = [0, 0], sizes = [16, 32], strides = [1, 1]} : vector<16x96xf32> to vector<16x32xf32>
    %358 = vector.extract_strided_slice %356 {offsets = [0, 0], sizes = [16, 32], strides = [1, 1]} : vector<16x96xf32> to vector<16x32xf32>
    %359 = arith.addf %357, %358 : vector<16x32xf32>
    %360 = arith.negf %359 : vector<16x32xf32>
    %361 = math.exp %360 : vector<16x32xf32>
    %cst_97 = arith.constant 1.000000e+00 : f32
    %362 = vector.broadcast %cst_97 : f32 to vector<16x32xf32>
    %363 = arith.addf %362, %361 : vector<16x32xf32>
    %364 = arith.divf %362, %363 : vector<16x32xf32>
    %365 = vector.extract_strided_slice %354 {offsets = [0, 32], sizes = [16, 32], strides = [1, 1]} : vector<16x96xf32> to vector<16x32xf32>
    %366 = vector.extract_strided_slice %356 {offsets = [0, 32], sizes = [16, 32], strides = [1, 1]} : vector<16x96xf32> to vector<16x32xf32>
    %367 = arith.addf %365, %366 : vector<16x32xf32>
    %368 = arith.negf %367 : vector<16x32xf32>
    %369 = math.exp %368 : vector<16x32xf32>
    %cst_98 = arith.constant 1.000000e+00 : f32
    %370 = vector.broadcast %cst_98 : f32 to vector<16x32xf32>
    %371 = arith.addf %370, %369 : vector<16x32xf32>
    %372 = arith.divf %370, %371 : vector<16x32xf32>
    %373 = vector.extract_strided_slice %354 {offsets = [0, 64], sizes = [16, 32], strides = [1, 1]} : vector<16x96xf32> to vector<16x32xf32>
    %374 = vector.extract_strided_slice %356 {offsets = [0, 64], sizes = [16, 32], strides = [1, 1]} : vector<16x96xf32> to vector<16x32xf32>
    %375 = vector.broadcast %21 : vector<1x32xf32> to vector<16x32xf32>
    %376 = arith.addf %374, %375 : vector<16x32xf32>
    %377 = arith.mulf %364, %376 : vector<16x32xf32>
    %378 = arith.addf %373, %377 : vector<16x32xf32>
    %379 = math.tanh %378 : vector<16x32xf32>
    %cst_99 = arith.constant 1.000000e+00 : f32
    %380 = vector.broadcast %cst_99 : f32 to vector<16x32xf32>
    %381 = arith.subf %380, %372 : vector<16x32xf32>
    %382 = arith.mulf %381, %379 : vector<16x32xf32>
    %383 = arith.mulf %372, %294 : vector<16x32xf32>
    %384 = arith.addf %382, %383 : vector<16x32xf32>
    %385 = vector.shape_cast %351 : vector<16x1xi1> to vector<16x1xi1>
    %386 = vector.broadcast %385 : vector<16x1xi1> to vector<16x32xi1>
    %387 = arith.select %386, %384, %294 : vector<16x32xi1>, vector<16x32xf32>
    %cst_100 = arith.constant 0.000000e+00 : f32
    %388 = vector.shape_cast %351 : vector<16x1xi1> to vector<16x1xi1>
    %389 = vector.broadcast %388 : vector<16x1xi1> to vector<16x32xi1>
    %390 = vector.broadcast %cst_100 : f32 to vector<16x32xf32>
    %391 = arith.select %389, %384, %390 : vector<16x32xi1>, vector<16x32xf32>
    %392 = arith.index_cast %303 : i32 to index
    %c0_101 = arith.constant 0 : index
    %c32_102 = arith.constant 32 : index
    %393 = vector.load %arg12[%392, %c0_101, %c32_102] : memref<8x16x64xf32, #tpu.memory_space<vmem>>, vector<1x16x32xf32>
    %394 = vector.shape_cast %393 : vector<1x16x32xf32> to vector<16x32xf32>
    %395 = vector.shape_cast %391 : vector<16x32xf32> to vector<1x16x32xf32>
    tpu.vector_store %arg12[%392, %c0_101, %c32_102], %395 {strides = array<i32>} : memref<8x16x64xf32, #tpu.memory_space<vmem>>, vector<1x16x32xf32>,
    %c4_i32 = arith.constant 4 : i32
    %c7_i32_103 = arith.constant 7 : i32
    %396 = arith.subi %c7_i32_103, %c4_i32 : i32
    %397 = vector.broadcast %c4_i32 : i32 to vector<16x1xi32>
    %398 = arith.cmpi sgt, %22, %397 : vector<16x1xi32>
    %399 = arith.index_cast %c4_i32 : i32 to index
    %c0_104 = arith.constant 0 : index
    %c0_105 = arith.constant 0 : index
    %400 = vector.load %arg14[%399, %c0_104, %c0_105] : memref<8x16x96xf32, #tpu.memory_space<vmem>>, vector<1x16x96xf32>
    %401 = vector.shape_cast %400 : vector<1x16x96xf32> to vector<16x96xf32>
    %402 = arith.truncf %341 : vector<16x32xf32> to vector<16x32xbf16>
    %cst_106 = arith.constant dense<0.000000e+00> : vector<16x96xf32>
    %403 = tpu.matmul %402, %16, %cst_106 {dimension_numbers = #tpu.dot_dimension_numbers<[1], [0], [0], [1], [0, 0, 1, 1], [], []>} : vector<16x32xbf16>, vector<32x96xbf16>, vector<16x96xf32> -> vector<16x96xf32>
    %404 = vector.extract_strided_slice %401 {offsets = [0, 0], sizes = [16, 32], strides = [1, 1]} : vector<16x96xf32> to vector<16x32xf32>
    %405 = vector.extract_strided_slice %403 {offsets = [0, 0], sizes = [16, 32], strides = [1, 1]} : vector<16x96xf32> to vector<16x32xf32>
    %406 = arith.addf %404, %405 : vector<16x32xf32>
    %407 = arith.negf %406 : vector<16x32xf32>
    %408 = math.exp %407 : vector<16x32xf32>
    %cst_107 = arith.constant 1.000000e+00 : f32
    %409 = vector.broadcast %cst_107 : f32 to vector<16x32xf32>
    %410 = arith.addf %409, %408 : vector<16x32xf32>
    %411 = arith.divf %409, %410 : vector<16x32xf32>
    %412 = vector.extract_strided_slice %401 {offsets = [0, 32], sizes = [16, 32], strides = [1, 1]} : vector<16x96xf32> to vector<16x32xf32>
    %413 = vector.extract_strided_slice %403 {offsets = [0, 32], sizes = [16, 32], strides = [1, 1]} : vector<16x96xf32> to vector<16x32xf32>
    %414 = arith.addf %412, %413 : vector<16x32xf32>
    %415 = arith.negf %414 : vector<16x32xf32>
    %416 = math.exp %415 : vector<16x32xf32>
    %cst_108 = arith.constant 1.000000e+00 : f32
    %417 = vector.broadcast %cst_108 : f32 to vector<16x32xf32>
    %418 = arith.addf %417, %416 : vector<16x32xf32>
    %419 = arith.divf %417, %418 : vector<16x32xf32>
    %420 = vector.extract_strided_slice %401 {offsets = [0, 64], sizes = [16, 32], strides = [1, 1]} : vector<16x96xf32> to vector<16x32xf32>
    %421 = vector.extract_strided_slice %403 {offsets = [0, 64], sizes = [16, 32], strides = [1, 1]} : vector<16x96xf32> to vector<16x32xf32>
    %422 = vector.broadcast %19 : vector<1x32xf32> to vector<16x32xf32>
    %423 = arith.addf %421, %422 : vector<16x32xf32>
    %424 = arith.mulf %411, %423 : vector<16x32xf32>
    %425 = arith.addf %420, %424 : vector<16x32xf32>
    %426 = math.tanh %425 : vector<16x32xf32>
    %cst_109 = arith.constant 1.000000e+00 : f32
    %427 = vector.broadcast %cst_109 : f32 to vector<16x32xf32>
    %428 = arith.subf %427, %419 : vector<16x32xf32>
    %429 = arith.mulf %428, %426 : vector<16x32xf32>
    %430 = arith.mulf %419, %341 : vector<16x32xf32>
    %431 = arith.addf %429, %430 : vector<16x32xf32>
    %432 = vector.shape_cast %398 : vector<16x1xi1> to vector<16x1xi1>
    %433 = vector.broadcast %432 : vector<16x1xi1> to vector<16x32xi1>
    %434 = arith.select %433, %431, %341 : vector<16x32xi1>, vector<16x32xf32>
    %cst_110 = arith.constant 0.000000e+00 : f32
    %435 = vector.shape_cast %398 : vector<16x1xi1> to vector<16x1xi1>
    %436 = vector.broadcast %435 : vector<16x1xi1> to vector<16x32xi1>
    %437 = vector.broadcast %cst_110 : f32 to vector<16x32xf32>
    %438 = arith.select %436, %431, %437 : vector<16x32xi1>, vector<16x32xf32>
    %439 = arith.index_cast %c4_i32 : i32 to index
    %c0_111 = arith.constant 0 : index
    %c0_112 = arith.constant 0 : index
    %440 = vector.load %arg12[%439, %c0_111, %c0_112] : memref<8x16x64xf32, #tpu.memory_space<vmem>>, vector<1x16x32xf32>
    %441 = vector.shape_cast %440 : vector<1x16x32xf32> to vector<16x32xf32>
    %442 = vector.shape_cast %438 : vector<16x32xf32> to vector<1x16x32xf32>
    tpu.vector_store %arg12[%439, %c0_111, %c0_112], %442 {strides = array<i32>} : memref<8x16x64xf32, #tpu.memory_space<vmem>>, vector<1x16x32xf32>,
    %443 = vector.broadcast %396 : i32 to vector<16x1xi32>
    %444 = arith.cmpi sgt, %22, %443 : vector<16x1xi32>
    %445 = arith.index_cast %396 : i32 to index
    %c0_113 = arith.constant 0 : index
    %c0_114 = arith.constant 0 : index
    %446 = vector.load %arg15[%445, %c0_113, %c0_114] : memref<8x16x96xf32, #tpu.memory_space<vmem>>, vector<1x16x96xf32>
    %447 = vector.shape_cast %446 : vector<1x16x96xf32> to vector<16x96xf32>
    %448 = arith.truncf %387 : vector<16x32xf32> to vector<16x32xbf16>
    %cst_115 = arith.constant dense<0.000000e+00> : vector<16x96xf32>
    %449 = tpu.matmul %448, %17, %cst_115 {dimension_numbers = #tpu.dot_dimension_numbers<[1], [0], [0], [1], [0, 0, 1, 1], [], []>} : vector<16x32xbf16>, vector<32x96xbf16>, vector<16x96xf32> -> vector<16x96xf32>
    %450 = vector.extract_strided_slice %447 {offsets = [0, 0], sizes = [16, 32], strides = [1, 1]} : vector<16x96xf32> to vector<16x32xf32>
    %451 = vector.extract_strided_slice %449 {offsets = [0, 0], sizes = [16, 32], strides = [1, 1]} : vector<16x96xf32> to vector<16x32xf32>
    %452 = arith.addf %450, %451 : vector<16x32xf32>
    %453 = arith.negf %452 : vector<16x32xf32>
    %454 = math.exp %453 : vector<16x32xf32>
    %cst_116 = arith.constant 1.000000e+00 : f32
    %455 = vector.broadcast %cst_116 : f32 to vector<16x32xf32>
    %456 = arith.addf %455, %454 : vector<16x32xf32>
    %457 = arith.divf %455, %456 : vector<16x32xf32>
    %458 = vector.extract_strided_slice %447 {offsets = [0, 32], sizes = [16, 32], strides = [1, 1]} : vector<16x96xf32> to vector<16x32xf32>
    %459 = vector.extract_strided_slice %449 {offsets = [0, 32], sizes = [16, 32], strides = [1, 1]} : vector<16x96xf32> to vector<16x32xf32>
    %460 = arith.addf %458, %459 : vector<16x32xf32>
    %461 = arith.negf %460 : vector<16x32xf32>
    %462 = math.exp %461 : vector<16x32xf32>
    %cst_117 = arith.constant 1.000000e+00 : f32
    %463 = vector.broadcast %cst_117 : f32 to vector<16x32xf32>
    %464 = arith.addf %463, %462 : vector<16x32xf32>
    %465 = arith.divf %463, %464 : vector<16x32xf32>
    %466 = vector.extract_strided_slice %447 {offsets = [0, 64], sizes = [16, 32], strides = [1, 1]} : vector<16x96xf32> to vector<16x32xf32>
    %467 = vector.extract_strided_slice %449 {offsets = [0, 64], sizes = [16, 32], strides = [1, 1]} : vector<16x96xf32> to vector<16x32xf32>
    %468 = vector.broadcast %21 : vector<1x32xf32> to vector<16x32xf32>
    %469 = arith.addf %467, %468 : vector<16x32xf32>
    %470 = arith.mulf %457, %469 : vector<16x32xf32>
    %471 = arith.addf %466, %470 : vector<16x32xf32>
    %472 = math.tanh %471 : vector<16x32xf32>
    %cst_118 = arith.constant 1.000000e+00 : f32
    %473 = vector.broadcast %cst_118 : f32 to vector<16x32xf32>
    %474 = arith.subf %473, %465 : vector<16x32xf32>
    %475 = arith.mulf %474, %472 : vector<16x32xf32>
    %476 = arith.mulf %465, %387 : vector<16x32xf32>
    %477 = arith.addf %475, %476 : vector<16x32xf32>
    %478 = vector.shape_cast %444 : vector<16x1xi1> to vector<16x1xi1>
    %479 = vector.broadcast %478 : vector<16x1xi1> to vector<16x32xi1>
    %480 = arith.select %479, %477, %387 : vector<16x32xi1>, vector<16x32xf32>
    %cst_119 = arith.constant 0.000000e+00 : f32
    %481 = vector.shape_cast %444 : vector<16x1xi1> to vector<16x1xi1>
    %482 = vector.broadcast %481 : vector<16x1xi1> to vector<16x32xi1>
    %483 = vector.broadcast %cst_119 : f32 to vector<16x32xf32>
    %484 = arith.select %482, %477, %483 : vector<16x32xi1>, vector<16x32xf32>
    %485 = arith.index_cast %396 : i32 to index
    %c0_120 = arith.constant 0 : index
    %c32_121 = arith.constant 32 : index
    %486 = vector.load %arg12[%485, %c0_120, %c32_121] : memref<8x16x64xf32, #tpu.memory_space<vmem>>, vector<1x16x32xf32>
    %487 = vector.shape_cast %486 : vector<1x16x32xf32> to vector<16x32xf32>
    %488 = vector.shape_cast %484 : vector<16x32xf32> to vector<1x16x32xf32>
    tpu.vector_store %arg12[%485, %c0_120, %c32_121], %488 {strides = array<i32>} : memref<8x16x64xf32, #tpu.memory_space<vmem>>, vector<1x16x32xf32>,
    %c5_i32 = arith.constant 5 : i32
    %c7_i32_122 = arith.constant 7 : i32
    %489 = arith.subi %c7_i32_122, %c5_i32 : i32
    %490 = vector.broadcast %c5_i32 : i32 to vector<16x1xi32>
    %491 = arith.cmpi sgt, %22, %490 : vector<16x1xi32>
    %492 = arith.index_cast %c5_i32 : i32 to index
    %c0_123 = arith.constant 0 : index
    %c0_124 = arith.constant 0 : index
    %493 = vector.load %arg14[%492, %c0_123, %c0_124] : memref<8x16x96xf32, #tpu.memory_space<vmem>>, vector<1x16x96xf32>
    %494 = vector.shape_cast %493 : vector<1x16x96xf32> to vector<16x96xf32>
    %495 = arith.truncf %434 : vector<16x32xf32> to vector<16x32xbf16>
    %cst_125 = arith.constant dense<0.000000e+00> : vector<16x96xf32>
    %496 = tpu.matmul %495, %16, %cst_125 {dimension_numbers = #tpu.dot_dimension_numbers<[1], [0], [0], [1], [0, 0, 1, 1], [], []>} : vector<16x32xbf16>, vector<32x96xbf16>, vector<16x96xf32> -> vector<16x96xf32>
    %497 = vector.extract_strided_slice %494 {offsets = [0, 0], sizes = [16, 32], strides = [1, 1]} : vector<16x96xf32> to vector<16x32xf32>
    %498 = vector.extract_strided_slice %496 {offsets = [0, 0], sizes = [16, 32], strides = [1, 1]} : vector<16x96xf32> to vector<16x32xf32>
    %499 = arith.addf %497, %498 : vector<16x32xf32>
    %500 = arith.negf %499 : vector<16x32xf32>
    %501 = math.exp %500 : vector<16x32xf32>
    %cst_126 = arith.constant 1.000000e+00 : f32
    %502 = vector.broadcast %cst_126 : f32 to vector<16x32xf32>
    %503 = arith.addf %502, %501 : vector<16x32xf32>
    %504 = arith.divf %502, %503 : vector<16x32xf32>
    %505 = vector.extract_strided_slice %494 {offsets = [0, 32], sizes = [16, 32], strides = [1, 1]} : vector<16x96xf32> to vector<16x32xf32>
    %506 = vector.extract_strided_slice %496 {offsets = [0, 32], sizes = [16, 32], strides = [1, 1]} : vector<16x96xf32> to vector<16x32xf32>
    %507 = arith.addf %505, %506 : vector<16x32xf32>
    %508 = arith.negf %507 : vector<16x32xf32>
    %509 = math.exp %508 : vector<16x32xf32>
    %cst_127 = arith.constant 1.000000e+00 : f32
    %510 = vector.broadcast %cst_127 : f32 to vector<16x32xf32>
    %511 = arith.addf %510, %509 : vector<16x32xf32>
    %512 = arith.divf %510, %511 : vector<16x32xf32>
    %513 = vector.extract_strided_slice %494 {offsets = [0, 64], sizes = [16, 32], strides = [1, 1]} : vector<16x96xf32> to vector<16x32xf32>
    %514 = vector.extract_strided_slice %496 {offsets = [0, 64], sizes = [16, 32], strides = [1, 1]} : vector<16x96xf32> to vector<16x32xf32>
    %515 = vector.broadcast %19 : vector<1x32xf32> to vector<16x32xf32>
    %516 = arith.addf %514, %515 : vector<16x32xf32>
    %517 = arith.mulf %504, %516 : vector<16x32xf32>
    %518 = arith.addf %513, %517 : vector<16x32xf32>
    %519 = math.tanh %518 : vector<16x32xf32>
    %cst_128 = arith.constant 1.000000e+00 : f32
    %520 = vector.broadcast %cst_128 : f32 to vector<16x32xf32>
    %521 = arith.subf %520, %512 : vector<16x32xf32>
    %522 = arith.mulf %521, %519 : vector<16x32xf32>
    %523 = arith.mulf %512, %434 : vector<16x32xf32>
    %524 = arith.addf %522, %523 : vector<16x32xf32>
    %525 = vector.shape_cast %491 : vector<16x1xi1> to vector<16x1xi1>
    %526 = vector.broadcast %525 : vector<16x1xi1> to vector<16x32xi1>
    %527 = arith.select %526, %524, %434 : vector<16x32xi1>, vector<16x32xf32>
    %cst_129 = arith.constant 0.000000e+00 : f32
    %528 = vector.shape_cast %491 : vector<16x1xi1> to vector<16x1xi1>
    %529 = vector.broadcast %528 : vector<16x1xi1> to vector<16x32xi1>
    %530 = vector.broadcast %cst_129 : f32 to vector<16x32xf32>
    %531 = arith.select %529, %524, %530 : vector<16x32xi1>, vector<16x32xf32>
    %532 = arith.index_cast %c5_i32 : i32 to index
    %c0_130 = arith.constant 0 : index
    %c0_131 = arith.constant 0 : index
    %533 = vector.load %arg12[%532, %c0_130, %c0_131] : memref<8x16x64xf32, #tpu.memory_space<vmem>>, vector<1x16x32xf32>
    %534 = vector.shape_cast %533 : vector<1x16x32xf32> to vector<16x32xf32>
    %535 = vector.shape_cast %531 : vector<16x32xf32> to vector<1x16x32xf32>
    tpu.vector_store %arg12[%532, %c0_130, %c0_131], %535 {strides = array<i32>} : memref<8x16x64xf32, #tpu.memory_space<vmem>>, vector<1x16x32xf32>,
    %536 = vector.broadcast %489 : i32 to vector<16x1xi32>
    %537 = arith.cmpi sgt, %22, %536 : vector<16x1xi32>
    %538 = arith.index_cast %489 : i32 to index
    %c0_132 = arith.constant 0 : index
    %c0_133 = arith.constant 0 : index
    %539 = vector.load %arg15[%538, %c0_132, %c0_133] : memref<8x16x96xf32, #tpu.memory_space<vmem>>, vector<1x16x96xf32>
    %540 = vector.shape_cast %539 : vector<1x16x96xf32> to vector<16x96xf32>
    %541 = arith.truncf %480 : vector<16x32xf32> to vector<16x32xbf16>
    %cst_134 = arith.constant dense<0.000000e+00> : vector<16x96xf32>
    %542 = tpu.matmul %541, %17, %cst_134 {dimension_numbers = #tpu.dot_dimension_numbers<[1], [0], [0], [1], [0, 0, 1, 1], [], []>} : vector<16x32xbf16>, vector<32x96xbf16>, vector<16x96xf32> -> vector<16x96xf32>
    %543 = vector.extract_strided_slice %540 {offsets = [0, 0], sizes = [16, 32], strides = [1, 1]} : vector<16x96xf32> to vector<16x32xf32>
    %544 = vector.extract_strided_slice %542 {offsets = [0, 0], sizes = [16, 32], strides = [1, 1]} : vector<16x96xf32> to vector<16x32xf32>
    %545 = arith.addf %543, %544 : vector<16x32xf32>
    %546 = arith.negf %545 : vector<16x32xf32>
    %547 = math.exp %546 : vector<16x32xf32>
    %cst_135 = arith.constant 1.000000e+00 : f32
    %548 = vector.broadcast %cst_135 : f32 to vector<16x32xf32>
    %549 = arith.addf %548, %547 : vector<16x32xf32>
    %550 = arith.divf %548, %549 : vector<16x32xf32>
    %551 = vector.extract_strided_slice %540 {offsets = [0, 32], sizes = [16, 32], strides = [1, 1]} : vector<16x96xf32> to vector<16x32xf32>
    %552 = vector.extract_strided_slice %542 {offsets = [0, 32], sizes = [16, 32], strides = [1, 1]} : vector<16x96xf32> to vector<16x32xf32>
    %553 = arith.addf %551, %552 : vector<16x32xf32>
    %554 = arith.negf %553 : vector<16x32xf32>
    %555 = math.exp %554 : vector<16x32xf32>
    %cst_136 = arith.constant 1.000000e+00 : f32
    %556 = vector.broadcast %cst_136 : f32 to vector<16x32xf32>
    %557 = arith.addf %556, %555 : vector<16x32xf32>
    %558 = arith.divf %556, %557 : vector<16x32xf32>
    %559 = vector.extract_strided_slice %540 {offsets = [0, 64], sizes = [16, 32], strides = [1, 1]} : vector<16x96xf32> to vector<16x32xf32>
    %560 = vector.extract_strided_slice %542 {offsets = [0, 64], sizes = [16, 32], strides = [1, 1]} : vector<16x96xf32> to vector<16x32xf32>
    %561 = vector.broadcast %21 : vector<1x32xf32> to vector<16x32xf32>
    %562 = arith.addf %560, %561 : vector<16x32xf32>
    %563 = arith.mulf %550, %562 : vector<16x32xf32>
    %564 = arith.addf %559, %563 : vector<16x32xf32>
    %565 = math.tanh %564 : vector<16x32xf32>
    %cst_137 = arith.constant 1.000000e+00 : f32
    %566 = vector.broadcast %cst_137 : f32 to vector<16x32xf32>
    %567 = arith.subf %566, %558 : vector<16x32xf32>
    %568 = arith.mulf %567, %565 : vector<16x32xf32>
    %569 = arith.mulf %558, %480 : vector<16x32xf32>
    %570 = arith.addf %568, %569 : vector<16x32xf32>
    %571 = vector.shape_cast %537 : vector<16x1xi1> to vector<16x1xi1>
    %572 = vector.broadcast %571 : vector<16x1xi1> to vector<16x32xi1>
    %573 = arith.select %572, %570, %480 : vector<16x32xi1>, vector<16x32xf32>
    %cst_138 = arith.constant 0.000000e+00 : f32
    %574 = vector.shape_cast %537 : vector<16x1xi1> to vector<16x1xi1>
    %575 = vector.broadcast %574 : vector<16x1xi1> to vector<16x32xi1>
    %576 = vector.broadcast %cst_138 : f32 to vector<16x32xf32>
    %577 = arith.select %575, %570, %576 : vector<16x32xi1>, vector<16x32xf32>
    %578 = arith.index_cast %489 : i32 to index
    %c0_139 = arith.constant 0 : index
    %c32_140 = arith.constant 32 : index
    %579 = vector.load %arg12[%578, %c0_139, %c32_140] : memref<8x16x64xf32, #tpu.memory_space<vmem>>, vector<1x16x32xf32>
    %580 = vector.shape_cast %579 : vector<1x16x32xf32> to vector<16x32xf32>
    %581 = vector.shape_cast %577 : vector<16x32xf32> to vector<1x16x32xf32>
    tpu.vector_store %arg12[%578, %c0_139, %c32_140], %581 {strides = array<i32>} : memref<8x16x64xf32, #tpu.memory_space<vmem>>, vector<1x16x32xf32>,
    %c6_i32 = arith.constant 6 : i32
    %c7_i32_141 = arith.constant 7 : i32
    %582 = arith.subi %c7_i32_141, %c6_i32 : i32
    %583 = vector.broadcast %c6_i32 : i32 to vector<16x1xi32>
    %584 = arith.cmpi sgt, %22, %583 : vector<16x1xi32>
    %585 = arith.index_cast %c6_i32 : i32 to index
    %c0_142 = arith.constant 0 : index
    %c0_143 = arith.constant 0 : index
    %586 = vector.load %arg14[%585, %c0_142, %c0_143] : memref<8x16x96xf32, #tpu.memory_space<vmem>>, vector<1x16x96xf32>
    %587 = vector.shape_cast %586 : vector<1x16x96xf32> to vector<16x96xf32>
    %588 = arith.truncf %527 : vector<16x32xf32> to vector<16x32xbf16>
    %cst_144 = arith.constant dense<0.000000e+00> : vector<16x96xf32>
    %589 = tpu.matmul %588, %16, %cst_144 {dimension_numbers = #tpu.dot_dimension_numbers<[1], [0], [0], [1], [0, 0, 1, 1], [], []>} : vector<16x32xbf16>, vector<32x96xbf16>, vector<16x96xf32> -> vector<16x96xf32>
    %590 = vector.extract_strided_slice %587 {offsets = [0, 0], sizes = [16, 32], strides = [1, 1]} : vector<16x96xf32> to vector<16x32xf32>
    %591 = vector.extract_strided_slice %589 {offsets = [0, 0], sizes = [16, 32], strides = [1, 1]} : vector<16x96xf32> to vector<16x32xf32>
    %592 = arith.addf %590, %591 : vector<16x32xf32>
    %593 = arith.negf %592 : vector<16x32xf32>
    %594 = math.exp %593 : vector<16x32xf32>
    %cst_145 = arith.constant 1.000000e+00 : f32
    %595 = vector.broadcast %cst_145 : f32 to vector<16x32xf32>
    %596 = arith.addf %595, %594 : vector<16x32xf32>
    %597 = arith.divf %595, %596 : vector<16x32xf32>
    %598 = vector.extract_strided_slice %587 {offsets = [0, 32], sizes = [16, 32], strides = [1, 1]} : vector<16x96xf32> to vector<16x32xf32>
    %599 = vector.extract_strided_slice %589 {offsets = [0, 32], sizes = [16, 32], strides = [1, 1]} : vector<16x96xf32> to vector<16x32xf32>
    %600 = arith.addf %598, %599 : vector<16x32xf32>
    %601 = arith.negf %600 : vector<16x32xf32>
    %602 = math.exp %601 : vector<16x32xf32>
    %cst_146 = arith.constant 1.000000e+00 : f32
    %603 = vector.broadcast %cst_146 : f32 to vector<16x32xf32>
    %604 = arith.addf %603, %602 : vector<16x32xf32>
    %605 = arith.divf %603, %604 : vector<16x32xf32>
    %606 = vector.extract_strided_slice %587 {offsets = [0, 64], sizes = [16, 32], strides = [1, 1]} : vector<16x96xf32> to vector<16x32xf32>
    %607 = vector.extract_strided_slice %589 {offsets = [0, 64], sizes = [16, 32], strides = [1, 1]} : vector<16x96xf32> to vector<16x32xf32>
    %608 = vector.broadcast %19 : vector<1x32xf32> to vector<16x32xf32>
    %609 = arith.addf %607, %608 : vector<16x32xf32>
    %610 = arith.mulf %597, %609 : vector<16x32xf32>
    %611 = arith.addf %606, %610 : vector<16x32xf32>
    %612 = math.tanh %611 : vector<16x32xf32>
    %cst_147 = arith.constant 1.000000e+00 : f32
    %613 = vector.broadcast %cst_147 : f32 to vector<16x32xf32>
    %614 = arith.subf %613, %605 : vector<16x32xf32>
    %615 = arith.mulf %614, %612 : vector<16x32xf32>
    %616 = arith.mulf %605, %527 : vector<16x32xf32>
    %617 = arith.addf %615, %616 : vector<16x32xf32>
    %618 = vector.shape_cast %584 : vector<16x1xi1> to vector<16x1xi1>
    %619 = vector.broadcast %618 : vector<16x1xi1> to vector<16x32xi1>
    %620 = arith.select %619, %617, %527 : vector<16x32xi1>, vector<16x32xf32>
    %cst_148 = arith.constant 0.000000e+00 : f32
    %621 = vector.shape_cast %584 : vector<16x1xi1> to vector<16x1xi1>
    %622 = vector.broadcast %621 : vector<16x1xi1> to vector<16x32xi1>
    %623 = vector.broadcast %cst_148 : f32 to vector<16x32xf32>
    %624 = arith.select %622, %617, %623 : vector<16x32xi1>, vector<16x32xf32>
    %625 = arith.index_cast %c6_i32 : i32 to index
    %c0_149 = arith.constant 0 : index
    %c0_150 = arith.constant 0 : index
    %626 = vector.load %arg12[%625, %c0_149, %c0_150] : memref<8x16x64xf32, #tpu.memory_space<vmem>>, vector<1x16x32xf32>
    %627 = vector.shape_cast %626 : vector<1x16x32xf32> to vector<16x32xf32>
    %628 = vector.shape_cast %624 : vector<16x32xf32> to vector<1x16x32xf32>
    tpu.vector_store %arg12[%625, %c0_149, %c0_150], %628 {strides = array<i32>} : memref<8x16x64xf32, #tpu.memory_space<vmem>>, vector<1x16x32xf32>,
    %629 = vector.broadcast %582 : i32 to vector<16x1xi32>
    %630 = arith.cmpi sgt, %22, %629 : vector<16x1xi32>
    %631 = arith.index_cast %582 : i32 to index
    %c0_151 = arith.constant 0 : index
    %c0_152 = arith.constant 0 : index
    %632 = vector.load %arg15[%631, %c0_151, %c0_152] : memref<8x16x96xf32, #tpu.memory_space<vmem>>, vector<1x16x96xf32>
    %633 = vector.shape_cast %632 : vector<1x16x96xf32> to vector<16x96xf32>
    %634 = arith.truncf %573 : vector<16x32xf32> to vector<16x32xbf16>
    %cst_153 = arith.constant dense<0.000000e+00> : vector<16x96xf32>
    %635 = tpu.matmul %634, %17, %cst_153 {dimension_numbers = #tpu.dot_dimension_numbers<[1], [0], [0], [1], [0, 0, 1, 1], [], []>} : vector<16x32xbf16>, vector<32x96xbf16>, vector<16x96xf32> -> vector<16x96xf32>
    %636 = vector.extract_strided_slice %633 {offsets = [0, 0], sizes = [16, 32], strides = [1, 1]} : vector<16x96xf32> to vector<16x32xf32>
    %637 = vector.extract_strided_slice %635 {offsets = [0, 0], sizes = [16, 32], strides = [1, 1]} : vector<16x96xf32> to vector<16x32xf32>
    %638 = arith.addf %636, %637 : vector<16x32xf32>
    %639 = arith.negf %638 : vector<16x32xf32>
    %640 = math.exp %639 : vector<16x32xf32>
    %cst_154 = arith.constant 1.000000e+00 : f32
    %641 = vector.broadcast %cst_154 : f32 to vector<16x32xf32>
    %642 = arith.addf %641, %640 : vector<16x32xf32>
    %643 = arith.divf %641, %642 : vector<16x32xf32>
    %644 = vector.extract_strided_slice %633 {offsets = [0, 32], sizes = [16, 32], strides = [1, 1]} : vector<16x96xf32> to vector<16x32xf32>
    %645 = vector.extract_strided_slice %635 {offsets = [0, 32], sizes = [16, 32], strides = [1, 1]} : vector<16x96xf32> to vector<16x32xf32>
    %646 = arith.addf %644, %645 : vector<16x32xf32>
    %647 = arith.negf %646 : vector<16x32xf32>
    %648 = math.exp %647 : vector<16x32xf32>
    %cst_155 = arith.constant 1.000000e+00 : f32
    %649 = vector.broadcast %cst_155 : f32 to vector<16x32xf32>
    %650 = arith.addf %649, %648 : vector<16x32xf32>
    %651 = arith.divf %649, %650 : vector<16x32xf32>
    %652 = vector.extract_strided_slice %633 {offsets = [0, 64], sizes = [16, 32], strides = [1, 1]} : vector<16x96xf32> to vector<16x32xf32>
    %653 = vector.extract_strided_slice %635 {offsets = [0, 64], sizes = [16, 32], strides = [1, 1]} : vector<16x96xf32> to vector<16x32xf32>
    %654 = vector.broadcast %21 : vector<1x32xf32> to vector<16x32xf32>
    %655 = arith.addf %653, %654 : vector<16x32xf32>
    %656 = arith.mulf %643, %655 : vector<16x32xf32>
    %657 = arith.addf %652, %656 : vector<16x32xf32>
    %658 = math.tanh %657 : vector<16x32xf32>
    %cst_156 = arith.constant 1.000000e+00 : f32
    %659 = vector.broadcast %cst_156 : f32 to vector<16x32xf32>
    %660 = arith.subf %659, %651 : vector<16x32xf32>
    %661 = arith.mulf %660, %658 : vector<16x32xf32>
    %662 = arith.mulf %651, %573 : vector<16x32xf32>
    %663 = arith.addf %661, %662 : vector<16x32xf32>
    %664 = vector.shape_cast %630 : vector<16x1xi1> to vector<16x1xi1>
    %665 = vector.broadcast %664 : vector<16x1xi1> to vector<16x32xi1>
    %666 = arith.select %665, %663, %573 : vector<16x32xi1>, vector<16x32xf32>
    %cst_157 = arith.constant 0.000000e+00 : f32
    %667 = vector.shape_cast %630 : vector<16x1xi1> to vector<16x1xi1>
    %668 = vector.broadcast %667 : vector<16x1xi1> to vector<16x32xi1>
    %669 = vector.broadcast %cst_157 : f32 to vector<16x32xf32>
    %670 = arith.select %668, %663, %669 : vector<16x32xi1>, vector<16x32xf32>
    %671 = arith.index_cast %582 : i32 to index
    %c0_158 = arith.constant 0 : index
    %c32_159 = arith.constant 32 : index
    %672 = vector.load %arg12[%671, %c0_158, %c32_159] : memref<8x16x64xf32, #tpu.memory_space<vmem>>, vector<1x16x32xf32>
    %673 = vector.shape_cast %672 : vector<1x16x32xf32> to vector<16x32xf32>
    %674 = vector.shape_cast %670 : vector<16x32xf32> to vector<1x16x32xf32>
    tpu.vector_store %arg12[%671, %c0_158, %c32_159], %674 {strides = array<i32>} : memref<8x16x64xf32, #tpu.memory_space<vmem>>, vector<1x16x32xf32>,
    %c7_i32_160 = arith.constant 7 : i32
    %c7_i32_161 = arith.constant 7 : i32
    %675 = arith.subi %c7_i32_161, %c7_i32_160 : i32
    %676 = vector.broadcast %c7_i32_160 : i32 to vector<16x1xi32>
    %677 = arith.cmpi sgt, %22, %676 : vector<16x1xi32>
    %678 = arith.index_cast %c7_i32_160 : i32 to index
    %c0_162 = arith.constant 0 : index
    %c0_163 = arith.constant 0 : index
    %679 = vector.load %arg14[%678, %c0_162, %c0_163] : memref<8x16x96xf32, #tpu.memory_space<vmem>>, vector<1x16x96xf32>
    %680 = vector.shape_cast %679 : vector<1x16x96xf32> to vector<16x96xf32>
    %681 = arith.truncf %620 : vector<16x32xf32> to vector<16x32xbf16>
    %cst_164 = arith.constant dense<0.000000e+00> : vector<16x96xf32>
    %682 = tpu.matmul %681, %16, %cst_164 {dimension_numbers = #tpu.dot_dimension_numbers<[1], [0], [0], [1], [0, 0, 1, 1], [], []>} : vector<16x32xbf16>, vector<32x96xbf16>, vector<16x96xf32> -> vector<16x96xf32>
    %683 = vector.extract_strided_slice %680 {offsets = [0, 0], sizes = [16, 32], strides = [1, 1]} : vector<16x96xf32> to vector<16x32xf32>
    %684 = vector.extract_strided_slice %682 {offsets = [0, 0], sizes = [16, 32], strides = [1, 1]} : vector<16x96xf32> to vector<16x32xf32>
    %685 = arith.addf %683, %684 : vector<16x32xf32>
    %686 = arith.negf %685 : vector<16x32xf32>
    %687 = math.exp %686 : vector<16x32xf32>
    %cst_165 = arith.constant 1.000000e+00 : f32
    %688 = vector.broadcast %cst_165 : f32 to vector<16x32xf32>
    %689 = arith.addf %688, %687 : vector<16x32xf32>
    %690 = arith.divf %688, %689 : vector<16x32xf32>
    %691 = vector.extract_strided_slice %680 {offsets = [0, 32], sizes = [16, 32], strides = [1, 1]} : vector<16x96xf32> to vector<16x32xf32>
    %692 = vector.extract_strided_slice %682 {offsets = [0, 32], sizes = [16, 32], strides = [1, 1]} : vector<16x96xf32> to vector<16x32xf32>
    %693 = arith.addf %691, %692 : vector<16x32xf32>
    %694 = arith.negf %693 : vector<16x32xf32>
    %695 = math.exp %694 : vector<16x32xf32>
    %cst_166 = arith.constant 1.000000e+00 : f32
    %696 = vector.broadcast %cst_166 : f32 to vector<16x32xf32>
    %697 = arith.addf %696, %695 : vector<16x32xf32>
    %698 = arith.divf %696, %697 : vector<16x32xf32>
    %699 = vector.extract_strided_slice %680 {offsets = [0, 64], sizes = [16, 32], strides = [1, 1]} : vector<16x96xf32> to vector<16x32xf32>
    %700 = vector.extract_strided_slice %682 {offsets = [0, 64], sizes = [16, 32], strides = [1, 1]} : vector<16x96xf32> to vector<16x32xf32>
    %701 = vector.broadcast %19 : vector<1x32xf32> to vector<16x32xf32>
    %702 = arith.addf %700, %701 : vector<16x32xf32>
    %703 = arith.mulf %690, %702 : vector<16x32xf32>
    %704 = arith.addf %699, %703 : vector<16x32xf32>
    %705 = math.tanh %704 : vector<16x32xf32>
    %cst_167 = arith.constant 1.000000e+00 : f32
    %706 = vector.broadcast %cst_167 : f32 to vector<16x32xf32>
    %707 = arith.subf %706, %698 : vector<16x32xf32>
    %708 = arith.mulf %707, %705 : vector<16x32xf32>
    %709 = arith.mulf %698, %620 : vector<16x32xf32>
    %710 = arith.addf %708, %709 : vector<16x32xf32>
    %711 = vector.shape_cast %677 : vector<16x1xi1> to vector<16x1xi1>
    %712 = vector.broadcast %711 : vector<16x1xi1> to vector<16x32xi1>
    %713 = arith.select %712, %710, %620 : vector<16x32xi1>, vector<16x32xf32>
    %cst_168 = arith.constant 0.000000e+00 : f32
    %714 = vector.shape_cast %677 : vector<16x1xi1> to vector<16x1xi1>
    %715 = vector.broadcast %714 : vector<16x1xi1> to vector<16x32xi1>
    %716 = vector.broadcast %cst_168 : f32 to vector<16x32xf32>
    %717 = arith.select %715, %710, %716 : vector<16x32xi1>, vector<16x32xf32>
    %718 = arith.index_cast %c7_i32_160 : i32 to index
    %c0_169 = arith.constant 0 : index
    %c0_170 = arith.constant 0 : index
    %719 = vector.load %arg12[%718, %c0_169, %c0_170] : memref<8x16x64xf32, #tpu.memory_space<vmem>>, vector<1x16x32xf32>
    %720 = vector.shape_cast %719 : vector<1x16x32xf32> to vector<16x32xf32>
    %721 = vector.shape_cast %717 : vector<16x32xf32> to vector<1x16x32xf32>
    tpu.vector_store %arg12[%718, %c0_169, %c0_170], %721 {strides = array<i32>} : memref<8x16x64xf32, #tpu.memory_space<vmem>>, vector<1x16x32xf32>,
    %722 = vector.broadcast %675 : i32 to vector<16x1xi32>
    %723 = arith.cmpi sgt, %22, %722 : vector<16x1xi32>
    %724 = arith.index_cast %675 : i32 to index
    %c0_171 = arith.constant 0 : index
    %c0_172 = arith.constant 0 : index
    %725 = vector.load %arg15[%724, %c0_171, %c0_172] : memref<8x16x96xf32, #tpu.memory_space<vmem>>, vector<1x16x96xf32>
    %726 = vector.shape_cast %725 : vector<1x16x96xf32> to vector<16x96xf32>
    %727 = arith.truncf %666 : vector<16x32xf32> to vector<16x32xbf16>
    %cst_173 = arith.constant dense<0.000000e+00> : vector<16x96xf32>
    %728 = tpu.matmul %727, %17, %cst_173 {dimension_numbers = #tpu.dot_dimension_numbers<[1], [0], [0], [1], [0, 0, 1, 1], [], []>} : vector<16x32xbf16>, vector<32x96xbf16>, vector<16x96xf32> -> vector<16x96xf32>
    %729 = vector.extract_strided_slice %726 {offsets = [0, 0], sizes = [16, 32], strides = [1, 1]} : vector<16x96xf32> to vector<16x32xf32>
    %730 = vector.extract_strided_slice %728 {offsets = [0, 0], sizes = [16, 32], strides = [1, 1]} : vector<16x96xf32> to vector<16x32xf32>
    %731 = arith.addf %729, %730 : vector<16x32xf32>
    %732 = arith.negf %731 : vector<16x32xf32>
    %733 = math.exp %732 : vector<16x32xf32>
    %cst_174 = arith.constant 1.000000e+00 : f32
    %734 = vector.broadcast %cst_174 : f32 to vector<16x32xf32>
    %735 = arith.addf %734, %733 : vector<16x32xf32>
    %736 = arith.divf %734, %735 : vector<16x32xf32>
    %737 = vector.extract_strided_slice %726 {offsets = [0, 32], sizes = [16, 32], strides = [1, 1]} : vector<16x96xf32> to vector<16x32xf32>
    %738 = vector.extract_strided_slice %728 {offsets = [0, 32], sizes = [16, 32], strides = [1, 1]} : vector<16x96xf32> to vector<16x32xf32>
    %739 = arith.addf %737, %738 : vector<16x32xf32>
    %740 = arith.negf %739 : vector<16x32xf32>
    %741 = math.exp %740 : vector<16x32xf32>
    %cst_175 = arith.constant 1.000000e+00 : f32
    %742 = vector.broadcast %cst_175 : f32 to vector<16x32xf32>
    %743 = arith.addf %742, %741 : vector<16x32xf32>
    %744 = arith.divf %742, %743 : vector<16x32xf32>
    %745 = vector.extract_strided_slice %726 {offsets = [0, 64], sizes = [16, 32], strides = [1, 1]} : vector<16x96xf32> to vector<16x32xf32>
    %746 = vector.extract_strided_slice %728 {offsets = [0, 64], sizes = [16, 32], strides = [1, 1]} : vector<16x96xf32> to vector<16x32xf32>
    %747 = vector.broadcast %21 : vector<1x32xf32> to vector<16x32xf32>
    %748 = arith.addf %746, %747 : vector<16x32xf32>
    %749 = arith.mulf %736, %748 : vector<16x32xf32>
    %750 = arith.addf %745, %749 : vector<16x32xf32>
    %751 = math.tanh %750 : vector<16x32xf32>
    %cst_176 = arith.constant 1.000000e+00 : f32
    %752 = vector.broadcast %cst_176 : f32 to vector<16x32xf32>
    %753 = arith.subf %752, %744 : vector<16x32xf32>
    %754 = arith.mulf %753, %751 : vector<16x32xf32>
    %755 = arith.mulf %744, %666 : vector<16x32xf32>
    %756 = arith.addf %754, %755 : vector<16x32xf32>
    %757 = vector.shape_cast %723 : vector<16x1xi1> to vector<16x1xi1>
    %758 = vector.broadcast %757 : vector<16x1xi1> to vector<16x32xi1>
    %759 = arith.select %758, %756, %666 : vector<16x32xi1>, vector<16x32xf32>
    %cst_177 = arith.constant 0.000000e+00 : f32
    %760 = vector.shape_cast %723 : vector<16x1xi1> to vector<16x1xi1>
    %761 = vector.broadcast %760 : vector<16x1xi1> to vector<16x32xi1>
    %762 = vector.broadcast %cst_177 : f32 to vector<16x32xf32>
    %763 = arith.select %761, %756, %762 : vector<16x32xi1>, vector<16x32xf32>
    %764 = arith.index_cast %675 : i32 to index
    %c0_178 = arith.constant 0 : index
    %c32_179 = arith.constant 32 : index
    %765 = vector.load %arg12[%764, %c0_178, %c32_179] : memref<8x16x64xf32, #tpu.memory_space<vmem>>, vector<1x16x32xf32>
    %766 = vector.shape_cast %765 : vector<1x16x32xf32> to vector<16x32xf32>
    %767 = vector.shape_cast %763 : vector<16x32xf32> to vector<1x16x32xf32>
    tpu.vector_store %arg12[%764, %c0_178, %c32_179], %767 {strides = array<i32>} : memref<8x16x64xf32, #tpu.memory_space<vmem>>, vector<1x16x32xf32>,
    %c8_i32 = arith.constant 8 : i32
    %768 = tpu.concatenate %713, %759 in 1 : vector<16x32xf32>, vector<16x32xf32> -> vector<16x64xf32>
    %769 = arith.truncf %768 : vector<16x64xf32> to vector<16x64xbf16>
    %c0_180 = arith.constant 0 : index
    %c0_181 = arith.constant 0 : index
    %770 = vector.load %arg10[%c0_180, %c0_181] : memref<64x32xbf16, #tpu.memory_space<vmem>>, vector<64x32xbf16>
    %cst_182 = arith.constant dense<0.000000e+00> : vector<16x32xf32>
    %771 = tpu.matmul %769, %770, %cst_182 {dimension_numbers = #tpu.dot_dimension_numbers<[1], [0], [0], [1], [0, 0, 1, 1], [], []>} : vector<16x64xbf16>, vector<64x32xbf16>, vector<16x32xf32> -> vector<16x32xf32>
    %c0_183 = arith.constant 0 : index
    %c0_184 = arith.constant 0 : index
    %772 = vector.load %arg11[%c0_183, %c0_184] : memref<1x32xf32, #tpu.memory_space<vmem>>, vector<1x32xf32>
    %773 = vector.broadcast %772 : vector<1x32xf32> to vector<16x32xf32>
    %774 = arith.addf %771, %773 : vector<16x32xf32>
    %775 = math.tanh %774 : vector<16x32xf32>
    %c0_185 = arith.constant 0 : index
    %c0_186 = arith.constant 0 : index
    %776 = vector.load %arg13[%c0_185, %c0_186] : memref<16x32xf32, #tpu.memory_space<vmem>>, vector<16x32xf32>
    tpu.vector_store %arg13[%c0_185, %c0_186], %775 {strides = array<i32>} : memref<16x32xf32, #tpu.memory_space<vmem>>, vector<16x32xf32>,
    return
  }
  func.func @transform_0(%arg0: i32) -> (i32, i32, i32) {
    %c0_i32 = arith.constant 0 : i32
    %c0_i32_0 = arith.constant 0 : i32
    %c0_i32_1 = arith.constant 0 : i32
    return %c0_i32, %arg0, %c0_i32_0 : i32, i32, i32
  }
  func.func @transform_1(%arg0: i32) -> (i32, i32) {
    %c0_i32 = arith.constant 0 : i32
    %c0_i32_0 = arith.constant 0 : i32
    return %arg0, %c0_i32 : i32, i32
  }
  func.func @transform_2(%arg0: i32) -> (i32, i32) {
    %c0_i32 = arith.constant 0 : i32
    %c0_i32_0 = arith.constant 0 : i32
    %c0_i32_1 = arith.constant 0 : i32
    return %c0_i32, %c0_i32_0 : i32, i32
  }
  func.func @transform_3(%arg0: i32) -> (i32, i32) {
    %c0_i32 = arith.constant 0 : i32
    %c0_i32_0 = arith.constant 0 : i32
    %c0_i32_1 = arith.constant 0 : i32
    return %c0_i32, %c0_i32_0 : i32, i32
  }
  func.func @transform_4(%arg0: i32) -> (i32, i32) {
    %c0_i32 = arith.constant 0 : i32
    %c0_i32_0 = arith.constant 0 : i32
    %c0_i32_1 = arith.constant 0 : i32
    return %c0_i32, %c0_i32_0 : i32, i32
  }
  func.func @transform_5(%arg0: i32) -> (i32, i32) {
    %c0_i32 = arith.constant 0 : i32
    %c0_i32_0 = arith.constant 0 : i32
    %c0_i32_1 = arith.constant 0 : i32
    return %c0_i32, %c0_i32_0 : i32, i32
  }
  func.func @transform_6(%arg0: i32) -> (i32, i32) {
    %c0_i32 = arith.constant 0 : i32
    %c0_i32_0 = arith.constant 0 : i32
    %c0_i32_1 = arith.constant 0 : i32
    return %c0_i32, %c0_i32_0 : i32, i32
  }
  func.func @transform_7(%arg0: i32) -> (i32, i32) {
    %c0_i32 = arith.constant 0 : i32
    %c0_i32_0 = arith.constant 0 : i32
    %c0_i32_1 = arith.constant 0 : i32
    return %c0_i32, %c0_i32_0 : i32, i32
  }
  func.func @transform_8(%arg0: i32) -> (i32, i32, i32) {
    %c0_i32 = arith.constant 0 : i32
    %c0_i32_0 = arith.constant 0 : i32
    %c0_i32_1 = arith.constant 0 : i32
    %c0_i32_2 = arith.constant 0 : i32
    return %c0_i32, %c0_i32_0, %c0_i32_1 : i32, i32, i32
  }
  func.func @transform_9(%arg0: i32) -> (i32, i32) {
    %c0_i32 = arith.constant 0 : i32
    %c0_i32_0 = arith.constant 0 : i32
    %c0_i32_1 = arith.constant 0 : i32
    return %c0_i32, %c0_i32_0 : i32, i32
  }
  func.func @transform_10(%arg0: i32) -> (i32, i32) {
    %c0_i32 = arith.constant 0 : i32
    %c0_i32_0 = arith.constant 0 : i32
    %c0_i32_1 = arith.constant 0 : i32
    return %c0_i32, %c0_i32_0 : i32, i32
  }
  func.func @transform_11(%arg0: i32) -> (i32, i32, i32) {
    %c0_i32 = arith.constant 0 : i32
    %c0_i32_0 = arith.constant 0 : i32
    %c0_i32_1 = arith.constant 0 : i32
    return %c0_i32, %arg0, %c0_i32_0 : i32, i32, i32
  }
  func.func @transform_12(%arg0: i32) -> (i32, i32) {
    %c0_i32 = arith.constant 0 : i32
    %c0_i32_0 = arith.constant 0 : i32
    return %arg0, %c0_i32 : i32, i32
  }
}

</mosaic_0001>

<bundles_post_ra>
// kernel: encoder_forward.1
= control target key start
LH: loop header
LB: loop body
LE: loop exit
PB: predicated region body
PF: predicated region fallthrough
CT: control target
= control target key end

     0   :  { %18 = vsyncpa [#allocation5], 0  ;;  %v2798_v3 = vmov 0   ;;  %s3998_s0 = inlined_call_operand.vmem [shape: bf16[8,16,32], index: 0, kind: input, shape index: {}]   ;;  %s3999_s1 = inlined_call_operand.vmem [shape: s32[16,1], index: 1, kind: input, shape index: {}]   ;;  %s4000_s2 = inlined_call_operand.vmem [shape: bf16[32,96], index: 2, kind: input, shape index: {}]   ;;  %s4001_s3 = inlined_call_operand.vmem [shape: bf16[32,96], index: 3, kind: input, shape index: {}]   ;;  %s4002_s4 = inlined_call_operand.vmem [shape: f32[1,96], index: 4, kind: input, shape index: {}]   ;;  %s4003_s5 = inlined_call_operand.vmem [shape: f32[1,96], index: 5, kind: input, shape index: {}]   ;;  %s4004_s6 = inlined_call_operand.vmem [shape: bf16[32,96], index: 6, kind: input, shape index: {}]   ;;  %s4005_s7 = inlined_call_operand.vmem [shape: bf16[32,96], index: 7, kind: input, shape index: {}]   ;;  %s4006_s8 = inlined_call_operand.vmem [shape: f32[2,1,32], index: 8, kind: input, shape index: {}]   ;;  %s4007_s9 = inlined_call_operand.vmem [shape: bf16[64,32], index: 9, kind: input, shape index: {}]   ;;  %s4008_s10 = inlined_call_operand.vmem [shape: f32[1,32], index: 10, kind: input, shape index: {}]   ;;  %s4009_s11 = inlined_call_operand.hbm [shape: f32[8,16,64], index: 11, kind: output, shape index: {0}]   ;;  %s4010_s12 = inlined_call_operand.hbm [shape: f32[16,32], index: 12, kind: output, shape index: {1}]  }
   0x1   :  { %v2511_v0 = vld [vmem:[%s4000_s2 + $0x8] sm:$0xff]  ;;  %2529 = vset.pattern.permute.xlu0 %v2798_v3  ;;  %2530 = vset.pattern.permute.xlu1 %v2798_v3  ;;  %v2510_v4 = vld [vmem:[%s4000_s2] sm:$0xff]  ;;  %s2799_s2 = smov 64  }
   0x2   :  { %v2513_v1 = vld [vmem:[%s4001_s3 + $0x8] sm:$0xff]  ;;  %150 = vmatpush.bf16.msra.mxu0 %v2511_v0  ;;  %v2512_v5 = vld [vmem:[%s4001_s3] sm:$0xff]  ;;  %2531 = vset.pattern.permute.xlu2 %v2798_v3 }
   0x3   :  { %v2879_v2 = vld [vmem:[%s4004_s6 + $0x8] sm:$0xff]  ;;  %236 = vmatpush.bf16.msra.mxu1 %v2513_v1  ;;  %v2893_v6 = vld [vmem:[%s4004_s6] sm:$0xff] }
   0x4   :  { %333 = vmatpush.bf16.msra.mxu2 %v2879_v2  ;;  %v2537_v7 = vld [vmem:[%s4006_s8] ss:$0 sm:$0xff] }
   0x5   :  { %v2502_v8 = vld [vmem:[%s3998_s0] sm:$0xff]  ;;  %383 = vrot.lane.b32.xlu0 %v2537_v7, %s2799_s2 }
   0x6   :  { %19 = vsyncpa [#allocation7], 0  ;;  %151 = vmatpush.bf16.msra.mxu0 %v2510_v4  ;;  %vm119_vm0 = vcmask 261120   ;;  %v2910_v9 = vld [vmem:[%s4005_s7 + $0x8] sm:$0xff]  ;;  %v2924_v11 = vld [vmem:[%s4005_s7] sm:$0xff]  ;;  %vm193_vm1 = vcmask 785408  }
   0x7   :  { %237 = vmatpush.bf16.msra.mxu1 %v2512_v5  ;;  %471 = vmatpush.bf16.msra.mxu3 %v2910_v9  ;;  %v2503_v10 = vld [vmem:[%s3998_s0 + $0x8] sm:$0xff]  ;;  %v2504_v12 = vld [vmem:[%s3998_s0 + $0x10] sm:$0xff]  ;;  %v2538_v13 = vld [vmem:[%s4006_s8 + $0x1] ss:$0 sm:$0xff]  ;;  %s2800_s24 = smov 96   ;;  %s2328_s25 = sshll.u32 %s4009_s11, 4  ;;  %s2329_s25 = int_to_ptr.hbm [resolvable:$true] %s2328_s25 }
   0x8   :  { %334 = vmatpush.bf16.msra.mxu2 %v2893_v6  ;;  %v2505_v14 = vld [vmem:[%s3998_s0 + $0x18] sm:$0xff]  ;;  %v2506_v15 = vld [vmem:[%s3998_s0 + $0x20] sm:$0xff]  ;;  %v2507_v16 = vld [vmem:[%s3998_s0 + $0x28] sm:$0xff]  ;;  %s2802_s26 = smov 128   ;;  %s2803_s27 = smov 8  }
   0x9   :  { %2398 = vmatmul.msk.bf16.vlgmr.msra.gmra.mxu0 %vm119_vm0, %v2502_v8  ;;  %v2508_v17 = vld [vmem:[%s3998_s0 + $0x30] sm:$0xff]  ;;  %v2509_v18 = vld [vmem:[%s3998_s0 + $0x38] sm:$0xff]  ;;  %v2970_v19 = vld [vmem:[%s4002_s4] ss:$0 sm:$0xff]  ;;  %s2804_s11 = smov [#allocation6]   ;;  %s2341_s14 = sshll.u32 %s4010_s12, 4  ;;  %s2342_s14 = int_to_ptr.hbm [resolvable:$true] %s2341_s14 }
   0xa   :  { %2414 = vmatmul.msk.bf16.vlgmr.msra.gmra.mxu1 %vm119_vm0, %v2502_v8  ;;  %v2975_v20 = vld [vmem:[%s4003_s5] ss:$0 sm:$0xff]  ;;  %s2339_s30 = sshll.u32 %s2804_s11, 4  ;;  %s2340_s30 = int_to_ptr.vmem [resolvable:$true] %s2339_s30 }
   0xb   :  { %335 = vmatmul.bf16.vlgmr.msra.gmra.mxu2 %v2798_v3  ;;  %472 = vmatpush.bf16.msra.mxu3 %v2924_v11 }
   0xc   :  { %598 = vmatpush.bf16.msrb.mxu2 %v2879_v2 }
   0xd   :  { %521 = vrot.lane.b32.xlu0 %v2538_v13, %s2799_s2 }
   0xe   :  { %473 = vmatmul.bf16.vlgmr.msra.gmra.mxu3 %v2798_v3 }
   0xf   :  { %729 = vmatpush.bf16.msrb.mxu3 %v2910_v9 }
  0x10   :  { %599 = vmatpush.bf16.msrb.mxu2 %v2893_v6 }
  0x13   :  { %730 = vmatpush.bf16.msrb.mxu3 %v2924_v11 }
  0x14   :  { %852 = vmatpush.bf16.msra.mxu2 %v2879_v2 }
  0x17   :  { %983 = vmatpush.bf16.msra.mxu3 %v2910_v9 }
  0x18   :  { %853 = vmatpush.bf16.msra.mxu2 %v2893_v6 }
  0x19   :  { %2399 = vmatmul.msk.bf16.gmra.mxu0 %vm119_vm0, %v2503_v10 }
  0x1a   :  { %2415 = vmatmul.msk.bf16.gmra.mxu1 %vm119_vm0, %v2503_v10 }
  0x1b   :  { %984 = vmatpush.bf16.msra.mxu3 %v2924_v11 }
  0x29   :  { %2400 = vmatmul.msk.bf16.gmra.mxu0 %vm119_vm0, %v2504_v12 }
  0x2a   :  { %2416 = vmatmul.msk.bf16.gmra.mxu1 %vm119_vm0, %v2504_v12 }
  0x39   :  { %2401 = vmatmul.msk.bf16.gmra.mxu0 %vm119_vm0, %v2505_v14 }
  0x3a   :  { %2417 = vmatmul.msk.bf16.gmra.mxu1 %vm119_vm0, %v2505_v14 }
  0x49   :  { %2402 = vmatmul.msk.bf16.gmra.mxu0 %vm119_vm0, %v2506_v15 }
  0x4a   :  { %2418 = vmatmul.msk.bf16.gmra.mxu1 %vm119_vm0, %v2506_v15 }
  0x59   :  { %2403 = vmatmul.msk.bf16.gmra.mxu0 %vm119_vm0, %v2507_v16 }
  0x5a   :  { %2419 = vmatmul.msk.bf16.gmra.mxu1 %vm119_vm0, %v2507_v16 }
  0x69   :  { %2404 = vmatmul.msk.bf16.gmra.mxu0 %vm119_vm0, %v2508_v17 }
  0x6a   :  { %2420 = vmatmul.msk.bf16.gmra.mxu1 %vm119_vm0, %v2508_v17 }
  0x77   :  { %v2981_v25 = vpop.permute.xlu0 %383 }
  0x79   :  { %2405 = vmatmul.msk.bf16.gmra.mxu0 %vm119_vm0, %v2509_v18 }
  0x7a   :  { %2421 = vmatmul.msk.bf16.gmra.mxu1 %vm119_vm0, %v2509_v18 }
  0x7f   :  { %v2995_v38 = vpop.permute.xlu0 %521 }
  0x86   :  { %v153_v21 = vpop.f32.mrf.mxu0 }
  0x87   :  { %v239_v22 = vpop.f32.mrf.mxu1  ;;  %v154_v23 = vadd.f32 %v2970_v19, %v153_v21 }
  0x88   :  { %v240_v24 = vadd.f32 %v2975_v20, %v239_v22 }
  0x89   :  { %194 = vst.msk [vmem:[#allocation2] sm:$0xff] %vm193_vm1, %v154_v23 }
  0x8a   :  { %279 = vst.msk [vmem:[#allocation3] sm:$0xff] %vm193_vm1, %v240_v24 }
  0x8e   :  { %v336_v26 = vpop.f32.mrf.mxu2  ;;  %v155_v27 = vpop.f32.mrf.mxu0 }
  0x8f   :  { %v241_v28 = vpop.f32.mrf.mxu1  ;;  %v386_v29 = vadd.f32 %v2981_v25, %v336_v26  ;;  %v156_v30 = vadd.f32 %v2970_v19, %v155_v27 }
  0x90   :  { %v242_v31 = vadd.f32 %v2975_v20, %v241_v28  ;;  %v3017_v53 = vld [vmem:[#allocation2] sm:$0xff] }
  0x91   :  { %390 = vrot.lane.b32.xlu1 %v386_v29, %s2799_s2  ;;  %195 = vst.msk [vmem:[#allocation2 + $0x8] sm:$0xff] %vm193_vm1, %v156_v30  ;;  %v2997_v39 = vpop.f32.mrf.mxu3  ;;  %v341_v56 = vadd.f32 %v336_v26, %v3017_v53 }
  0x92   :  { %280 = vst.msk [vmem:[#allocation3 + $0x8] sm:$0xff] %vm193_vm1, %v242_v31  ;;  %v524_v40 = vadd.f32 %v2995_v38, %v2997_v39 }
  0x93   :  { %v2431_v57 = vmul.f32 -1.442695, %v341_v56 }
  0x94   :  { %528 = vrot.lane.b32.xlu2 %v524_v40, %s2799_s2 }
  0x95   :  { %2542 = vpow2.f32 %v2431_v57 }
  0x96   :  { %v338_v32 = vpop.f32.mrf.mxu2 }
  0x97   :  { %v387_v33 = vadd.f32 %v2981_v25, %v338_v32  ;;  %v244_v34 = vpop.f32.mrf.mxu1 }
  0x98   :  { %v245_v35 = vadd.f32 %v2975_v20, %v244_v34  ;;  %v3022_v58 = vld [vmem:[#allocation2 + $0x8] sm:$0xff] }
  0x99   :  { %392 = vrot.lane.b32.xlu1 %v387_v33, %s2799_s2  ;;  %v3004_v43 = vpop.f32.mrf.mxu3  ;;  %v342_v61 = vadd.f32 %v338_v32, %v3022_v58 }
  0x9a   :  { %281 = vst.msk [vmem:[#allocation3 + $0x10] sm:$0xff] %vm193_vm1, %v245_v35  ;;  %v525_v44 = vadd.f32 %v2995_v38, %v3004_v43 }
  0x9b   :  { %v2432_v62 = vmul.f32 -1.442695, %v342_v61  ;;  %v2543_v0 = vpop.eup %2542 }
  0x9c   :  { %530 = vrot.lane.b32.xlu2 %v525_v44, %s2799_s2  ;;  %v349_v4 = vadd.f32 1.0, %v2543_v0 }
  0x9d   :  { %2544 = vpow2.f32 %v2432_v62 }
  0x9e   :  { %2546 = vrcp.f32 %v349_v4  ;;  %v362_v27 = vand.u32 2147483648, %v349_v4  ;;  %vm356_vm3 = vweird.f32 %v349_v4  ;;  %v360_v28 = vand.u32 2147483647, %v349_v4 }
  0x9f   :  { %v246_v36 = vpop.f32.mrf.mxu1 }
  0xa0   :  { %v247_v37 = vadd.f32 %v2975_v20, %v246_v36  ;;  %v363_v33 = vor.u32 1.1754944e-38, %v362_v27  ;;  %vm361_vm5 = vcmp.eq.f32.partialorder %v360_v28, 8.507059e+37  ;;  %v3068_v27 = vld [vmem:[%s3999_s1 + $0x8] sm:$0xff] }
  0xa2   :  { %282 = vst.msk [vmem:[#allocation3 + $0x18] sm:$0xff] %vm193_vm1, %v247_v37 }
  0xa3   :  { %v2545_v7 = vpop.eup %2544 }
  0xa4   :  { %v350_v10 = vadd.f32 1.0, %v2545_v7  ;;  %v2547_v12 = vpop.eup %2546 }
  0xa5   :  { %v352_v15 = vmul.f32 %v2547_v12, %v349_v4  ;;  %vm357_vm2 = vweird.f32 %v2547_v12 }
  0xa6   :  { %2548 = vrcp.f32 %v350_v10  ;;  %vm358_vm4 = vmor %vm356_vm3, %vm357_vm2  ;;  %vm371_vm7 = vweird.f32 %v350_v10  ;;  %v375_v44 = vand.u32 2147483647, %v350_v10 }
  0xa7   :  { %v249_v41 = vpop.f32.mrf.mxu1  ;;  %v353_v16 = vsub.f32 1.0, %v352_v15 }
  0xa8   :  { %v250_v42 = vadd.f32 %v2975_v20, %v249_v41  ;;  %vm376_vm9 = vcmp.eq.f32.partialorder %v375_v44, 8.507059e+37 }
  0xa9   :  { %v354_v22 = vmul.f32 %v2547_v12, %v353_v16 }
  0xaa   :  { %283 = vst.msk [vmem:[#allocation3 + $0x20] sm:$0xff] %vm193_vm1, %v250_v42 }
  0xab   :  { %v355_v24 = vadd.f32 %v2547_v12, %v354_v22 }
  0xac   :  { %v2549_v17 = vpop.eup %2548 }
  0xad   :  { %v367_v23 = vmul.f32 %v2549_v17, %v350_v10  ;;  %v359_v31 = vsel %vm358_vm4, %v2547_v12, %v355_v24  ;;  %vm372_vm6 = vweird.f32 %v2549_v17  ;;  %v3061_v24 = vld [vmem:[%s3999_s1] sm:$0xff] }
  0xae   :  { %v3041_v37 = vsel %vm361_vm5, %v363_v33, %v359_v31  ;;  %vm373_vm8 = vmor %vm371_vm7, %vm372_vm6  ;;  %vm308_vm4 = vcmp.gt.s32.totalorder %v3061_v24, 0  ;;  %vm449_vm5 = vcmp.gt.s32.totalorder %v3068_v27, 7  ;;  %vm309_vm6 = vcmp.gt.s32.totalorder %v3068_v27, 0 }
  0xaf   :  { %v251_v45 = vpop.f32.mrf.mxu1  ;;  %v368_v26 = vsub.f32 1.0, %v367_v23  ;;  %v565_v28 = vsel %vm449_vm5, 1, %v2798_v3  ;;  %vm448_vm7 = vcmp.gt.s32.totalorder %v3061_v24, 7 }
  0xb0   :  { %v252_v46 = vadd.f32 %v2975_v20, %v251_v45 }
  0xb1   :  { %v369_v32 = vmul.f32 %v2549_v17, %v368_v26  ;;  %v426_v26 = vsel %vm308_vm4, 1, %v2798_v3 }
  0xb2   :  { %284 = vst.msk [vmem:[#allocation3 + $0x28] sm:$0xff] %vm193_vm1, %v252_v46 }
  0xb3   :  { %v370_v41 = vadd.f32 %v2549_v17, %v369_v32 }
  0xb5   :  { %v374_v45 = vsel %vm373_vm8, %v2549_v17, %v370_v41  ;;  %vm4018_vm8 = vcmask 523520  }
  0xb7   :  { %v254_v47 = vpop.f32.mrf.mxu1 }
  0xb8   :  { %v255_v48 = vadd.f32 %v2975_v20, %v254_v47 }
  0xba   :  { %285 = vst.msk [vmem:[#allocation3 + $0x30] sm:$0xff] %vm193_vm1, %v255_v48 }
  0xbf   :  { %v256_v49 = vpop.f32.mrf.mxu1 }
  0xc0   :  { %v257_v50 = vadd.f32 %v2975_v20, %v256_v49 }
  0xc2   :  { %286 = vst.msk [vmem:[#allocation3 + $0x38] sm:$0xff] %vm193_vm1, %v257_v50 }
  0xc7   :  { %v259_v51 = vpop.f32.mrf.mxu1 }
  0xc8   :  { %v260_v52 = vadd.f32 %v2975_v20, %v259_v51 }
  0xca   :  { %287 = vst.msk [vmem:[#allocation3 + $0x40] sm:$0xff] %vm193_vm1, %v260_v52 }
  0xcf   :  { %v261_v54 = vpop.f32.mrf.mxu1 }
  0xd0   :  { %v262_v55 = vadd.f32 %v2975_v20, %v261_v54 }
  0xd2   :  { %288 = vst.msk [vmem:[#allocation3 + $0x48] sm:$0xff] %vm193_vm1, %v262_v55 }
  0xd7   :  { %v264_v59 = vpop.f32.mrf.mxu1 }
  0xd8   :  { %v265_v60 = vadd.f32 %v2975_v20, %v264_v59 }
  0xda   :  { %289 = vst.msk [vmem:[#allocation3 + $0x50] sm:$0xff] %vm193_vm1, %v265_v60 }
  0xdf   :  { %v266_v63 = vpop.f32.mrf.mxu1 }
  0xe0   :  { %v267_v1 = vadd.f32 %v2975_v20, %v266_v63 }
  0xe2   :  { %290 = vst.msk [vmem:[#allocation3 + $0x58] sm:$0xff] %vm193_vm1, %v267_v1 }
  0xe7   :  { %v269_v5 = vpop.f32.mrf.mxu1 }
  0xe8   :  { %v270_v8 = vadd.f32 %v2975_v20, %v269_v5 }
  0xea   :  { %291 = vst.msk [vmem:[#allocation3 + $0x60] sm:$0xff] %vm193_vm1, %v270_v8 }
  0xee   :  { %v529_v63 = vpop.permute.xlu2 %528 }
  0xef   :  { %v271_v13 = vpop.f32.mrf.mxu1 }
  0xf0   :  { %v272_v14 = vadd.f32 %v2975_v20, %v271_v13 }
  0xf2   :  { %292 = vst.msk [vmem:[#allocation3 + $0x68] sm:$0xff] %vm193_vm1, %v272_v14 }
  0xf6   :  { %v531_v17 = vpop.permute.xlu2 %530 }
  0xf7   :  { %v274_v18 = vpop.f32.mrf.mxu1 }
  0xf8   :  { %v275_v21 = vadd.f32 %v2975_v20, %v274_v18 }
  0xfa   :  { %293 = vst.msk [vmem:[#allocation3 + $0x70] sm:$0xff] %vm193_vm1, %v275_v21 }
  0xff   :  { %v276_v29 = vpop.f32.mrf.mxu1 }
 0x100   :  { %v277_v30 = vadd.f32 %v2975_v20, %v276_v29  ;;  %v377_v20 = vand.u32 2147483648, %v350_v10 }
 0x101   :  { %v3036_v34 = vld [vmem:[#allocation3 + $0x70] sm:$0xff] }
 0x102   :  { %294 = vst.msk [vmem:[#allocation3 + $0x78] sm:$0xff] %vm193_vm1, %v277_v30  ;;  %v479_v35 = vadd.f32 %v2997_v39, %v3036_v34  ;;  %v378_v46 = vor.u32 1.1754944e-38, %v377_v20 }
 0x103   :  { %v391_v36 = vpop.permute.xlu1 %390 }
 0x104   :  { %v396_v40 = vmul.f32 %v391_v36, %v3041_v37  ;;  %v2441_v42 = vmul.f32 -1.442695, %v479_v35  ;;  %v3049_v49 = vsel %vm376_vm9, %v378_v46, %v374_v45 }
 0x106   :  { %400 = vrot.lane.b32.xlu0 %v396_v40, %s2799_s2  ;;  %2550 = vpow2.f32 %v2441_v42  ;;  %v427_v40 = vsel %vm309_vm6, 1, %v2798_v3 }
 0x109   :  { %v3045_v47 = vld [vmem:[#allocation3 + $0x78] sm:$0xff] }
 0x10a   :  { %v480_v39 = vadd.f32 %v3004_v43, %v3045_v47 }
 0x10b   :  { %v393_v48 = vpop.permute.xlu1 %392 }
 0x10c   :  { %v2551_v50 = vpop.eup %2550  ;;  %v397_v51 = vmul.f32 %v393_v48, %v3049_v49  ;;  %v2442_v52 = vmul.f32 -1.442695, %v480_v39 }
 0x10d   :  { %v487_v54 = vadd.f32 1.0, %v2551_v50 }
 0x10e   :  { %402 = vrot.lane.b32.xlu1 %v397_v51, %s2799_s2  ;;  %2552 = vpow2.f32 %v2442_v52  ;;  %v410_v52 = vsub.f32 1.0, %v3041_v37 }
 0x10f   :  { %2554 = vrcp.f32 %v487_v54  ;;  %v500_v61 = vand.u32 2147483648, %v487_v54  ;;  %v498_v62 = vand.u32 2147483647, %v487_v54  ;;  %vm494_vm11 = vweird.f32 %v487_v54 }
 0x111   :  { %v501_v4 = vor.u32 1.1754944e-38, %v500_v61  ;;  %vm499_vm13 = vcmp.eq.f32.partialorder %v498_v62, 8.507059e+37 }
 0x114   :  { %v2553_v55 = vpop.eup %2552 }
 0x115   :  { %v2555_v56 = vpop.eup %2554  ;;  %v488_v57 = vadd.f32 1.0, %v2553_v55 }
 0x116   :  { %v490_v59 = vmul.f32 %v2555_v56, %v487_v54  ;;  %vm495_vm10 = vweird.f32 %v2555_v56 }
 0x117   :  { %2556 = vrcp.f32 %v488_v57  ;;  %vm496_vm12 = vmor %vm494_vm11, %vm495_vm10  ;;  %v515_v13 = vand.u32 2147483648, %v488_v57  ;;  %v513_v15 = vand.u32 2147483647, %v488_v57  ;;  %vm509_vm15 = vweird.f32 %v488_v57 }
 0x118   :  { %v491_v60 = vsub.f32 1.0, %v490_v59  ;;  %v422_v59 = vmul.f32 0.0, %v3041_v37 }
 0x119   :  { %v516_v18 = vor.u32 1.1754944e-38, %v515_v13  ;;  %vm514_vm3 = vcmp.eq.f32.partialorder %v513_v15, 8.507059e+37 }
 0x11a   :  { %v492_v43 = vmul.f32 %v2555_v56, %v491_v60  ;;  %v423_v60 = vmul.f32 0.0, %v3049_v49 }
 0x11c   :  { %v493_v0 = vadd.f32 %v2555_v56, %v492_v43 }
 0x11d   :  { %v2557_v1 = vpop.eup %2556 }
 0x11e   :  { %v497_v5 = vsel %vm496_vm12, %v2555_v56, %v493_v0  ;;  %v505_v7 = vmul.f32 %v2557_v1, %v488_v57  ;;  %vm510_vm14 = vweird.f32 %v2557_v1 }
 0x11f   :  { %v502_v8 = vsel %vm499_vm13, %v501_v4, %v497_v5  ;;  %vm511_vm2 = vmor %vm509_vm15, %vm510_vm14 }
 0x120   :  { %v534_v10 = vmul.f32 %v529_v63, %v502_v8  ;;  %v506_v12 = vsub.f32 1.0, %v505_v7  ;;  %v548_v46 = vsub.f32 1.0, %v502_v8  ;;  %v560_v48 = vmul.f32 0.0, %v502_v8 }
 0x122   :  { %538 = vrot.lane.b32.xlu2 %v534_v10, %s2799_s2  ;;  %v507_v14 = vmul.f32 %v2557_v1, %v506_v12 }
 0x124   :  { %v508_v16 = vadd.f32 %v2557_v1, %v507_v14  ;;  %v158_v14 = vpop.f32.mrf.mxu0 }
 0x125   :  { %v159_v15 = vadd.f32 %v2970_v19, %v158_v14 }
 0x126   :  { %v512_v21 = vsel %vm511_vm2, %v2557_v1, %v508_v16 }
 0x127   :  { %v3054_v22 = vsel %vm514_vm3, %v516_v18, %v512_v21  ;;  %196 = vst.msk [vmem:[#allocation2 + $0x10] sm:$0xff] %vm193_vm1, %v159_v15 }
 0x128   :  { %v535_v23 = vmul.f32 %v531_v17, %v3054_v22  ;;  %v561_v7 = vmul.f32 0.0, %v3054_v22 }
 0x12a   :  { %540 = vrot.lane.b32.xlu0 %v535_v23, %s2799_s2 }
 0x12c   :  { %v160_v16 = vpop.f32.mrf.mxu0 }
 0x12d   :  { %v161_v17 = vadd.f32 %v2970_v19, %v160_v16 }
 0x12f   :  { %197 = vst.msk [vmem:[#allocation2 + $0x18] sm:$0xff] %vm193_vm1, %v161_v17 }
 0x132   :  { %429 = vperm.xlu0 %2529, %v426_v26  }
 0x13a   :  { %570 = vperm.xlu0 %2529, %v565_v28  }
 0x178   :  { %v401_v29 = vpop.permute.xlu0 %400 }
 0x179   :  { %v406_v30 = vadd.f32 %v401_v29, %v3017_v53 }
 0x17b   :  { %2558 = vtanh.f32 %v406_v30 }
 0x17c   :  { %v539_v35 = vpop.permute.xlu2 %538 }
 0x17d   :  { %v544_v36 = vadd.f32 %v539_v35, %v3036_v34 }
 0x180   :  { %v403_v31 = vpop.permute.xlu1 %402 }
 0x181   :  { %v2559_v32 = vpop.eup %2558  ;;  %v407_v33 = vadd.f32 %v403_v31, %v3022_v58  ;;  %v564_v58 = vsel %vm448_vm7, 1, %v2798_v3 }
 0x182   :  { %414 = vrot.lane.b32.xlu1 %v2559_v32, %s2800_s24 }
 0x183   :  { %2560 = vtanh.f32 %v407_v33  ;;  %v3146_v33 = vld [vmem:[#allocation3 + $0x60] sm:$0xff] }
 0x184   :  { %2562 = vtanh.f32 %v544_v36 }
 0x189   :  { %v2561_v41 = vpop.eup %2560 }
 0x18a   :  { %416 = vrot.lane.b32.xlu2 %v2561_v41, %s2800_s24  ;;  %432 = vperm.xlu1 %2530, %v427_v40   ;;  %v2563_v53 = vpop.eup %2562  ;;  %v3149_v41 = vld [vmem:[#allocation2 + $0x10] sm:$0xff] }
 0x192   :  { %552 = vrot.lane.b32.xlu2 %v2563_v53, %s2800_s24 }
 0x19a   :  { %567 = vperm.xlu2 %2531, %v564_v58  }
 0x19c   :  { %v541_v42 = vpop.permute.xlu0 %540 }
 0x19d   :  { %v545_v20 = vadd.f32 %v541_v42, %v3045_v47  ;;  %v411_v47 = vsub.f32 1.0, %v3049_v49  ;;  %v549_v49 = vsub.f32 1.0, %v3054_v22 }
 0x19f   :  { %2564 = vtanh.f32 %v545_v20  ;;  %v3152_v20 = vld [vmem:[#allocation2 + $0x18] sm:$0xff] }
 0x1a4   :  { %v3097_v43 = vpop.permute.xlu0 %429 }
 0x1a5   :  { %v2565_v34 = vpop.eup %2564  ;;  %vm4012_vm10 = vcmp.eq.s32.totalorder %v3097_v43, 1 }
 0x1a6   :  { %554 = vrot.lane.b32.xlu1 %v2565_v34, %s2800_s24 }
 0x1ac   :  { %v3115_v5 = vpop.permute.xlu0 %570 }
 0x1ad   :  { %vm4014_vm12 = vcmp.eq.s32.totalorder %v3115_v5, 1 }
 0x1e4   :  { %v417_v44 = vpop.permute.xlu2 %416 }
 0x1e5   :  { %v421_v57 = vmul.f32 %v417_v44, %v411_v47 }
 0x1e7   :  { %v425_v62 = vadd.f32 %v423_v60, %v421_v57 }
 0x1ec   :  { %v553_v45 = vpop.permute.xlu2 %552 }
 0x1ed   :  { %v558_v39 = vmul.f32 %v553_v45, %v548_v46 }
 0x1ef   :  { %v562_v50 = vadd.f32 %v560_v48, %v558_v39  ;;  %v3155_v48 = vld [vmem:[#allocation3 + $0x68] sm:$0xff] }
 0x1f4   :  { %v3084_v51 = vpop.permute.xlu2 %567  ;;  %v415_v54 = vpop.permute.xlu1 %414 }
 0x1f5   :  { %vm4013_vm9 = vcmp.eq.s32.totalorder %v3084_v51, 1  ;;  %v420_v56 = vmul.f32 %v415_v54, %v410_v52 }
 0x1f6   :  { %v3091_v55 = vsel %vm4013_vm9, %v562_v50, 0.0 }
 0x1f7   :  { %578 = vst.msk [vmem:[#allocation4 + $0x70] sm:$0xff] %vm4018_vm8, %v3091_v55  ;;  %v424_v61 = vadd.f32 %v422_v59, %v420_v56 }
 0x1f9   :  { %v3105_v0 = vsel %vm4012_vm10, %v424_v61, 0.0 }
 0x1fc   :  { %v3100_v63 = vpop.permute.xlu1 %432 }
 0x1fd   :  { %vm4011_vm11 = vcmp.eq.s32.totalorder %v3100_v63, 1 }
 0x1fe   :  { %v3109_v1 = vsel %vm4011_vm11, %v425_v62, 0.0 }
 0x1ff   :  { %v585_v37 = vpack.c.bf16 %v3109_v1, %v3105_v0 }
 0x201   :  { %587 = vrot.lane.b32.xlu1 %v585_v37, %s2800_s24 }
 0x218   :  { %v555_v4 = vpop.permute.xlu1 %554 }
 0x219   :  { %v559_v8 = vmul.f32 %v555_v4, %v549_v49 }
 0x21b   :  { %v563_v10 = vadd.f32 %v561_v7, %v559_v8 }
 0x21d   :  { %v3121_v12 = vsel %vm4014_vm12, %v563_v10, 0.0 }
 0x21e   :  { %v716_v13 = vpack.c.bf16 %v3121_v12, %v3091_v55  ;;  %579 = vst.msk [vmem:[#allocation4 + $0x78] sm:$0xff] %vm4018_vm8, %v3121_v12 }
 0x220   :  { %718 = vrot.lane.b32.xlu2 %v716_v13, %s2800_s24 }
 0x273   :  { %v588_v18 = vpop.permute.xlu1 %587 }
 0x274   :  { %2443 = vmatmul.msk.bf16.vlgmr.msrb.gmra.mxu2 %vm119_vm0, %v588_v18 }
 0x275   :  { %1106 = vmatpush.bf16.msrb.mxu2 %v2879_v2 }
 0x279   :  { %1107 = vmatpush.bf16.msrb.mxu2 %v2893_v6 }
 0x27a   :  { %v719_v21 = vpop.permute.xlu2 %718 }
 0x27b   :  { %2446 = vmatmul.msk.bf16.vlgmr.msrb.gmra.mxu3 %vm119_vm0, %v719_v21 }
 0x27c   :  { %1237 = vmatpush.bf16.msrb.mxu3 %v2910_v9 }
 0x280   :  { %1238 = vmatpush.bf16.msrb.mxu3 %v2924_v11 }
 0x2f7   :  { %v601_v22 = vpop.f32.mrf.mxu2 }
 0x2f8   :  { %v646_v23 = vadd.f32 %v601_v22, %v2981_v25  ;;  %v606_v53 = vadd.f32 %v601_v22, %v3149_v41 }
 0x2fa   :  { %650 = vrot.lane.b32.xlu0 %v646_v23, %s2799_s2  ;;  %v2444_v42 = vmul.f32 -1.442695, %v606_v53 }
 0x2fe   :  { %v732_v26 = vpop.f32.mrf.mxu3 }
 0x2ff   :  { %v603_v28 = vpop.f32.mrf.mxu2  ;;  %v777_v29 = vadd.f32 %v732_v26, %v2995_v38  ;;  %v737_v35 = vadd.f32 %v732_v26, %v3146_v33 }
 0x300   :  { %v647_v30 = vadd.f32 %v603_v28, %v2981_v25  ;;  %v607_v34 = vadd.f32 %v603_v28, %v3152_v20 }
 0x301   :  { %781 = vrot.lane.b32.xlu2 %v777_v29, %s2799_s2  ;;  %v2447_v36 = vmul.f32 -1.442695, %v737_v35 }
 0x302   :  { %652 = vrot.lane.b32.xlu1 %v647_v30, %s2799_s2  ;;  %v2445_v45 = vmul.f32 -1.442695, %v607_v34 }
 0x303   :  { %2566 = vpow2.f32 %v2447_v36 }
 0x306   :  { %v734_v31 = vpop.f32.mrf.mxu3 }
 0x307   :  { %v778_v32 = vadd.f32 %v734_v31, %v2995_v38  ;;  %v738_v50 = vadd.f32 %v734_v31, %v3155_v48 }
 0x309   :  { %783 = vrot.lane.b32.xlu0 %v778_v32, %s2799_s2  ;;  %v2567_v40 = vpop.eup %2566  ;;  %v2448_v47 = vmul.f32 -1.442695, %v738_v50 }
 0x30a   :  { %v745_v58 = vadd.f32 1.0, %v2567_v40 }
 0x30c   :  { %2568 = vrcp.f32 %v745_v58  ;;  %v758_v61 = vand.u32 2147483648, %v745_v58  ;;  %vm752_vm14 = vweird.f32 %v745_v58  ;;  %v756_v37 = vand.u32 2147483647, %v745_v58 }
 0x30d   :  { %2570 = vpow2.f32 %v2444_v42 }
 0x30e   :  { %2572 = vpow2.f32 %v2445_v45  ;;  %v759_v7 = vor.u32 1.1754944e-38, %v758_v61  ;;  %vm757_vm2 = vcmp.eq.f32.partialorder %v756_v37, 8.507059e+37 }
 0x312   :  { %v2569_v44 = vpop.eup %2568 }
 0x313   :  { %v748_v46 = vmul.f32 %v2569_v44, %v745_v58  ;;  %v2571_v39 = vpop.eup %2570  ;;  %vm753_vm13 = vweird.f32 %v2569_v44 }
 0x314   :  { %v614_v52 = vadd.f32 1.0, %v2571_v39  ;;  %v2573_v57 = vpop.eup %2572  ;;  %vm754_vm15 = vmor %vm752_vm14, %vm753_vm13 }
 0x315   :  { %v749_v54 = vsub.f32 1.0, %v748_v46  ;;  %v615_v59 = vadd.f32 1.0, %v2573_v57 }
 0x316   :  { %2574 = vrcp.f32 %v614_v52  ;;  %v627_v28 = vand.u32 2147483648, %v614_v52  ;;  %vm621_vm4 = vweird.f32 %v614_v52  ;;  %v625_v29 = vand.u32 2147483647, %v614_v52 }
 0x317   :  { %v750_v56 = vmul.f32 %v2569_v44, %v749_v54  ;;  %2576 = vpow2.f32 %v2448_v47  ;;  %v642_v34 = vand.u32 2147483648, %v615_v59  ;;  %vm636_vm13 = vweird.f32 %v615_v59 }
 0x318   :  { %2578 = vrcp.f32 %v615_v59  ;;  %v628_v35 = vor.u32 1.1754944e-38, %v627_v28  ;;  %vm626_vm6 = vcmp.eq.f32.partialorder %v625_v29, 8.507059e+37 }
 0x319   :  { %v751_v60 = vadd.f32 %v2569_v44, %v750_v56  ;;  %v643_v39 = vor.u32 1.1754944e-38, %v642_v34 }
 0x31b   :  { %v755_v4 = vsel %vm754_vm15, %v2569_v44, %v751_v60  ;;  %v640_v44 = vand.u32 2147483647, %v615_v59 }
 0x31c   :  { %v2575_v62 = vpop.eup %2574  ;;  %v3158_v14 = vsel %vm757_vm2, %v759_v7, %v755_v4 }
 0x31d   :  { %v2577_v49 = vpop.eup %2576  ;;  %v617_v8 = vmul.f32 %v2575_v62, %v614_v52  ;;  %vm622_vm3 = vweird.f32 %v2575_v62  ;;  %vm641_vm15 = vcmp.eq.f32.partialorder %v640_v44, 8.507059e+37 }
 0x31e   :  { %v746_v10 = vadd.f32 1.0, %v2577_v49  ;;  %v2579_v17 = vpop.eup %2578  ;;  %vm623_vm5 = vmor %vm621_vm4, %vm622_vm3 }
 0x31f   :  { %v618_v16 = vsub.f32 1.0, %v617_v8  ;;  %v632_v21 = vmul.f32 %v2579_v17, %v615_v59  ;;  %vm637_vm7 = vweird.f32 %v2579_v17 }
 0x320   :  { %2580 = vrcp.f32 %v746_v10  ;;  %vm638_vm14 = vmor %vm636_vm13, %vm637_vm7  ;;  %v773_v56 = vand.u32 2147483648, %v746_v10  ;;  %vm767_vm3 = vweird.f32 %v746_v10  ;;  %v771_v57 = vand.u32 2147483647, %v746_v10 }
 0x321   :  { %v619_v18 = vmul.f32 %v2575_v62, %v618_v16  ;;  %v633_v26 = vsub.f32 1.0, %v632_v21  ;;  %vm712_vm7 = vcmp.gt.s32.totalorder %v3068_v27, 6  ;;  %vm581_vm13 = vcmp.gt.s32.totalorder %v3068_v27, 1 }
 0x322   :  { %v774_v61 = vor.u32 1.1754944e-38, %v773_v56  ;;  %v687_v21 = vsel %vm581_vm13, 1, %v2798_v3 }
 0x323   :  { %v620_v23 = vadd.f32 %v2575_v62, %v619_v18  ;;  %v634_v32 = vmul.f32 %v2579_v17, %v633_v26  ;;  %v818_v18 = vsel %vm712_vm7, 1, %v2798_v3 }
 0x325   :  { %v624_v31 = vsel %vm623_vm5, %v2575_v62, %v620_v23  ;;  %v635_v42 = vadd.f32 %v2579_v17, %v634_v32  ;;  %vm772_vm5 = vcmp.eq.f32.partialorder %v771_v57, 8.507059e+37 }
 0x326   :  { %v2581_v22 = vpop.eup %2580  ;;  %v3162_v36 = vsel %vm626_vm6, %v628_v35, %v624_v31  ;;  %vm580_vm6 = vcmp.gt.s32.totalorder %v3061_v24, 1 }
 0x327   :  { %v763_v30 = vmul.f32 %v2581_v22, %v746_v10  ;;  %v639_v46 = vsel %vm638_vm14, %v2579_v17, %v635_v42  ;;  %vm768_vm2 = vweird.f32 %v2581_v22  ;;  %v686_v49 = vsel %vm580_vm6, 1, %v2798_v3 }
 0x328   :  { %v644_v52 = vsel %vm641_vm15, %v643_v39, %v639_v46  ;;  %vm769_vm4 = vmor %vm767_vm3, %vm768_vm2  ;;  %vm711_vm14 = vcmp.gt.s32.totalorder %v3061_v24, 6  ;;  %v670_v28 = vsub.f32 1.0, %v3162_v36 }
 0x329   :  { %v764_v53 = vsub.f32 1.0, %v763_v30  ;;  %v682_v30 = vmul.f32 %v3162_v36, %v3105_v0  ;;  %v671_v31 = vsub.f32 1.0, %v644_v52 }
 0x32b   :  { %v765_v45 = vmul.f32 %v2581_v22, %v764_v53  ;;  %v683_v53 = vmul.f32 %v644_v52, %v3109_v1 }
 0x32d   :  { %v766_v54 = vadd.f32 %v2581_v22, %v765_v45  ;;  %v801_v45 = vsub.f32 1.0, %v3158_v14 }
 0x32f   :  { %v770_v60 = vsel %vm769_vm4, %v2581_v22, %v766_v54 }
 0x330   :  { %v3167_v59 = vsel %vm772_vm5, %v774_v61, %v770_v60 }
 0x331   :  { %v802_v56 = vsub.f32 1.0, %v3167_v59  ;;  %v814_v61 = vmul.f32 %v3167_v59, %v3121_v12 }
 0x35b   :  { %v782_v13 = vpop.permute.xlu2 %781 }
 0x35c   :  { %v787_v15 = vmul.f32 %v782_v13, %v3158_v14 }
 0x35e   :  { %791 = vrot.lane.b32.xlu0 %v787_v15, %s2799_s2 }
 0x36c   :  { %v651_v40 = vpop.permute.xlu0 %650 }
 0x36d   :  { %v656_v58 = vmul.f32 %v651_v40, %v3162_v36 }
 0x36f   :  { %660 = vrot.lane.b32.xlu1 %v656_v58, %s2799_s2 }
 0x374   :  { %v653_v50 = vpop.permute.xlu1 %652 }
 0x375   :  { %v657_v47 = vmul.f32 %v653_v50, %v644_v52  ;;  %v813_v50 = vmul.f32 %v3158_v14, %v3091_v55 }
 0x377   :  { %662 = vrot.lane.b32.xlu2 %v657_v47, %s2799_s2 }
 0x37b   :  { %v784_v62 = vpop.permute.xlu0 %783 }
 0x37c   :  { %v788_v37 = vmul.f32 %v784_v62, %v3167_v59 }
 0x37e   :  { %793 = vrot.lane.b32.xlu1 %v788_v37, %s2799_s2 }
 0x386   :  { %689 = vperm.xlu1 %2530, %v686_v49  }
 0x3d0   :  { %v792_v8 = vpop.permute.xlu0 %791 }
 0x3d1   :  { %v663_v4 = vpop.permute.xlu2 %662  ;;  %v797_v10 = vadd.f32 %v792_v8, %v3146_v33 }
 0x3d2   :  { %v667_v7 = vadd.f32 %v663_v4, %v3152_v20 }
 0x3d4   :  { %2582 = vtanh.f32 %v667_v7  ;;  %v163_v7 = vpop.f32.mrf.mxu0 }
 0x3d5   :  { %2584 = vtanh.f32 %v797_v10  ;;  %v164_v8 = vadd.f32 %v2970_v19, %v163_v7 }
 0x3d7   :  { %198 = vst.msk [vmem:[#allocation2 + $0x20] sm:$0xff] %vm193_vm1, %v164_v8 }
 0x3da   :  { %v2583_v13 = vpop.eup %2582 }
 0x3db   :  { %676 = vrot.lane.b32.xlu0 %v2583_v13, %s2800_s24  ;;  %v2585_v16 = vpop.eup %2584 }
 0x3dc   :  { %v165_v10 = vpop.f32.mrf.mxu0 }
 0x3e1   :  { %v661_v15 = vpop.permute.xlu1 %660 }
 0x3e2   :  { %v666_v17 = vadd.f32 %v661_v15, %v3149_v41  ;;  %v817_v41 = vsel %vm711_vm14, 1, %v2798_v3 }
 0x3e3   :  { %805 = vrot.lane.b32.xlu0 %v2585_v16, %s2800_s24 }
 0x3e4   :  { %2586 = vtanh.f32 %v666_v17 }
 0x3ea   :  { %v2587_v20 = vpop.eup %2586 }
 0x3eb   :  { %674 = vrot.lane.b32.xlu2 %v2587_v20, %s2800_s24  ;;  %823 = vperm.xlu0 %2529, %v818_v18  }
 0x3f0   :  { %v794_v33 = vpop.permute.xlu1 %793 }
 0x3f1   :  { %v798_v22 = vadd.f32 %v794_v33, %v3155_v48 }
 0x3f3   :  { %2588 = vtanh.f32 %v798_v22  ;;  %692 = vperm.xlu2 %2531, %v687_v21   ;;  %v3268_v22 = vld [vmem:[#allocation2 + $0x20] sm:$0xff] }
 0x3f8   :  { %v3192_v35 = vpop.permute.xlu1 %689 }
 0x3f9   :  { %v2589_v23 = vpop.eup %2588  ;;  %vm4016_vm15 = vcmp.eq.s32.totalorder %v3192_v35, 1 }
 0x3fa   :  { %807 = vrot.lane.b32.xlu1 %v2589_v23, %s2800_s24 }
 0x3fb   :  { %820 = vperm.xlu2 %2531, %v817_v41  }
 0x445   :  { %v675_v26 = vpop.permute.xlu2 %674 }
 0x446   :  { %v680_v29 = vmul.f32 %v675_v26, %v670_v28 }
 0x448   :  { %v3194_v40 = vadd.f32 %v682_v30, %v680_v29 }
 0x44a   :  { %v3205_v36 = vsel %vm4016_vm15, %v3194_v40, %v3105_v0 }
 0x44d   :  { %v3190_v32 = vpop.permute.xlu2 %692  ;;  %v677_v48 = vpop.permute.xlu0 %676 }
 0x44e   :  { %v681_v58 = vmul.f32 %v677_v48, %v671_v31  ;;  %vm4015_vm2 = vcmp.eq.s32.totalorder %v3190_v32, 1 }
 0x450   :  { %v3197_v42 = vadd.f32 %v683_v53, %v681_v58  ;;  %v3274_v58 = vld [vmem:[#allocation3 + $0x58] sm:$0xff] }
 0x452   :  { %v3211_v34 = vsel %vm4015_vm2, %v3197_v42, %v3109_v1 }
 0x453   :  { %v839_v44 = vpack.c.bf16 %v3211_v34, %v3205_v36 }
 0x455   :  { %841 = vrot.lane.b32.xlu1 %v839_v44, %s2800_s24  ;;  %v806_v46 = vpop.permute.xlu0 %805  ;;  %v3217_v39 = vpop.permute.xlu2 %820 }
 0x456   :  { %v811_v52 = vmul.f32 %v806_v46, %v801_v45  ;;  %vm4019_vm3 = vcmp.eq.s32.totalorder %v3217_v39, 1 }
 0x458   :  { %v815_v54 = vadd.f32 %v813_v50, %v811_v52 }
 0x45a   :  { %v829_v47 = vsel %vm4019_vm3, %v815_v54, 0.0  ;;  %v3236_v49 = vsel %vm4019_vm3, %v815_v54, %v3091_v55  ;;  %v166_v55 = vadd.f32 %v2970_v19, %v165_v10 }
 0x45b   :  { %832 = vst.msk [vmem:[#allocation4 + $0x60] sm:$0xff] %vm4018_vm8, %v829_v47 }
 0x45c   :  { %199 = vst.msk [vmem:[#allocation2 + $0x28] sm:$0xff] %vm193_vm1, %v166_v55 }
 0x45d   :  { %v3226_v60 = vpop.permute.xlu0 %823 }
 0x45e   :  { %vm4017_vm4 = vcmp.eq.s32.totalorder %v3226_v60, 1 }
 0x463   :  { %v3271_v28 = vld [vmem:[#allocation2 + $0x28] sm:$0xff] }
 0x46c   :  { %v808_v57 = vpop.permute.xlu1 %807 }
 0x46d   :  { %v812_v62 = vmul.f32 %v808_v57, %v802_v56 }
 0x46f   :  { %v816_v37 = vadd.f32 %v814_v61, %v812_v62 }
 0x471   :  { %v830_v14 = vsel %vm4017_vm4, %v816_v37, 0.0  ;;  %v3241_v4 = vsel %vm4017_vm4, %v816_v37, %v3121_v12 }
 0x472   :  { %v970_v59 = vpack.c.bf16 %v3241_v4, %v3236_v49  ;;  %833 = vst.msk [vmem:[#allocation4 + $0x68] sm:$0xff] %vm4018_vm8, %v830_v14 }
 0x474   :  { %972 = vrot.lane.b32.xlu2 %v970_v59, %s2800_s24 }
 0x4c7   :  { %v842_v13 = vpop.permute.xlu1 %841 }
 0x4c8   :  { %2449 = vmatmul.msk.bf16.vlgmr.msra.gmra.mxu2 %vm119_vm0, %v842_v13 }
 0x4c9   :  { %1358 = vmatpush.bf16.msra.mxu2 %v2879_v2 }
 0x4cd   :  { %1359 = vmatpush.bf16.msra.mxu2 %v2893_v6 }
 0x4ce   :  { %v973_v12 = vpop.permute.xlu2 %972 }
 0x4cf   :  { %2452 = vmatmul.msk.bf16.vlgmr.msra.gmra.mxu3 %vm119_vm0, %v973_v12 }
 0x4d0   :  { %1476 = vmatpush.bf16.msra.mxu3 %v2910_v9 }
 0x4d4   :  { %1477 = vmatpush.bf16.msra.mxu3 %v2924_v11  ;;  %v3265_v11 = vld [vmem:[#allocation3 + $0x50] sm:$0xff] }
 0x54b   :  { %v855_v15 = vpop.f32.mrf.mxu2 }
 0x54c   :  { %v900_v16 = vadd.f32 %v855_v15, %v2981_v25  ;;  %v860_v41 = vadd.f32 %v855_v15, %v3268_v22 }
 0x54e   :  { %904 = vrot.lane.b32.xlu0 %v900_v16, %s2799_s2  ;;  %v2450_v26 = vmul.f32 -1.442695, %v860_v41 }
 0x552   :  { %v986_v19 = vpop.f32.mrf.mxu3 }
 0x553   :  { %v857_v17 = vpop.f32.mrf.mxu2  ;;  %v1031_v18 = vadd.f32 %v986_v19, %v2995_v38  ;;  %v991_v20 = vadd.f32 %v986_v19, %v3265_v11 }
 0x554   :  { %v901_v2 = vadd.f32 %v857_v17, %v2981_v25  ;;  %v861_v29 = vadd.f32 %v857_v17, %v3271_v28 }
 0x555   :  { %1035 = vrot.lane.b32.xlu2 %v1031_v18, %s2799_s2  ;;  %v2453_v33 = vmul.f32 -1.442695, %v991_v20 }
 0x556   :  { %906 = vrot.lane.b32.xlu1 %v901_v2, %s2799_s2  ;;  %v2451_v31 = vmul.f32 -1.442695, %v861_v29 }
 0x557   :  { %2590 = vpow2.f32 %v2453_v33 }
 0x55a   :  { %v988_v6 = vpop.f32.mrf.mxu3 }
 0x55b   :  { %v1032_v9 = vadd.f32 %v988_v6, %v2995_v38  ;;  %v992_v44 = vadd.f32 %v988_v6, %v3274_v58 }
 0x55d   :  { %1037 = vrot.lane.b32.xlu0 %v1032_v9, %s2799_s2  ;;  %v2591_v21 = vpop.eup %2590  ;;  %v2454_v50 = vmul.f32 -1.442695, %v992_v44 }
 0x55e   :  { %v999_v23 = vadd.f32 1.0, %v2591_v21 }
 0x560   :  { %2592 = vrcp.f32 %v999_v23  ;;  %v1012_v57 = vand.u32 2147483648, %v999_v23  ;;  %vm1006_vm6 = vweird.f32 %v999_v23  ;;  %v1010_v62 = vand.u32 2147483647, %v999_v23 }
 0x561   :  { %2594 = vpow2.f32 %v2450_v26 }
 0x562   :  { %2596 = vpow2.f32 %v2451_v31  ;;  %v1013_v59 = vor.u32 1.1754944e-38, %v1012_v57  ;;  %vm1011_vm13 = vcmp.eq.f32.partialorder %v1010_v62, 8.507059e+37 }
 0x566   :  { %v2593_v30 = vpop.eup %2592 }
 0x567   :  { %v1002_v48 = vmul.f32 %v2593_v30, %v999_v23  ;;  %v2595_v53 = vpop.eup %2594  ;;  %vm1007_vm5 = vweird.f32 %v2593_v30 }
 0x568   :  { %v868_v45 = vadd.f32 1.0, %v2595_v53  ;;  %v2597_v54 = vpop.eup %2596  ;;  %vm1008_vm7 = vmor %vm1006_vm6, %vm1007_vm5 }
 0x569   :  { %v1003_v46 = vsub.f32 1.0, %v1002_v48  ;;  %v869_v47 = vadd.f32 1.0, %v2597_v54 }
 0x56a   :  { %2598 = vrcp.f32 %v868_v45  ;;  %v881_v6 = vand.u32 2147483648, %v868_v45  ;;  %vm875_vm5 = vweird.f32 %v868_v45  ;;  %v879_v9 = vand.u32 2147483647, %v868_v45 }
 0x56b   :  { %v1004_v52 = vmul.f32 %v2593_v30, %v1003_v46  ;;  %2600 = vpow2.f32 %v2454_v50  ;;  %v896_v48 = vand.u32 2147483648, %v869_v47  ;;  %vm890_vm11 = vweird.f32 %v869_v47 }
 0x56c   :  { %2602 = vrcp.f32 %v869_v47  ;;  %v882_v41 = vor.u32 1.1754944e-38, %v881_v6  ;;  %v894_v53 = vand.u32 2147483647, %v869_v47 }
 0x56d   :  { %v1005_v56 = vadd.f32 %v2593_v30, %v1004_v52  ;;  %v897_v46 = vor.u32 1.1754944e-38, %v896_v48 }
 0x56f   :  { %v1009_v14 = vsel %vm1008_vm7, %v2593_v30, %v1005_v56  ;;  %vm880_vm7 = vcmp.eq.f32.partialorder %v879_v9, 8.507059e+37 }
 0x570   :  { %v2599_v61 = vpop.eup %2598  ;;  %v3277_v55 = vsel %vm1011_vm13, %v1013_v59, %v1009_v14 }
 0x571   :  { %v2601_v37 = vpop.eup %2600  ;;  %v871_v7 = vmul.f32 %v2599_v61, %v868_v45  ;;  %vm876_vm14 = vweird.f32 %v2599_v61 }
 0x572   :  { %v1000_v8 = vadd.f32 1.0, %v2601_v37  ;;  %v2603_v15 = vpop.eup %2602  ;;  %vm877_vm6 = vmor %vm875_vm5, %vm876_vm14  ;;  %vm895_vm14 = vcmp.eq.f32.partialorder %v894_v53, 8.507059e+37 }
 0x573   :  { %v872_v12 = vsub.f32 1.0, %v871_v7  ;;  %v886_v19 = vmul.f32 %v2603_v15, %v869_v47  ;;  %vm891_vm13 = vweird.f32 %v2603_v15 }
 0x574   :  { %2604 = vrcp.f32 %v1000_v8  ;;  %vm892_vm10 = vmor %vm890_vm11, %vm891_vm13  ;;  %v1027_v57 = vand.u32 2147483648, %v1000_v8  ;;  %vm835_vm11 = vcmp.gt.s32.totalorder %v3068_v27, 2  ;;  %vm965_vm13 = vcmp.gt.s32.totalorder %v3061_v24, 5 }
 0x575   :  { %v873_v16 = vmul.f32 %v2599_v61, %v872_v12  ;;  %v887_v2 = vsub.f32 1.0, %v886_v19 }
 0x576   :  { %v1028_v37 = vor.u32 1.1754944e-38, %v1027_v57 }
 0x577   :  { %v874_v18 = vadd.f32 %v2599_v61, %v873_v16  ;;  %v888_v21 = vmul.f32 %v2603_v15, %v887_v2  ;;  %v941_v2 = vsel %vm835_vm11, 1, %v2798_v3 }
 0x579   :  { %v878_v33 = vsel %vm877_vm6, %v2599_v61, %v874_v18  ;;  %v889_v31 = vadd.f32 %v2603_v15, %v888_v21  ;;  %vm1021_vm6 = vweird.f32 %v1000_v8  ;;  %v1025_v61 = vand.u32 2147483647, %v1000_v8 }
 0x57a   :  { %v2605_v17 = vpop.eup %2604  ;;  %v3281_v23 = vsel %vm880_vm7, %v882_v41, %v878_v33 }
 0x57b   :  { %v1017_v20 = vmul.f32 %v2605_v17, %v1000_v8  ;;  %v893_v45 = vsel %vm892_vm10, %v2603_v15, %v889_v31  ;;  %vm1022_vm5 = vweird.f32 %v2605_v17  ;;  %vm1026_vm9 = vcmp.eq.f32.partialorder %v1025_v61, 8.507059e+37 }
 0x57c   :  { %v898_v52 = vsel %vm895_vm14, %v897_v46, %v893_v45  ;;  %vm1023_vm7 = vmor %vm1021_vm6, %vm1022_vm5  ;;  %vm834_vm10 = vcmp.gt.s32.totalorder %v3061_v24, 2  ;;  %v924_v33 = vsub.f32 1.0, %v3281_v23  ;;  %v1055_v45 = vsub.f32 1.0, %v3277_v55 }
 0x57d   :  { %v1018_v29 = vsub.f32 1.0, %v1017_v20  ;;  %v940_v7 = vsel %vm834_vm10, 1, %v2798_v3  ;;  %v925_v41 = vsub.f32 1.0, %v898_v52 }
 0x57f   :  { %v1019_v44 = vmul.f32 %v2605_v17, %v1018_v29 }
 0x581   :  { %v1020_v54 = vadd.f32 %v2605_v17, %v1019_v44 }
 0x583   :  { %v1024_v62 = vsel %vm1023_vm7, %v2605_v17, %v1020_v54 }
 0x584   :  { %v3286_v47 = vsel %vm1026_vm9, %v1028_v37, %v1024_v62  ;;  %vm966_vm9 = vcmp.gt.s32.totalorder %v3068_v27, 5  ;;  %v936_v27 = vmul.f32 %v3281_v23, %v3205_v36 }
 0x585   :  { %v1072_v18 = vsel %vm966_vm9, 1, %v2798_v3  ;;  %v1068_v62 = vmul.f32 %v3286_v47, %v3241_v4 }
 0x5af   :  { %v1036_v10 = vpop.permute.xlu2 %1035 }
 0x5b0   :  { %v1041_v13 = vmul.f32 %v1036_v10, %v3277_v55 }
 0x5b2   :  { %1045 = vrot.lane.b32.xlu0 %v1041_v13, %s2799_s2 }
 0x5c0   :  { %v905_v26 = vpop.permute.xlu0 %904 }
 0x5c1   :  { %v910_v30 = vmul.f32 %v905_v26, %v3281_v23 }
 0x5c3   :  { %914 = vrot.lane.b32.xlu1 %v910_v30, %s2799_s2  ;;  %v937_v30 = vmul.f32 %v898_v52, %v3211_v34 }
 0x5c8   :  { %v907_v50 = vpop.permute.xlu1 %906 }
 0x5c9   :  { %v911_v56 = vmul.f32 %v907_v50, %v898_v52 }
 0x5cb   :  { %916 = vrot.lane.b32.xlu2 %v911_v56, %s2799_s2  ;;  %v1056_v56 = vsub.f32 1.0, %v3286_v47 }
 0x5cf   :  { %v1038_v14 = vpop.permute.xlu0 %1037 }
 0x5d0   :  { %v1042_v59 = vmul.f32 %v1038_v14, %v3286_v47 }
 0x5d2   :  { %1047 = vrot.lane.b32.xlu1 %v1042_v59, %s2799_s2 }
 0x5da   :  { %943 = vperm.xlu1 %2530, %v940_v7  }
 0x624   :  { %v1046_v13 = vpop.permute.xlu0 %1045 }
 0x625   :  { %v917_v10 = vpop.permute.xlu2 %916  ;;  %v1051_v12 = vadd.f32 %v1046_v13, %v3265_v11 }
 0x626   :  { %v921_v8 = vadd.f32 %v917_v10, %v3271_v28  ;;  %v168_v10 = vpop.f32.mrf.mxu0 }
 0x628   :  { %2606 = vtanh.f32 %v921_v8  ;;  %v3369_v8 = vld [vmem:[%s4002_s4] ss:$0 sm:$0xff] }
 0x629   :  { %2608 = vtanh.f32 %v1051_v12 }
 0x62e   :  { %v2607_v15 = vpop.eup %2606  ;;  %v170_v13 = vpop.f32.mrf.mxu0 }
 0x62f   :  { %930 = vrot.lane.b32.xlu0 %v2607_v15, %s2800_s24  ;;  %v2609_v19 = vpop.eup %2608  ;;  %v3379_v15 = vld [vmem:[%s4004_s6 + $0x8] sm:$0xff] }
 0x635   :  { %v915_v16 = vpop.permute.xlu1 %914 }
 0x636   :  { %v920_v17 = vadd.f32 %v915_v16, %v3268_v22  ;;  %v1071_v22 = vsel %vm965_vm13, 1, %v2798_v3  ;;  %v3385_v16 = vld [vmem:[%s4004_s6] sm:$0xff] }
 0x637   :  { %1059 = vrot.lane.b32.xlu0 %v2609_v19, %s2800_s24 }
 0x638   :  { %2610 = vtanh.f32 %v920_v17  ;;  %v3392_v17 = vld [vmem:[%s4005_s7 + $0x8] sm:$0xff] }
 0x63e   :  { %v2611_v28 = vpop.eup %2610 }
 0x63f   :  { %928 = vrot.lane.b32.xlu2 %v2611_v28, %s2800_s24  ;;  %1077 = vperm.xlu0 %2529, %v1072_v18   ;;  %v3398_v18 = vld [vmem:[%s4005_s7] sm:$0xff] }
 0x644   :  { %v1048_v11 = vpop.permute.xlu1 %1047 }
 0x645   :  { %v1052_v6 = vadd.f32 %v1048_v11, %v3274_v58 }
 0x647   :  { %2612 = vtanh.f32 %v1052_v6  ;;  %946 = vperm.xlu2 %2531, %v941_v2  }
 0x64c   :  { %v3311_v29 = vpop.permute.xlu1 %943 }
 0x64d   :  { %v2613_v9 = vpop.eup %2612  ;;  %vm4021_vm14 = vcmp.eq.s32.totalorder %v3311_v29, 1 }
 0x64e   :  { %1061 = vrot.lane.b32.xlu1 %v2613_v9, %s2800_s24 }
 0x64f   :  { %1074 = vperm.xlu2 %2531, %v1071_v22  }
 0x699   :  { %v929_v20 = vpop.permute.xlu2 %928 }
 0x69a   :  { %v934_v21 = vmul.f32 %v929_v20, %v924_v33 }
 0x69c   :  { %v3313_v24 = vadd.f32 %v936_v27, %v934_v21  ;;  %v3409_v21 = vld [vmem:[#allocation3 + $0x40] sm:$0xff] }
 0x69e   :  { %v3324_v23 = vsel %vm4021_vm14, %v3313_v24, %v3205_v36  ;;  %v1067_v36 = vmul.f32 %v3277_v55, %v3236_v49 }
 0x6a1   :  { %v3309_v26 = vpop.permute.xlu2 %946  ;;  %v931_v58 = vpop.permute.xlu0 %930 }
 0x6a2   :  { %v935_v31 = vmul.f32 %v931_v58, %v925_v41  ;;  %vm4020_vm5 = vcmp.eq.s32.totalorder %v3309_v26, 1 }
 0x6a4   :  { %v3316_v48 = vadd.f32 %v937_v30, %v935_v31 }
 0x6a6   :  { %v3330_v53 = vsel %vm4020_vm5, %v3316_v48, %v3211_v34 }
 0x6a7   :  { %v1093_v44 = vpack.c.bf16 %v3330_v53, %v3324_v23 }
 0x6a9   :  { %1095 = vrot.lane.b32.xlu1 %v1093_v44, %s2800_s24  ;;  %v1060_v46 = vpop.permute.xlu0 %1059  ;;  %v3336_v50 = vpop.permute.xlu2 %1074 }
 0x6aa   :  { %v1065_v52 = vmul.f32 %v1060_v46, %v1055_v45  ;;  %vm1079_vm6 = vcmp.eq.s32.totalorder %v3336_v50, 1  ;;  %v2520_v50 = vld [vmem:[%s4007_s9 + $0x10] sm:$0xff] }
 0x6ac   :  { %v1069_v54 = vadd.f32 %v1067_v36, %v1065_v52 }
 0x6ae   :  { %v1083_v34 = vsel %vm1079_vm6, %v1069_v54, 0.0  ;;  %v3355_v59 = vsel %vm1079_vm6, %v1069_v54, %v3236_v49  ;;  %v169_v49 = vadd.f32 %v3369_v8, %v168_v10 }
 0x6af   :  { %1086 = vst.msk [vmem:[#allocation4 + $0x50] sm:$0xff] %vm4018_vm8, %v1083_v34 }
 0x6b0   :  { %200 = vst.msk [vmem:[#allocation2 + $0x30] sm:$0xff] %vm193_vm1, %v169_v49 }
 0x6b1   :  { %v3345_v61 = vpop.permute.xlu0 %1077 }
 0x6b2   :  { %4025 = vst [vmem:[#allocation10_spill] sm:$0xff] %v3345_v61  ;;  %vm1080_vm7 = vcmp.eq.s32.totalorder %v3345_v61, 1 }
 0x6b7   :  { %v3412_v30 = vld [vmem:[#allocation2 + $0x30] sm:$0xff] }
 0x6c0   :  { %v1062_v57 = vpop.permute.xlu1 %1061 }
 0x6c1   :  { %v1066_v37 = vmul.f32 %v1062_v57, %v1056_v56  ;;  %v3418_v57 = vld [vmem:[#allocation3 + $0x48] sm:$0xff] }
 0x6c3   :  { %v1070_v14 = vadd.f32 %v1068_v62, %v1066_v37 }
 0x6c5   :  { %v1084_v55 = vsel %vm1080_vm7, %v1070_v14, 0.0  ;;  %v3360_v7 = vsel %vm1080_vm7, %v1070_v14, %v3241_v4  ;;  %v171_v4 = vadd.f32 %v3369_v8, %v170_v13 }
 0x6c6   :  { %v1224_v47 = vpack.c.bf16 %v3360_v7, %v3355_v59  ;;  %1087 = vst.msk [vmem:[#allocation4 + $0x58] sm:$0xff] %vm4018_vm8, %v1084_v55 }
 0x6c7   :  { %201 = vst.msk [vmem:[#allocation2 + $0x38] sm:$0xff] %vm193_vm1, %v171_v4 }
 0x6c8   :  { %1226 = vrot.lane.b32.xlu2 %v1224_v47, %s2800_s24 }
 0x6ce   :  { %v3415_v46 = vld [vmem:[#allocation2 + $0x38] sm:$0xff] }
 0x71b   :  { %v1096_v12 = vpop.permute.xlu1 %1095 }
 0x71c   :  { %2455 = vmatmul.msk.bf16.vlgmr.msrb.gmra.mxu2 %vm119_vm0, %v1096_v12 }
 0x71d   :  { %1586 = vmatpush.bf16.msrb.mxu2 %v3379_v15 }
 0x721   :  { %1587 = vmatpush.bf16.msrb.mxu2 %v3385_v16 }
 0x722   :  { %v1227_v19 = vpop.permute.xlu2 %1226 }
 0x723   :  { %2458 = vmatmul.msk.bf16.vlgmr.msrb.gmra.mxu3 %vm119_vm0, %v1227_v19 }
 0x724   :  { %1704 = vmatpush.bf16.msrb.mxu3 %v3392_v17 }
 0x728   :  { %1705 = vmatpush.bf16.msrb.mxu3 %v3398_v18 }
 0x79f   :  { %v1109_v28 = vpop.f32.mrf.mxu2 }
 0x7a0   :  { %v1154_v11 = vadd.f32 %v1109_v28, %v2981_v25  ;;  %v1114_v31 = vadd.f32 %v1109_v28, %v3412_v30 }
 0x7a2   :  { %1158 = vrot.lane.b32.xlu0 %v1154_v11, %s2799_s2  ;;  %v2456_v45 = vmul.f32 -1.442695, %v1114_v31 }
 0x7a6   :  { %v1240_v2 = vpop.f32.mrf.mxu3 }
 0x7a7   :  { %v1111_v6 = vpop.f32.mrf.mxu2  ;;  %v1285_v22 = vadd.f32 %v1240_v2, %v2995_v38  ;;  %v1245_v27 = vadd.f32 %v1240_v2, %v3409_v21 }
 0x7a8   :  { %v1155_v9 = vadd.f32 %v1111_v6, %v2981_v25  ;;  %v1115_v36 = vadd.f32 %v1111_v6, %v3415_v46 }
 0x7a9   :  { %1289 = vrot.lane.b32.xlu2 %v1285_v22, %s2799_s2  ;;  %v2459_v41 = vmul.f32 -1.442695, %v1245_v27 }
 0x7aa   :  { %1160 = vrot.lane.b32.xlu1 %v1155_v9, %s2799_s2  ;;  %v2457_v54 = vmul.f32 -1.442695, %v1115_v36 }
 0x7ab   :  { %2614 = vpow2.f32 %v2459_v41 }
 0x7ae   :  { %v1242_v20 = vpop.f32.mrf.mxu3 }
 0x7af   :  { %v1286_v33 = vadd.f32 %v1242_v20, %v2995_v38  ;;  %v1246_v62 = vadd.f32 %v1242_v20, %v3418_v57 }
 0x7b1   :  { %1291 = vrot.lane.b32.xlu0 %v1286_v33, %s2799_s2  ;;  %v2615_v58 = vpop.eup %2614  ;;  %v2460_v55 = vmul.f32 -1.442695, %v1246_v62 }
 0x7b2   :  { %v1253_v44 = vadd.f32 1.0, %v2615_v58 }
 0x7b4   :  { %2616 = vrcp.f32 %v1253_v44  ;;  %v1266_v4 = vand.u32 2147483648, %v1253_v44  ;;  %vm1260_vm9 = vweird.f32 %v1253_v44  ;;  %v1264_v19 = vand.u32 2147483647, %v1253_v44 }
 0x7b5   :  { %2618 = vpow2.f32 %v2456_v45 }
 0x7b6   :  { %2620 = vpow2.f32 %v2457_v54  ;;  %v1267_v2 = vor.u32 1.1754944e-38, %v1266_v4  ;;  %vm1265_vm13 = vcmp.eq.f32.partialorder %v1264_v19, 8.507059e+37 }
 0x7ba   :  { %v2617_v52 = vpop.eup %2616 }
 0x7bb   :  { %v1256_v34 = vmul.f32 %v2617_v52, %v1253_v44  ;;  %v2619_v56 = vpop.eup %2618  ;;  %vm1261_vm10 = vweird.f32 %v2617_v52 }
 0x7bc   :  { %v1122_v37 = vadd.f32 1.0, %v2619_v56  ;;  %v2621_v10 = vpop.eup %2620  ;;  %vm1262_vm11 = vmor %vm1260_vm9, %vm1261_vm10 }
 0x7bd   :  { %v1257_v14 = vsub.f32 1.0, %v1256_v34  ;;  %v1123_v49 = vadd.f32 1.0, %v2621_v10 }
 0x7be   :  { %2622 = vrcp.f32 %v1122_v37  ;;  %vm1129_vm9 = vweird.f32 %v1122_v37  ;;  %v1133_v54 = vand.u32 2147483647, %v1122_v37 }
 0x7bf   :  { %v1258_v47 = vmul.f32 %v2617_v52, %v1257_v14  ;;  %2624 = vpow2.f32 %v2460_v55  ;;  %v1150_v19 = vand.u32 2147483648, %v1123_v49  ;;  %vm1144_vm2 = vweird.f32 %v1123_v49 }
 0x7c0   :  { %2626 = vrcp.f32 %v1123_v49 }
 0x7c1   :  { %v1259_v13 = vadd.f32 %v2617_v52, %v1258_v47 }
 0x7c3   :  { %v1263_v11 = vsel %vm1262_vm11, %v2617_v52, %v1259_v13  ;;  %v1135_v52 = vand.u32 2147483648, %v1122_v37 }
 0x7c4   :  { %v2623_v12 = vpop.eup %2622  ;;  %v3421_v20 = vsel %vm1265_vm13, %v1267_v2, %v1263_v11  ;;  %vm1134_vm13 = vcmp.eq.f32.partialorder %v1133_v54, 8.507059e+37 }
 0x7c5   :  { %v2625_v28 = vpop.eup %2624  ;;  %v1125_v6 = vmul.f32 %v2623_v12, %v1122_v37  ;;  %vm1130_vm10 = vweird.f32 %v2623_v12  ;;  %v1136_v14 = vor.u32 1.1754944e-38, %v1135_v52  ;;  %v2743_v52 = vld [vmem:[%s3999_s1] sm:$0xff] }
 0x7c6   :  { %v1254_v22 = vadd.f32 1.0, %v2625_v28  ;;  %v2627_v41 = vpop.eup %2626  ;;  %vm1131_vm11 = vmor %vm1129_vm9, %vm1130_vm10  ;;  %v1148_v28 = vand.u32 2147483647, %v1123_v49 }
 0x7c7   :  { %v1126_v27 = vsub.f32 1.0, %v1125_v6  ;;  %v1140_v31 = vmul.f32 %v2627_v41, %v1123_v49  ;;  %vm1145_vm12 = vweird.f32 %v2627_v41 }
 0x7c8   :  { %2628 = vrcp.f32 %v1254_v22  ;;  %vm1146_vm15 = vmor %vm1144_vm2, %vm1145_vm12  ;;  %vm1149_vm10 = vcmp.eq.f32.partialorder %v1148_v28, 8.507059e+37  ;;  %vm1088_vm12 = vcmp.gt.s32.totalorder %v2743_v52, 3 }
 0x7c9   :  { %v1127_v58 = vmul.f32 %v2623_v12, %v1126_v27  ;;  %v1141_v36 = vsub.f32 1.0, %v1140_v31  ;;  %v1281_v27 = vand.u32 2147483648, %v1254_v22 }
 0x7cb   :  { %v1128_v45 = vadd.f32 %v2623_v12, %v1127_v58  ;;  %v1142_v62 = vmul.f32 %v2627_v41, %v1141_v36  ;;  %v1279_v58 = vand.u32 2147483647, %v1254_v22 }
 0x7cd   :  { %v1132_v56 = vsel %vm1131_vm11, %v2623_v12, %v1128_v45  ;;  %v1143_v4 = vadd.f32 %v2627_v41, %v1142_v62  ;;  %v1151_v12 = vor.u32 1.1754944e-38, %v1150_v19  ;;  %vm1275_vm11 = vweird.f32 %v1254_v22 }
 0x7ce   :  { %v2629_v44 = vpop.eup %2628  ;;  %v3425_v55 = vsel %vm1134_vm13, %v1136_v14, %v1132_v56  ;;  %v1282_v45 = vor.u32 1.1754944e-38, %v1281_v27  ;;  %vm1280_vm4 = vcmp.eq.f32.partialorder %v1279_v58, 8.507059e+37 }
 0x7cf   :  { %v1271_v34 = vmul.f32 %v2629_v44, %v1254_v22  ;;  %v1147_v11 = vsel %vm1146_vm15, %v2627_v41, %v1143_v4  ;;  %vm1276_vm9 = vweird.f32 %v2629_v44  ;;  %v1194_v22 = vsel %vm1088_vm12, 1, %v2798_v3 }
 0x7d0   :  { %v1152_v6 = vsel %vm1149_vm10, %v1151_v12, %v1147_v11  ;;  %vm1277_vm13 = vmor %vm1275_vm11, %vm1276_vm9  ;;  %v1178_v12 = vsub.f32 1.0, %v3425_v55 }
 0x7d1   :  { %v1272_v10 = vsub.f32 1.0, %v1271_v34 }
 0x7d3   :  { %v1273_v37 = vmul.f32 %v2629_v44, %v1272_v10 }
 0x803   :  { %v1290_v9 = vpop.permute.xlu2 %1289 }
 0x804   :  { %v1295_v33 = vmul.f32 %v1290_v9, %v3421_v20  ;;  %v1274_v9 = vadd.f32 %v2629_v44, %v1273_v37 }
 0x806   :  { %1299 = vrot.lane.b32.xlu0 %v1295_v33, %s2799_s2  ;;  %v1278_v31 = vsel %vm1277_vm13, %v2629_v44, %v1274_v9  ;;  %v1190_v9 = vmul.f32 %v3425_v55, %v3324_v23 }
 0x807   :  { %v3430_v49 = vsel %vm1280_vm4, %v1282_v45, %v1278_v31  ;;  %vm1219_vm4 = vcmp.gt.s32.totalorder %v2743_v52, 4  ;;  %v1309_v52 = vsub.f32 1.0, %v3421_v20 }
 0x808   :  { %v1325_v28 = vsel %vm1219_vm4, 1, %v2798_v3 }
 0x814   :  { %v1159_v47 = vpop.permute.xlu0 %1158 }
 0x815   :  { %v1164_v13 = vmul.f32 %v1159_v47, %v3425_v55 }
 0x817   :  { %1168 = vrot.lane.b32.xlu1 %v1164_v13, %s2799_s2  ;;  %v2744_v13 = vld [vmem:[%s3999_s1 + $0x8] sm:$0xff] }
 0x818   :  { %vm1220_vm15 = vcmp.gt.s32.totalorder %v2744_v13, 4  ;;  %vm1089_vm2 = vcmp.gt.s32.totalorder %v2744_v13, 3 }
 0x819   :  { %v1195_v19 = vsel %vm1089_vm2, 1, %v2798_v3 }
 0x81c   :  { %v1161_v2 = vpop.permute.xlu1 %1160 }
 0x81d   :  { %v1165_v33 = vmul.f32 %v1161_v2, %v1152_v6 }
 0x81f   :  { %1170 = vrot.lane.b32.xlu2 %v1165_v33, %s2799_s2  ;;  %v1179_v33 = vsub.f32 1.0, %v1152_v6 }
 0x823   :  { %v1292_v36 = vpop.permute.xlu0 %1291 }
 0x824   :  { %v1296_v41 = vmul.f32 %v1292_v36, %v3430_v49 }
 0x826   :  { %1301 = vrot.lane.b32.xlu1 %v1296_v41, %s2799_s2 }
 0x82e   :  { %1197 = vperm.xlu1 %2530, %v1194_v22  }
 0x878   :  { %v1300_v34 = vpop.permute.xlu0 %1299 }
 0x879   :  { %v1171_v54 = vpop.permute.xlu2 %1170  ;;  %v1305_v56 = vadd.f32 %v1300_v34, %v3409_v21 }
 0x87a   :  { %v1175_v44 = vadd.f32 %v1171_v54, %v3415_v46  ;;  %v1326_v46 = vsel %vm1220_vm15, 1, %v2798_v3  ;;  %v1191_v3 = vmul.f32 %v1152_v6, %v3330_v53 }
 0x87c   :  { %2630 = vtanh.f32 %v1175_v44 }
 0x87d   :  { %2632 = vtanh.f32 %v1305_v56  ;;  %v1310_v56 = vsub.f32 1.0, %v3430_v49 }
 0x882   :  { %v2631_v62 = vpop.eup %2630 }
 0x883   :  { %1184 = vrot.lane.b32.xlu0 %v2631_v62, %s2800_s24  ;;  %v2633_v47 = vpop.eup %2632 }
 0x889   :  { %v1169_v14 = vpop.permute.xlu1 %1168 }
 0x88a   :  { %v1174_v10 = vadd.f32 %v1169_v14, %v3412_v30 }
 0x88b   :  { %1313 = vrot.lane.b32.xlu0 %v2633_v47, %s2800_s24  ;;  %v1322_v47 = vmul.f32 %v3430_v49, %v3360_v7 }
 0x88c   :  { %2634 = vtanh.f32 %v1174_v10 }
 0x892   :  { %v2635_v4 = vpop.eup %2634 }
 0x893   :  { %1182 = vrot.lane.b32.xlu2 %v2635_v4, %s2800_s24  ;;  %1331 = vperm.xlu0 %2529, %v1326_v46  }
 0x898   :  { %v1302_v21 = vpop.permute.xlu1 %1301 }
 0x899   :  { %v1306_v30 = vadd.f32 %v1302_v21, %v3418_v57  ;;  %v173_v21 = vpop.f32.mrf.mxu0 }
 0x89b   :  { %2636 = vtanh.f32 %v1306_v30  ;;  %1200 = vperm.xlu2 %2531, %v1195_v19   ;;  %v174_v19 = vadd.f32 %v3369_v8, %v173_v21 }
 0x89d   :  { %202 = vst.msk [vmem:[#allocation2 + $0x40] sm:$0xff] %vm193_vm1, %v174_v19 }
 0x8a0   :  { %v3457_v58 = vpop.permute.xlu1 %1197 }
 0x8a1   :  { %v2637_v37 = vpop.eup %2636  ;;  %vm1202_vm10 = vcmp.eq.s32.totalorder %v3457_v58, 1  ;;  %v175_v30 = vpop.f32.mrf.mxu0 }
 0x8a2   :  { %1315 = vrot.lane.b32.xlu1 %v2637_v37, %s2800_s24 }
 0x8a3   :  { %1328 = vperm.xlu2 %2531, %v1325_v28  }
 0x8ed   :  { %v1183_v11 = vpop.permute.xlu2 %1182 }
 0x8ee   :  { %v1188_v2 = vmul.f32 %v1183_v11, %v1178_v12 }
 0x8f0   :  { %v3459_v31 = vadd.f32 %v1190_v9, %v1188_v2 }
 0x8f2   :  { %v3470_v55 = vsel %vm1202_vm10, %v3459_v31, %v3324_v23  ;;  %v1321_v23 = vmul.f32 %v3421_v20, %v3355_v59 }
 0x8f5   :  { %v3455_v27 = vpop.permute.xlu2 %1200  ;;  %v1185_v57 = vpop.permute.xlu0 %1184 }
 0x8f6   :  { %v1189_v45 = vmul.f32 %v1185_v57, %v1179_v33  ;;  %vm1203_vm9 = vcmp.eq.s32.totalorder %v3455_v27, 1 }
 0x8f8   :  { %v3462_v36 = vadd.f32 %v1191_v3, %v1189_v45  ;;  %v3530_v45 = vld [vmem:[#allocation3 + $0x30] sm:$0xff] }
 0x8fa   :  { %v3476_v41 = vsel %vm1203_vm9, %v3462_v36, %v3330_v53 }
 0x8fb   :  { %v1345_v6 = vpack.c.bf16 %v3476_v41, %v3470_v55 }
 0x8fd   :  { %1347 = vrot.lane.b32.xlu1 %v1345_v6, %s2800_s24  ;;  %v1314_v22 = vpop.permute.xlu0 %1313  ;;  %v3482_v54 = vpop.permute.xlu2 %1328 }
 0x8fe   :  { %v1319_v44 = vmul.f32 %v1314_v22, %v1309_v52  ;;  %vm1333_vm11 = vcmp.eq.s32.totalorder %v3482_v54, 1 }
 0x900   :  { %v1323_v34 = vadd.f32 %v1321_v23, %v1319_v44  ;;  %v3533_v23 = vld [vmem:[#allocation2 + $0x40] sm:$0xff] }
 0x902   :  { %v1337_v53 = vsel %vm1333_vm11, %v1323_v34, 0.0  ;;  %v3501_v46 = vsel %vm1333_vm11, %v1323_v34, %v3355_v59  ;;  %v176_v59 = vadd.f32 %v3369_v8, %v175_v30 }
 0x903   :  { %1340 = vst.msk [vmem:[#allocation4 + $0x40] sm:$0xff] %vm4018_vm8, %v1337_v53 }
 0x904   :  { %203 = vst.msk [vmem:[#allocation2 + $0x48] sm:$0xff] %vm193_vm1, %v176_v59 }
 0x905   :  { %v3491_v14 = vpop.permute.xlu0 %1331 }
 0x906   :  { %vm1334_vm13 = vcmp.eq.s32.totalorder %v3491_v14, 1  ;;  %v1207_v14 = vsel %vm1203_vm9, %v3462_v36, 0.0 }
 0x914   :  { %v1316_v62 = vpop.permute.xlu1 %1315 }
 0x915   :  { %v1320_v10 = vmul.f32 %v1316_v62, %v1310_v56  ;;  %v3536_v56 = vld [vmem:[#allocation2 + $0x48] sm:$0xff] }
 0x917   :  { %v1324_v13 = vadd.f32 %v1322_v47, %v1320_v10 }
 0x919   :  { %v1338_v20 = vsel %vm1334_vm13, %v1324_v13, 0.0  ;;  %v3506_v4 = vsel %vm1334_vm13, %v1324_v13, %v3360_v7 }
 0x91a   :  { %v1463_v49 = vpack.c.bf16 %v3506_v4, %v3501_v46  ;;  %1341 = vst.msk [vmem:[#allocation4 + $0x48] sm:$0xff] %vm4018_vm8, %v1338_v20 }
 0x91c   :  { %1465 = vrot.lane.b32.xlu2 %v1463_v49, %s2800_s24  ;;  %v3539_v49 = vld [vmem:[#allocation3 + $0x38] sm:$0xff] }
 0x96f   :  { %v1348_v28 = vpop.permute.xlu1 %1347 }
 0x970   :  { %2461 = vmatmul.msk.bf16.vlgmr.msra.gmra.mxu2 %vm119_vm0, %v1348_v28 }
 0x971   :  { %1814 = vmatpush.bf16.msra.mxu2 %v3379_v15 }
 0x975   :  { %1815 = vmatpush.bf16.msra.mxu2 %v3385_v16 }
 0x976   :  { %v1466_v7 = vpop.permute.xlu2 %1465 }
 0x977   :  { %2464 = vmatmul.msk.bf16.vlgmr.msra.gmra.mxu3 %vm119_vm0, %v1466_v7 }
 0x978   :  { %1932 = vmatpush.bf16.msra.mxu3 %v3392_v17 }
 0x97c   :  { %1933 = vmatpush.bf16.msra.mxu3 %v3398_v18 }
 0x9f3   :  { %v1361_v37 = vpop.f32.mrf.mxu2 }
 0x9f4   :  { %v1406_v11 = vadd.f32 %v1361_v37, %v2981_v25  ;;  %v1366_v44 = vadd.f32 %v1361_v37, %v3533_v23 }
 0x9f6   :  { %1410 = vrot.lane.b32.xlu0 %v1406_v11, %s2799_s2  ;;  %v2462_v53 = vmul.f32 -1.442695, %v1366_v44 }
 0x9fa   :  { %v1479_v12 = vpop.f32.mrf.mxu3 }
 0x9fb   :  { %v1363_v2 = vpop.f32.mrf.mxu2  ;;  %v1524_v9 = vadd.f32 %v1479_v12, %v2995_v38  ;;  %v1484_v6 = vadd.f32 %v1479_v12, %v3530_v45 }
 0x9fc   :  { %v1407_v33 = vadd.f32 %v1363_v2, %v2981_v25  ;;  %v1367_v62 = vadd.f32 %v1363_v2, %v3536_v56 }
 0x9fd   :  { %1528 = vrot.lane.b32.xlu2 %v1524_v9, %s2799_s2  ;;  %v2465_v52 = vmul.f32 -1.442695, %v1484_v6 }
 0x9fe   :  { %1412 = vrot.lane.b32.xlu1 %v1407_v33, %s2799_s2  ;;  %v2463_v10 = vmul.f32 -1.442695, %v1367_v62 }
 0x9ff   :  { %2638 = vpow2.f32 %v2465_v52 }
 0xa02   :  { %v1481_v57 = vpop.f32.mrf.mxu3 }
 0xa03   :  { %v1525_v3 = vadd.f32 %v1481_v57, %v2995_v38  ;;  %v1485_v21 = vadd.f32 %v1481_v57, %v3539_v49 }
 0xa05   :  { %1530 = vrot.lane.b32.xlu0 %v1525_v3, %s2799_s2  ;;  %v2639_v22 = vpop.eup %2638  ;;  %v2466_v59 = vmul.f32 -1.442695, %v1485_v21 }
 0xa06   :  { %v1492_v34 = vadd.f32 1.0, %v2639_v22 }
 0xa08   :  { %2640 = vrcp.f32 %v1492_v34  ;;  %v1505_v12 = vand.u32 2147483648, %v1492_v34  ;;  %vm1499_vm15 = vweird.f32 %v1492_v34  ;;  %v1503_v9 = vand.u32 2147483647, %v1492_v34 }
 0xa09   :  { %2642 = vpow2.f32 %v2462_v53 }
 0xa0a   :  { %2644 = vpow2.f32 %v2463_v10  ;;  %v1506_v57 = vor.u32 1.1754944e-38, %v1505_v12  ;;  %vm1504_vm4 = vcmp.eq.f32.partialorder %v1503_v9, 8.507059e+37 }
 0xa0e   :  { %v2641_v47 = vpop.eup %2640 }
 0xa0f   :  { %v1495_v13 = vmul.f32 %v2641_v47, %v1492_v34  ;;  %v2643_v20 = vpop.eup %2642  ;;  %vm1500_vm12 = vweird.f32 %v2641_v47 }
 0xa10   :  { %v1374_v19 = vadd.f32 1.0, %v2643_v20  ;;  %v2645_v7 = vpop.eup %2644  ;;  %vm1501_vm2 = vmor %vm1499_vm15, %vm1500_vm12 }
 0xa11   :  { %v1496_v30 = vsub.f32 1.0, %v1495_v13  ;;  %v1375_v37 = vadd.f32 1.0, %v2645_v7 }
 0xa12   :  { %2646 = vrcp.f32 %v1374_v19  ;;  %vm1381_vm15 = vweird.f32 %v1374_v19 }
 0xa13   :  { %v1497_v28 = vmul.f32 %v2641_v47, %v1496_v30  ;;  %2648 = vpow2.f32 %v2466_v59  ;;  %v1387_v30 = vand.u32 2147483648, %v1374_v19  ;;  %v1385_v59 = vand.u32 2147483647, %v1374_v19 }
 0xa14   :  { %2650 = vrcp.f32 %v1375_v37  ;;  %vm1396_vm3 = vweird.f32 %v1375_v37 }
 0xa15   :  { %v1498_v11 = vadd.f32 %v2641_v47, %v1497_v28  ;;  %v1388_v12 = vor.u32 1.1754944e-38, %v1387_v30 }
 0xa17   :  { %v1502_v3 = vsel %vm1501_vm2, %v2641_v47, %v1498_v11 }
 0xa18   :  { %v2647_v2 = vpop.eup %2646  ;;  %v3542_v44 = vsel %vm1504_vm4, %v1506_v57, %v1502_v3  ;;  %vm1386_vm4 = vcmp.eq.f32.partialorder %v1385_v59, 8.507059e+37 }
 0xa19   :  { %v2649_v33 = vpop.eup %2648  ;;  %v1377_v6 = vmul.f32 %v2647_v2, %v1374_v19  ;;  %vm1382_vm12 = vweird.f32 %v2647_v2 }
 0xa1a   :  { %v1493_v52 = vadd.f32 1.0, %v2649_v33  ;;  %v2651_v10 = vpop.eup %2650  ;;  %vm1383_vm2 = vmor %vm1381_vm15, %vm1382_vm12 }
 0xa1b   :  { %v1378_v62 = vsub.f32 1.0, %v1377_v6  ;;  %v1392_v34 = vmul.f32 %v2651_v10, %v1375_v37  ;;  %vm1397_vm8 = vweird.f32 %v2651_v10 }
 0xa1c   :  { %2652 = vrcp.f32 %v1493_v52  ;;  %vm1398_vm5 = vmor %vm1396_vm3, %vm1397_vm8  ;;  %v1520_v30 = vand.u32 2147483648, %v1493_v52  ;;  %v1518_v59 = vand.u32 2147483647, %v1493_v52 }
 0xa1d   :  { %v1379_v13 = vmul.f32 %v2647_v2, %v1378_v62  ;;  %v1393_v47 = vsub.f32 1.0, %v1392_v34 }
 0xa1e   :  { %vm1519_vm14 = vcmp.eq.f32.partialorder %v1518_v59, 8.507059e+37 }
 0xa1f   :  { %v1380_v21 = vadd.f32 %v2647_v2, %v1379_v13  ;;  %v1394_v11 = vmul.f32 %v2651_v10, %v1393_v47 }
 0xa21   :  { %v1384_v7 = vsel %vm1383_vm2, %v2647_v2, %v1380_v21  ;;  %v1395_v6 = vadd.f32 %v2651_v10, %v1394_v11  ;;  %vm1514_vm2 = vweird.f32 %v1493_v52 }
 0xa22   :  { %v2653_v20 = vpop.eup %2652  ;;  %v1389_v9 = vsel %vm1386_vm4, %v1388_v12, %v1384_v7  ;;  %v1521_v7 = vor.u32 1.1754944e-38, %v1520_v30 }
 0xa23   :  { %v1510_v28 = vmul.f32 %v2653_v20, %v1493_v52  ;;  %v1399_v19 = vsel %vm1398_vm5, %v2651_v10, %v1395_v6  ;;  %vm1515_vm15 = vweird.f32 %v2653_v20 }
 0xa24   :  { %vm1516_vm4 = vmor %vm1514_vm2, %vm1515_vm15 }
 0xa25   :  { %v1511_v3 = vsub.f32 1.0, %v1510_v28 }
 0xa27   :  { %v1512_v62 = vmul.f32 %v2653_v20, %v1511_v3 }
 0xa29   :  { %v1513_v21 = vadd.f32 %v2653_v20, %v1512_v62 }
 0xa2b   :  { %v1517_v28 = vsel %vm1516_vm4, %v2653_v20, %v1513_v21  ;;  %v1442_v21 = vmul.f32 %v1389_v9, %v3470_v55 }
 0xa57   :  { %v1529_v22 = vpop.permute.xlu2 %1528 }
 0xa58   :  { %v1534_v53 = vmul.f32 %v1529_v22, %v3542_v44  ;;  %v1402_v22 = vand.u32 2147483648, %v1375_v37 }
 0xa5a   :  { %1538 = vrot.lane.b32.xlu0 %v1534_v53, %s2799_s2  ;;  %v1400_v53 = vand.u32 2147483647, %v1375_v37  ;;  %v1403_v13 = vor.u32 1.1754944e-38, %v1402_v22  ;;  %v1522_v37 = vsel %vm1519_vm14, %v1521_v7, %v1517_v28 }
 0xa5c   :  { %vm1401_vm12 = vcmp.eq.f32.partialorder %v1400_v53, 8.507059e+37 }
 0xa5d   :  { %v1404_v34 = vsel %vm1401_vm12, %v1403_v13, %v1399_v19  ;;  %v1430_v13 = vsub.f32 1.0, %v1389_v9 }
 0xa5e   :  { %v1443_v28 = vmul.f32 %v1404_v34, %v3476_v41 }
 0xa68   :  { %v1411_v33 = vpop.permute.xlu0 %1410 }
 0xa69   :  { %v1416_v57 = vmul.f32 %v1411_v33, %v1389_v9 }
 0xa6b   :  { %1420 = vrot.lane.b32.xlu1 %v1416_v57, %s2799_s2 }
 0xa70   :  { %v1413_v2 = vpop.permute.xlu1 %1412 }
 0xa71   :  { %v1417_v47 = vmul.f32 %v1413_v2, %v1404_v34 }
 0xa73   :  { %1422 = vrot.lane.b32.xlu2 %v1417_v47, %s2799_s2  ;;  %v1431_v47 = vsub.f32 1.0, %v1404_v34  ;;  %v1560_v34 = vmul.f32 %v3542_v44, %v3501_v46 }
 0xa77   :  { %v1531_v11 = vpop.permute.xlu0 %1530 }
 0xa78   :  { %v1535_v12 = vmul.f32 %v1531_v11, %v1522_v37  ;;  %v1548_v11 = vsub.f32 1.0, %v3542_v44 }
 0xa7a   :  { %1540 = vrot.lane.b32.xlu1 %v1535_v12, %s2799_s2 }
 0xacc   :  { %v1539_v10 = vpop.permute.xlu0 %1538 }
 0xacd   :  { %v1423_v33 = vpop.permute.xlu2 %1422  ;;  %v1544_v3 = vadd.f32 %v1539_v10, %v3530_v45 }
 0xace   :  { %v1427_v57 = vadd.f32 %v1423_v33, %v3536_v56  ;;  %v1549_v33 = vsub.f32 1.0, %v1522_v37 }
 0xacf   :  { %2654 = vtanh.f32 %v1544_v3 }
 0xad0   :  { %2656 = vtanh.f32 %v1427_v57 }
 0xad5   :  { %v2655_v52 = vpop.eup %2654 }
 0xad6   :  { %v2657_v6 = vpop.eup %2656  ;;  %1552 = vrot.lane.b32.xlu1 %v2655_v52, %s2800_s24 }
 0xad7   :  { %1436 = vrot.lane.b32.xlu0 %v2657_v6, %s2800_s24  ;;  %v1561_v6 = vmul.f32 %v1522_v37, %v3506_v4 }
 0xadd   :  { %v1421_v20 = vpop.permute.xlu1 %1420 }
 0xade   :  { %v1426_v22 = vadd.f32 %v1421_v20, %v3533_v23 }
 0xae0   :  { %2658 = vtanh.f32 %v1426_v22  ;;  %v178_v22 = vpop.f32.mrf.mxu0 }
 0xae6   :  { %v2659_v53 = vpop.eup %2658 }
 0xae7   :  { %1434 = vrot.lane.b32.xlu2 %v2659_v53, %s2800_s24  ;;  %v179_v53 = vadd.f32 %v3369_v8, %v178_v22 }
 0xae9   :  { %204 = vst.msk [vmem:[#allocation2 + $0x50] sm:$0xff] %vm193_vm1, %v179_v53 }
 0xaec   :  { %v1541_v62 = vpop.permute.xlu1 %1540 }
 0xaed   :  { %v1545_v45 = vadd.f32 %v1541_v62, %v3539_v49  ;;  %v180_v62 = vpop.f32.mrf.mxu0 }
 0xaef   :  { %2660 = vtanh.f32 %v1545_v45 }
 0xaf5   :  { %v2661_v56 = vpop.eup %2660 }
 0xaf6   :  { %1554 = vrot.lane.b32.xlu2 %v2661_v56, %s2800_s24 }
 0xb41   :  { %v1435_v19 = vpop.permute.xlu2 %1434 }
 0xb42   :  { %v1440_v2 = vmul.f32 %v1435_v19, %v1430_v13 }
 0xb44   :  { %v3558_v59 = vadd.f32 %v1442_v21, %v1440_v2 }
 0xb46   :  { %v3568_v10 = vsel %vm1333_vm11, %v3558_v59, %v3470_v55  ;;  %v1448_v58 = vsel %vm1333_vm11, %v3558_v59, 0.0  ;;  %vm4054_vm11 = vcmp.eq.s32.totalorder %v3084_v51, 1 }
 0xb48   :  { %v1553_v23 = vpop.permute.xlu1 %1552 }
 0xb49   :  { %v1437_v30 = vpop.permute.xlu0 %1436  ;;  %v1558_v12 = vmul.f32 %v1553_v23, %v1548_v11  ;;  %v3622_v23 = vld [vmem:[#allocation3 + $0x28] sm:$0xff] }
 0xb4a   :  { %v1441_v7 = vmul.f32 %v1437_v30, %v1431_v47 }
 0xb4b   :  { %v3580_v52 = vadd.f32 %v1560_v34, %v1558_v12 }
 0xb4c   :  { %v3562_v49 = vadd.f32 %v1443_v28, %v1441_v7 }
 0xb4e   :  { %v3574_v9 = vsel %vm1334_vm13, %v3562_v49, %v3476_v41  ;;  %v3590_v41 = vsel %vm1202_vm10, %v3580_v52, %v3501_v46  ;;  %v181_v46 = vadd.f32 %v3369_v8, %v180_v62 }
 0xb4f   :  { %v1573_v3 = vpack.c.bf16 %v3574_v9, %v3568_v10 }
 0xb50   :  { %v1555_v57 = vpop.permute.xlu2 %1554  ;;  %205 = vst.msk [vmem:[#allocation2 + $0x58] sm:$0xff] %vm193_vm1, %v181_v46 }
 0xb51   :  { %v1559_v55 = vmul.f32 %v1555_v57, %v1549_v33  ;;  %1575 = vrot.lane.b32.xlu0 %v1573_v3, %s2800_s24  ;;  %v3627_v3 = vld [vmem:[#allocation3 + $0x20] sm:$0xff] }
 0xb53   :  { %v3584_v20 = vadd.f32 %v1561_v6, %v1559_v55 }
 0xb55   :  { %v3596_v44 = vsel %vm1203_vm9, %v3584_v20, %v3506_v4 }
 0xb56   :  { %v1691_v37 = vpack.c.bf16 %v3596_v44, %v3590_v41 }
 0xb57   :  { %v3625_v33 = vld [vmem:[#allocation2 + $0x58] sm:$0xff] }
 0xb58   :  { %1693 = vrot.lane.b32.xlu1 %v1691_v37, %s2800_s24 }
 0xbc3   :  { %v1576_v45 = vpop.permute.xlu0 %1575 }
 0xbc4   :  { %2467 = vmatmul.msk.bf16.vlgmr.msrb.gmra.mxu2 %vm119_vm0, %v1576_v45 }
 0xbc5   :  { %2042 = vmatpush.bf16.msrb.mxu2 %v3379_v15 }
 0xbc9   :  { %2043 = vmatpush.bf16.msrb.mxu2 %v3385_v16 }
 0xbca   :  { %v1694_v4 = vpop.permute.xlu1 %1693 }
 0xbcb   :  { %2470 = vmatmul.msk.bf16.vlgmr.msrb.gmra.mxu3 %vm119_vm0, %v1694_v4 }
 0xbcc   :  { %2159 = vmatpush.bf16.msrb.mxu3 %v3392_v17 }
 0xbd0   :  { %2160 = vmatpush.bf16.msrb.mxu3 %v3398_v18  ;;  %v3619_v18 = vld [vmem:[#allocation2 + $0x50] sm:$0xff] }
 0xc47   :  { %v1589_v56 = vpop.f32.mrf.mxu2 }
 0xc48   :  { %v1634_v19 = vadd.f32 %v1589_v56, %v2981_v25  ;;  %v1594_v21 = vadd.f32 %v1589_v56, %v3619_v18 }
 0xc4a   :  { %1638 = vrot.lane.b32.xlu2 %v1634_v19, %s2799_s2  ;;  %v2468_v47 = vmul.f32 -1.442695, %v1594_v21 }
 0xc4c   :  { %2662 = vpow2.f32 %v2468_v47 }
 0xc4e   :  { %v1707_v8 = vpop.f32.mrf.mxu3 }
 0xc4f   :  { %v1591_v13 = vpop.f32.mrf.mxu2  ;;  %v1752_v2 = vadd.f32 %v1707_v8, %v2995_v38  ;;  %v1712_v6 = vadd.f32 %v1707_v8, %v3627_v3 }
 0xc50   :  { %v1635_v15 = vadd.f32 %v1591_v13, %v2981_v25  ;;  %v1595_v55 = vadd.f32 %v1591_v13, %v3625_v33 }
 0xc51   :  { %1756 = vrot.lane.b32.xlu1 %v1752_v2, %s2799_s2  ;;  %v2471_v53 = vmul.f32 -1.442695, %v1712_v6 }
 0xc52   :  { %1640 = vrot.lane.b32.xlu0 %v1635_v15, %s2799_s2  ;;  %v2663_v30 = vpop.eup %2662  ;;  %v2469_v62 = vmul.f32 -1.442695, %v1595_v55 }
 0xc53   :  { %v1602_v7 = vadd.f32 1.0, %v2663_v30 }
 0xc55   :  { %2664 = vrcp.f32 %v1602_v7  ;;  %v1615_v56 = vand.u32 2147483648, %v1602_v7  ;;  %vm1609_vm3 = vweird.f32 %v1602_v7  ;;  %v1613_v19 = vand.u32 2147483647, %v1602_v7 }
 0xc56   :  { %v1709_v16 = vpop.f32.mrf.mxu3 }
 0xc57   :  { %v1753_v17 = vadd.f32 %v1709_v16, %v2995_v38  ;;  %v1713_v28 = vadd.f32 %v1709_v16, %v3622_v23  ;;  %v1616_v13 = vor.u32 1.1754944e-38, %v1615_v56  ;;  %vm1614_vm5 = vcmp.eq.f32.partialorder %v1613_v19, 8.507059e+37 }
 0xc59   :  { %1758 = vrot.lane.b32.xlu2 %v1753_v17, %s2799_s2  ;;  %v2472_v11 = vmul.f32 -1.442695, %v1713_v28 }
 0xc5b   :  { %2666 = vpow2.f32 %v2472_v11  ;;  %v2665_v12 = vpop.eup %2664 }
 0xc5c   :  { %v1605_v57 = vmul.f32 %v2665_v12, %v1602_v7  ;;  %vm1610_vm8 = vweird.f32 %v2665_v12 }
 0xc5d   :  { %vm1611_vm14 = vmor %vm1609_vm3, %vm1610_vm8 }
 0xc5e   :  { %v1606_v22 = vsub.f32 1.0, %v1605_v57 }
 0xc60   :  { %v1607_v46 = vmul.f32 %v2665_v12, %v1606_v22 }
 0xc61   :  { %v2667_v34 = vpop.eup %2666 }
 0xc62   :  { %v1721_v37 = vadd.f32 1.0, %v2667_v34  ;;  %v1608_v4 = vadd.f32 %v2665_v12, %v1607_v46 }
 0xc64   :  { %2668 = vrcp.f32 %v1721_v37  ;;  %v1612_v16 = vsel %vm1611_vm14, %v2665_v12, %v1608_v4  ;;  %v1748_v6 = vand.u32 2147483648, %v1721_v37  ;;  %vm1742_vm15 = vweird.f32 %v1721_v37 }
 0xc65   :  { %2670 = vpow2.f32 %v2471_v53  ;;  %v3631_v30 = vsel %vm1614_vm5, %v1616_v13, %v1612_v16  ;;  %v1746_v55 = vand.u32 2147483647, %v1721_v37 }
 0xc66   :  { %2672 = vpow2.f32 %v2469_v62  ;;  %v1749_v62 = vor.u32 1.1754944e-38, %v1748_v6 }
 0xc67   :  { %vm1747_vm4 = vcmp.eq.f32.partialorder %v1746_v55, 8.507059e+37 }
 0xc6a   :  { %v2669_v45 = vpop.eup %2668 }
 0xc6b   :  { %v2671_v2 = vpop.eup %2670  ;;  %v1738_v15 = vmul.f32 %v2669_v45, %v1721_v37  ;;  %vm1743_vm12 = vweird.f32 %v2669_v45 }
 0xc6c   :  { %v2673_v8 = vpop.eup %2672  ;;  %v1720_v17 = vadd.f32 1.0, %v2671_v2  ;;  %vm1744_vm2 = vmor %vm1742_vm15, %vm1743_vm12 }
 0xc6d   :  { %v1603_v21 = vadd.f32 1.0, %v2673_v8  ;;  %v1739_v28 = vsub.f32 1.0, %v1738_v15 }
 0xc6e   :  { %2674 = vrcp.f32 %v1720_v17  ;;  %v1733_v37 = vand.u32 2147483648, %v1720_v17  ;;  %vm1727_vm14 = vweird.f32 %v1720_v17 }
 0xc6f   :  { %2676 = vrcp.f32 %v1603_v21  ;;  %v1740_v7 = vmul.f32 %v2669_v45, %v1739_v28  ;;  %v1630_v28 = vand.u32 2147483648, %v1603_v21  ;;  %vm1624_vm12 = vweird.f32 %v1603_v21 }
 0xc71   :  { %v1741_v34 = vadd.f32 %v2669_v45, %v1740_v7  ;;  %v1631_v55 = vor.u32 1.1754944e-38, %v1630_v28 }
 0xc73   :  { %v1745_v22 = vsel %vm1744_vm2, %v2669_v45, %v1741_v34  ;;  %v1731_v45 = vand.u32 2147483647, %v1720_v17  ;;  %v1734_v34 = vor.u32 1.1754944e-38, %v1733_v37 }
 0xc74   :  { %v2675_v57 = vpop.eup %2674  ;;  %v3635_v4 = vsel %vm1747_vm4, %v1749_v62, %v1745_v22 }
 0xc75   :  { %v2677_v12 = vpop.eup %2676  ;;  %v1723_v53 = vmul.f32 %v2675_v57, %v1720_v17  ;;  %vm1728_vm8 = vweird.f32 %v2675_v57  ;;  %vm1732_vm2 = vcmp.eq.f32.partialorder %v1731_v45, 8.507059e+37  ;;  %v1658_v45 = vsub.f32 1.0, %v3631_v30 }
 0xc76   :  { %v1620_v46 = vmul.f32 %v2677_v12, %v1603_v21  ;;  %vm1625_vm3 = vweird.f32 %v2677_v12  ;;  %vm1729_vm5 = vmor %vm1727_vm14, %vm1728_vm8  ;;  %vm4027_vm8 = vcmp.eq.s32.totalorder %v3311_v29, 1 }
 0xc77   :  { %v1724_v2 = vsub.f32 1.0, %v1723_v53  ;;  %vm1626_vm15 = vmor %vm1624_vm12, %vm1625_vm3  ;;  %vm4028_vm3 = vcmp.eq.s32.totalorder %v3309_v26, 1 }
 0xc78   :  { %v1621_v15 = vsub.f32 1.0, %v1620_v46 }
 0xc79   :  { %v1725_v8 = vmul.f32 %v2675_v57, %v1724_v2 }
 0xc7a   :  { %v1622_v16 = vmul.f32 %v2677_v12, %v1621_v15 }
 0xc7b   :  { %v1726_v13 = vadd.f32 %v2675_v57, %v1725_v8 }
 0xc7d   :  { %v1730_v7 = vsel %vm1729_vm5, %v2675_v57, %v1726_v13 }
 0xc7e   :  { %v1735_v53 = vsel %vm1732_vm2, %v1734_v34, %v1730_v7 }
 0xca4   :  { %v1639_v47 = vpop.permute.xlu2 %1638 }
 0xca5   :  { %v1644_v11 = vmul.f32 %v1639_v47, %v3631_v30  ;;  %v1623_v47 = vadd.f32 %v2677_v12, %v1622_v16 }
 0xca7   :  { %1648 = vrot.lane.b32.xlu0 %v1644_v11, %s2799_s2  ;;  %v1628_v11 = vand.u32 2147483647, %v1603_v21  ;;  %v1627_v6 = vsel %vm1626_vm15, %v2677_v12, %v1623_v47 }
 0xca9   :  { %vm1629_vm4 = vcmp.eq.f32.partialorder %v1628_v11, 8.507059e+37 }
 0xcb3   :  { %v1759_v56 = vpop.permute.xlu2 %1758 }
 0xcb4   :  { %v1763_v19 = vmul.f32 %v1759_v56, %v3635_v4  ;;  %v1632_v56 = vsel %vm1629_vm4, %v1631_v55, %v1627_v6 }
 0xcb5   :  { %v1659_v11 = vsub.f32 1.0, %v1632_v56  ;;  %v1671_v55 = vmul.f32 %v1632_v56, %v3574_v9 }
 0xcb6   :  { %1768 = vrot.lane.b32.xlu0 %v1763_v19, %s2799_s2 }
 0xcc3   :  { %v1757_v22 = vpop.permute.xlu1 %1756 }
 0xcc4   :  { %v1762_v62 = vmul.f32 %v1757_v22, %v1735_v53  ;;  %v1641_v46 = vpop.permute.xlu0 %1640 }
 0xcc5   :  { %v1645_v19 = vmul.f32 %v1641_v46, %v1632_v56 }
 0xcc6   :  { %1766 = vrot.lane.b32.xlu2 %v1762_v62, %s2799_s2 }
 0xcc7   :  { %1650 = vrot.lane.b32.xlu1 %v1645_v19, %s2799_s2 }
 0xd19   :  { %v1649_v17 = vpop.permute.xlu0 %1648 }
 0xd1a   :  { %v1654_v21 = vadd.f32 %v1649_v17, %v3619_v18  ;;  %v1788_v17 = vmul.f32 %v1735_v53, %v3590_v41 }
 0xd1c   :  { %2678 = vtanh.f32 %v1654_v21  ;;  %v1777_v21 = vsub.f32 1.0, %v3635_v4 }
 0xd20   :  { %v1767_v57 = vpop.permute.xlu2 %1766 }
 0xd21   :  { %v1772_v12 = vadd.f32 %v1767_v57, %v3627_v3 }
 0xd22   :  { %v2679_v2 = vpop.eup %2678 }
 0xd23   :  { %2680 = vtanh.f32 %v1772_v12  ;;  %1662 = vrot.lane.b32.xlu1 %v2679_v2, %s2800_s24 }
 0xd28   :  { %v1769_v15 = vpop.permute.xlu0 %1768 }
 0xd29   :  { %v2681_v8 = vpop.eup %2680  ;;  %v1773_v16 = vadd.f32 %v1769_v15, %v3622_v23  ;;  %v1670_v23 = vmul.f32 %v3631_v30, %v3568_v10 }
 0xd2a   :  { %1780 = vrot.lane.b32.xlu0 %v2681_v8, %s2800_s24 }
 0xd2b   :  { %2682 = vtanh.f32 %v1773_v16  ;;  %v183_v16 = vpop.f32.mrf.mxu0 }
 0xd31   :  { %v2683_v13 = vpop.eup %2682 }
 0xd32   :  { %1782 = vrot.lane.b32.xlu1 %v2683_v13, %s2800_s24 }
 0xd39   :  { %v1651_v37 = vpop.permute.xlu1 %1650 }
 0xd3a   :  { %v1655_v18 = vadd.f32 %v1651_v37, %v3625_v33  ;;  %v1776_v33 = vsub.f32 1.0, %v1735_v53 }
 0xd3c   :  { %2684 = vtanh.f32 %v1655_v18 }
 0xd42   :  { %v2685_v47 = vpop.eup %2684 }
 0xd43   :  { %1664 = vrot.lane.b32.xlu2 %v2685_v47, %s2800_s24 }
 0xd95   :  { %v1663_v3 = vpop.permute.xlu1 %1662 }
 0xd96   :  { %v1668_v28 = vmul.f32 %v1663_v3, %v1658_v45 }
 0xd98   :  { %v3652_v34 = vadd.f32 %v1670_v23, %v1668_v28 }
 0xd9a   :  { %v3661_v19 = vsel %vm1079_vm6, %v3652_v34, %v3568_v10  ;;  %v1789_v10 = vmul.f32 %v3635_v4, %v3596_v44 }
 0xd9c   :  { %v1781_v6 = vpop.permute.xlu0 %1780 }
 0xd9d   :  { %v1665_v7 = vpop.permute.xlu2 %1664  ;;  %v1786_v46 = vmul.f32 %v1781_v6, %v1776_v33 }
 0xd9e   :  { %v1669_v22 = vmul.f32 %v1665_v7, %v1659_v11 }
 0xd9f   :  { %v3673_v12 = vadd.f32 %v1788_v17, %v1786_v46 }
 0xda0   :  { %v3655_v62 = vadd.f32 %v1671_v55, %v1669_v22 }
 0xda2   :  { %v3667_v30 = vsel %vm1080_vm7, %v3655_v62, %v3574_v9  ;;  %v3684_v9 = vsel %vm4027_vm8, %v3673_v12, %v3590_v41  ;;  %v3699_v41 = vld [vmem:[%s4002_s4] ss:$0 sm:$0xff] }
 0xda3   :  { %v1801_v56 = vpack.c.bf16 %v3667_v30, %v3661_v19  ;;  %v184_v13 = vadd.f32 %v3699_v41, %v183_v16 }
 0xda4   :  { %v1783_v57 = vpop.permute.xlu1 %1782 }
 0xda5   :  { %1803 = vrot.lane.b32.xlu2 %v1801_v56, %s2800_s24  ;;  %v1787_v2 = vmul.f32 %v1783_v57, %v1777_v21  ;;  %206 = vst.msk [vmem:[#allocation2 + $0x60] sm:$0xff] %vm193_vm1, %v184_v13 }
 0xda7   :  { %v3678_v15 = vadd.f32 %v1789_v10, %v1787_v2 }
 0xda9   :  { %4026 = vst [vmem:[#allocation11_spill] sm:$0xff] %v3678_v15  ;;  %v3690_v53 = vsel %vm4028_vm3, %v3678_v15, %v3596_v44  ;;  %v185_v44 = vpop.f32.mrf.mxu0 }
 0xdaa   :  { %v1919_v8 = vpack.c.bf16 %v3690_v53, %v3684_v9  ;;  %v186_v37 = vadd.f32 %v3699_v41, %v185_v44 }
 0xdac   :  { %1921 = vrot.lane.b32.xlu0 %v1919_v8, %s2800_s24  ;;  %207 = vst.msk [vmem:[#allocation2 + $0x68] sm:$0xff] %vm193_vm1, %v186_v37  ;;  %v3717_v46 = vld [vmem:[#allocation2 + $0x60] sm:$0xff] }
 0xdb3   :  { %v3714_v55 = vld [vmem:[#allocation2 + $0x68] sm:$0xff] }
 0xdff   :  { %v1804_v4 = vpop.permute.xlu2 %1803 }
 0xe00   :  { %2473 = vmatmul.msk.bf16.vlgmr.msra.gmra.mxu2 %vm119_vm0, %v1804_v4 }
 0xe1e   :  { %v1922_v18 = vpop.permute.xlu0 %1921 }
 0xe1f   :  { %2476 = vmatmul.msk.bf16.vlgmr.msra.gmra.mxu3 %vm119_vm0, %v1922_v18 }
 0xe83   :  { %v1817_v47 = vpop.f32.mrf.mxu2 }
 0xe84   :  { %v1862_v3 = vadd.f32 %v1817_v47, %v2981_v25  ;;  %v1822_v56 = vadd.f32 %v1817_v47, %v3717_v46 }
 0xe86   :  { %1866 = vrot.lane.b32.xlu1 %v1862_v3, %s2799_s2  ;;  %v2474_v57 = vmul.f32 -1.442695, %v1822_v56 }
 0xe8b   :  { %v1819_v45 = vpop.f32.mrf.mxu2 }
 0xe8c   :  { %v1863_v28 = vadd.f32 %v1819_v45, %v2981_v25  ;;  %v1823_v22 = vadd.f32 %v1819_v45, %v3714_v55  ;;  %v3720_v45 = vld [vmem:[#allocation3 + $0x10] sm:$0xff] }
 0xe8e   :  { %1868 = vrot.lane.b32.xlu2 %v1863_v28, %s2799_s2  ;;  %v2475_v33 = vmul.f32 -1.442695, %v1823_v22 }
 0xe90   :  { %2686 = vpow2.f32 %v2475_v33 }
 0xe96   :  { %v2687_v17 = vpop.eup %2686 }
 0xe97   :  { %v1831_v21 = vadd.f32 1.0, %v2687_v17 }
 0xe99   :  { %2688 = vrcp.f32 %v1831_v21  ;;  %v1858_v18 = vand.u32 2147483648, %v1831_v21  ;;  %vm1852_vm5 = vweird.f32 %v1831_v21  ;;  %v1856_v3 = vand.u32 2147483647, %v1831_v21 }
 0xe9a   :  { %2690 = vpow2.f32 %v2474_v57 }
 0xe9b   :  { %vm1857_vm15 = vcmp.eq.f32.partialorder %v1856_v3, 8.507059e+37 }
 0xe9f   :  { %v2689_v10 = vpop.eup %2688 }
 0xea0   :  { %v2691_v2 = vpop.eup %2690  ;;  %v1848_v8 = vmul.f32 %v2689_v10, %v1831_v21  ;;  %vm1853_vm14 = vweird.f32 %v2689_v10 }
 0xea1   :  { %v1830_v4 = vadd.f32 1.0, %v2691_v2  ;;  %vm1854_vm12 = vmor %vm1852_vm5, %vm1853_vm14  ;;  %v3727_v2 = vld [vmem:[#allocation3 + $0x18] sm:$0xff] }
 0xea2   :  { %v1935_v23 = vpop.f32.mrf.mxu3  ;;  %v1849_v16 = vsub.f32 1.0, %v1848_v8 }
 0xea3   :  { %v1980_v11 = vadd.f32 %v1935_v23, %v2995_v38  ;;  %2692 = vrcp.f32 %v1830_v4  ;;  %vm1837_vm4 = vweird.f32 %v1830_v4 }
 0xea4   :  { %v1850_v13 = vmul.f32 %v2689_v10, %v1849_v16  ;;  %v1843_v16 = vand.u32 2147483648, %v1830_v4 }
 0xea5   :  { %1984 = vrot.lane.b32.xlu0 %v1980_v11, %s2799_s2  ;;  %v1940_v11 = vadd.f32 %v1935_v23, %v3720_v45 }
 0xea6   :  { %v1851_v44 = vadd.f32 %v2689_v10, %v1850_v13  ;;  %v1841_v13 = vand.u32 2147483647, %v1830_v4  ;;  %v1844_v3 = vor.u32 1.1754944e-38, %v1843_v16 }
 0xea7   :  { %v2477_v57 = vmul.f32 -1.442695, %v1940_v11 }
 0xea8   :  { %v1855_v47 = vsel %vm1854_vm12, %v2689_v10, %v1851_v44  ;;  %vm1842_vm3 = vcmp.eq.f32.partialorder %v1841_v13, 8.507059e+37 }
 0xea9   :  { %v2693_v37 = vpop.eup %2692  ;;  %2694 = vpow2.f32 %v2477_v57 }
 0xeaa   :  { %v1937_v7 = vpop.f32.mrf.mxu3  ;;  %v1833_v28 = vmul.f32 %v2693_v37, %v1830_v4  ;;  %vm1838_vm2 = vweird.f32 %v2693_v37 }
 0xeab   :  { %v1981_v6 = vadd.f32 %v1937_v7, %v2995_v38  ;;  %v1941_v10 = vadd.f32 %v1937_v7, %v3727_v2  ;;  %vm1839_vm8 = vmor %vm1837_vm4, %vm1838_vm2 }
 0xeac   :  { %v1834_v56 = vsub.f32 1.0, %v1833_v28 }
 0xead   :  { %1986 = vrot.lane.b32.xlu1 %v1981_v6, %s2799_s2  ;;  %v1859_v6 = vor.u32 1.1754944e-38, %v1858_v18  ;;  %v2478_v23 = vmul.f32 -1.442695, %v1941_v10 }
 0xeae   :  { %v1835_v21 = vmul.f32 %v2693_v37, %v1834_v56 }
 0xeaf   :  { %v3723_v33 = vsel %vm1857_vm15, %v1859_v6, %v1855_v47  ;;  %v2695_v44 = vpop.eup %2694  ;;  %2696 = vpow2.f32 %v2478_v23 }
 0xeb0   :  { %v1836_v8 = vadd.f32 %v2693_v37, %v1835_v21  ;;  %v1948_v47 = vadd.f32 1.0, %v2695_v44 }
 0xeb2   :  { %v1840_v18 = vsel %vm1839_vm8, %v2693_v37, %v1836_v8  ;;  %2698 = vrcp.f32 %v1948_v47  ;;  %v1961_v23 = vand.u32 2147483648, %v1948_v47  ;;  %vm1955_vm5 = vweird.f32 %v1948_v47 }
 0xeb3   :  { %v3730_v28 = vsel %vm1842_vm3, %v1844_v3, %v1840_v18  ;;  %v1959_v16 = vand.u32 2147483647, %v1948_v47 }
 0xeb4   :  { %v1962_v18 = vor.u32 1.1754944e-38, %v1961_v23 }
 0xeb5   :  { %v2697_v7 = vpop.eup %2696  ;;  %vm1960_vm15 = vcmp.eq.f32.partialorder %v1959_v16, 8.507059e+37 }
 0xee8   :  { %v1869_v22 = vpop.permute.xlu2 %1868 }
 0xee9   :  { %v1873_v17 = vmul.f32 %v1869_v22, %v3723_v33  ;;  %v1949_v22 = vadd.f32 1.0, %v2697_v7 }
 0xeeb   :  { %1878 = vrot.lane.b32.xlu0 %v1873_v17, %s2799_s2  ;;  %v2699_v17 = vpop.eup %2698  ;;  %2700 = vrcp.f32 %v1949_v22  ;;  %vm1970_vm4 = vweird.f32 %v1949_v22 }
 0xeec   :  { %v1951_v4 = vmul.f32 %v2699_v17, %v1948_v47  ;;  %vm1956_vm14 = vweird.f32 %v2699_v17 }
 0xeed   :  { %vm1957_vm12 = vmor %vm1955_vm5, %vm1956_vm14  ;;  %vm4029_vm14 = vcmp.eq.s32.totalorder %v3217_v39, 1  ;;  %vm4030_vm5 = vcmp.eq.s32.totalorder %v3226_v60, 1 }
 0xeee   :  { %v1952_v56 = vsub.f32 1.0, %v1951_v4  ;;  %v1976_v4 = vand.u32 2147483648, %v1949_v22 }
 0xef0   :  { %v1953_v37 = vmul.f32 %v2699_v17, %v1952_v56  ;;  %v1974_v56 = vand.u32 2147483647, %v1949_v22 }
 0xef1   :  { %v2701_v57 = vpop.eup %2700 }
 0xef2   :  { %v1966_v21 = vmul.f32 %v2701_v57, %v1949_v22  ;;  %v1954_v10 = vadd.f32 %v2699_v17, %v1953_v37  ;;  %vm1971_vm2 = vweird.f32 %v2701_v57  ;;  %vm1975_vm3 = vcmp.eq.f32.partialorder %v1974_v56, 8.507059e+37 }
 0xef3   :  { %vm1972_vm8 = vmor %vm1970_vm4, %vm1971_vm2 }
 0xef4   :  { %v1967_v8 = vsub.f32 1.0, %v1966_v21  ;;  %v1958_v13 = vsel %vm1957_vm12, %v2699_v17, %v1954_v10  ;;  %v1977_v21 = vor.u32 1.1754944e-38, %v1976_v4  ;;  %v1898_v4 = vmul.f32 %v3730_v28, %v3661_v19 }
 0xef5   :  { %vm4032_vm12 = vcmp.eq.s32.totalorder %v3192_v35, 1 }
 0xef6   :  { %v1968_v44 = vmul.f32 %v2701_v57, %v1967_v8 }
 0xef8   :  { %v1867_v11 = vpop.permute.xlu1 %1866  ;;  %v1969_v7 = vadd.f32 %v2701_v57, %v1968_v44 }
 0xef9   :  { %v1872_v6 = vmul.f32 %v1867_v11, %v3730_v28  ;;  %v1963_v11 = vsel %vm1960_vm15, %v1962_v18, %v1958_v13  ;;  %vm4033_vm15 = vcmp.eq.s32.totalorder %v3190_v32, 1 }
 0xefa   :  { %v1973_v37 = vsel %vm1972_vm8, %v2701_v57, %v1969_v7 }
 0xefb   :  { %1876 = vrot.lane.b32.xlu2 %v1872_v6, %s2799_s2  ;;  %v1978_v47 = vsel %vm1975_vm3, %v1977_v21, %v1973_v37  ;;  %v1899_v21 = vmul.f32 %v3723_v33, %v3667_v30 }
 0xf17   :  { %v1985_v3 = vpop.permute.xlu0 %1984 }
 0xf18   :  { %v1990_v6 = vmul.f32 %v1985_v3, %v1963_v11 }
 0xf1a   :  { %1994 = vrot.lane.b32.xlu1 %v1990_v6, %s2799_s2  ;;  %v1886_v6 = vsub.f32 1.0, %v3730_v28 }
 0xf1f   :  { %v1987_v15 = vpop.permute.xlu1 %1986 }
 0xf20   :  { %v1991_v17 = vmul.f32 %v1987_v15, %v1978_v47 }
 0xf22   :  { %1996 = vrot.lane.b32.xlu2 %v1991_v17, %s2799_s2 }
 0xf55   :  { %v1877_v10 = vpop.permute.xlu2 %1876 }
 0xf56   :  { %v1882_v8 = vadd.f32 %v1877_v10, %v3717_v46 }
 0xf58   :  { %2702 = vtanh.f32 %v1882_v8 }
 0xf5d   :  { %v1879_v23 = vpop.permute.xlu0 %1878 }
 0xf5e   :  { %v2703_v16 = vpop.eup %2702  ;;  %v1883_v13 = vadd.f32 %v1879_v23, %v3714_v55  ;;  %v2004_v23 = vsub.f32 1.0, %v1963_v11 }
 0xf5f   :  { %1890 = vrot.lane.b32.xlu0 %v2703_v16, %s2800_s24 }
 0xf60   :  { %2704 = vtanh.f32 %v1883_v13  ;;  %v2016_v13 = vmul.f32 %v1963_v11, %v3684_v9 }
 0xf66   :  { %v2705_v22 = vpop.eup %2704 }
 0xf67   :  { %1892 = vrot.lane.b32.xlu1 %v2705_v22, %s2800_s24  ;;  %v2005_v22 = vsub.f32 1.0, %v1978_v47 }
 0xf7c   :  { %v1997_v57 = vpop.permute.xlu2 %1996 }
 0xf7d   :  { %v2001_v44 = vadd.f32 %v1997_v57, %v3727_v2  ;;  %v1887_v2 = vsub.f32 1.0, %v3723_v33 }
 0xf7f   :  { %2706 = vtanh.f32 %v2001_v44  ;;  %v2017_v44 = vmul.f32 %v1978_v47, %v3690_v53  ;;  %v188_v47 = vpop.f32.mrf.mxu0 }
 0xf85   :  { %v2707_v15 = vpop.eup %2706 }
 0xf86   :  { %2010 = vrot.lane.b32.xlu0 %v2707_v15, %s2800_s24 }
 0xf8c   :  { %v1995_v18 = vpop.permute.xlu1 %1994 }
 0xf8d   :  { %v2000_v46 = vadd.f32 %v1995_v18, %v3720_v45 }
 0xf8f   :  { %2708 = vtanh.f32 %v2000_v46 }
 0xf95   :  { %v2709_v3 = vpop.eup %2708 }
 0xf96   :  { %2008 = vrot.lane.b32.xlu2 %v2709_v3, %s2800_s24  ;;  %v189_v3 = vadd.f32 %v3699_v41, %v188_v47 }
 0xf98   :  { %208 = vst.msk [vmem:[#allocation2 + $0x70] sm:$0xff] %vm193_vm1, %v189_v3 }
 0xfd1   :  { %v1891_v55 = vpop.permute.xlu0 %1890 }
 0xfd2   :  { %v1896_v7 = vmul.f32 %v1891_v55, %v1886_v6  ;;  %v190_v55 = vpop.f32.mrf.mxu0 }
 0xfd4   :  { %v3748_v37 = vadd.f32 %v1898_v4, %v1896_v7 }
 0xfd6   :  { %v3758_v10 = vsel %vm4029_vm14, %v3748_v37, %v3661_v19 }
 0xfd9   :  { %v1893_v56 = vpop.permute.xlu1 %1892 }
 0xfda   :  { %v1897_v45 = vmul.f32 %v1893_v56, %v1887_v2 }
 0xfdc   :  { %v3752_v17 = vadd.f32 %v1899_v21, %v1897_v45 }
 0xfde   :  { %v3764_v28 = vsel %vm4030_vm5, %v3752_v17, %v3667_v30 }
 0xfdf   :  { %v2029_v8 = vpack.c.bf16 %v3764_v28, %v3758_v10 }
 0xfe1   :  { %2031 = vrot.lane.b32.xlu1 %v2029_v8, %s2800_s24 }
 0xff0   :  { %v2009_v33 = vpop.permute.xlu2 %2008 }
 0xff1   :  { %v2014_v16 = vmul.f32 %v2009_v33, %v2004_v23  ;;  %v3804_v33 = vld [vmem:[#allocation3] sm:$0xff] }
 0xff3   :  { %v3770_v19 = vadd.f32 %v2016_v13, %v2014_v16 }
 0xff5   :  { %4031 = vst [vmem:[#allocation12_spill] sm:$0xff] %v3770_v19  ;;  %v3779_v30 = vsel %vm4032_vm12, %v3770_v19, %v3684_v9  ;;  %v191_v9 = vadd.f32 %v3699_v41, %v190_v55 }
 0xff7   :  { %209 = vst.msk [vmem:[#allocation2 + $0x78] sm:$0xff] %vm193_vm1, %v191_v9  ;;  %v3813_v9 = vld [vmem:[#allocation3 + $0x8] sm:$0xff] }
 0xff8   :  { %v2011_v57 = vpop.permute.xlu0 %2010 }
 0xff9   :  { %v2015_v15 = vmul.f32 %v2011_v57, %v2005_v22  ;;  %v3807_v22 = vld [vmem:[#allocation2 + $0x70] sm:$0xff] }
 0xffb   :  { %v3773_v18 = vadd.f32 %v2017_v44, %v2015_v15 }
 0xffd   :  { %v3785_v11 = vsel %vm4033_vm15, %v3773_v18, %v3690_v53 }
 0xffe   :  { %v2146_v46 = vpack.c.bf16 %v3785_v11, %v3779_v30  ;;  %v3810_v15 = vld [vmem:[#allocation2 + $0x78] sm:$0xff] }
0x1000   :  { %2148 = vrot.lane.b32.xlu2 %v2146_v46, %s2800_s24 }
0x1053   :  { %v2032_v6 = vpop.permute.xlu1 %2031 }
0x1054   :  { %2479 = vmatmul.msk.bf16.vlgmr.msrb.gmra.mxu2 %vm119_vm0, %v2032_v6 }
0x105a   :  { %v2149_v53 = vpop.permute.xlu2 %2148 }
0x105b   :  { %2482 = vmatmul.msk.bf16.vlgmr.msrb.gmra.mxu3 %vm119_vm0, %v2149_v53 }
0x10d7   :  { %v2045_v7 = vpop.f32.mrf.mxu2 }
0x10d8   :  { %v2090_v4 = vadd.f32 %v2045_v7, %v2981_v25 }
0x10da   :  { %2094 = vrot.lane.b32.xlu0 %v2090_v4, %s2799_s2 }
0x10de   :  { %v2162_v2 = vpop.f32.mrf.mxu3 }
0x10df   :  { %v2047_v56 = vpop.f32.mrf.mxu2  ;;  %v2207_v21 = vadd.f32 %v2162_v2, %v2995_v38  ;;  %v2167_v23 = vadd.f32 %v2162_v2, %v3804_v33 }
0x10e0   :  { %v2091_v45 = vadd.f32 %v2047_v56, %v2981_v25  ;;  %v2050_v25 = vadd.f32 %v2045_v7, %v3807_v22 }
0x10e1   :  { %2211 = vrot.lane.b32.xlu2 %v2207_v21, %s2799_s2  ;;  %v2483_v16 = vmul.f32 -1.442695, %v2167_v23 }
0x10e2   :  { %2096 = vrot.lane.b32.xlu1 %v2091_v45, %s2799_s2  ;;  %v2480_v44 = vmul.f32 -1.442695, %v2050_v25 }
0x10e3   :  { %2710 = vpow2.f32 %v2483_v16 }
0x10e6   :  { %v2164_v41 = vpop.f32.mrf.mxu3 }
0x10e7   :  { %v2208_v8 = vadd.f32 %v2164_v41, %v2995_v38  ;;  %v2051_v38 = vadd.f32 %v2047_v56, %v3810_v15  ;;  %v2168_v6 = vadd.f32 %v2164_v41, %v3813_v9 }
0x10e9   :  { %2213 = vrot.lane.b32.xlu0 %v2208_v8, %s2799_s2  ;;  %v2711_v13 = vpop.eup %2710  ;;  %v2481_v47 = vmul.f32 -1.442695, %v2051_v38  ;;  %v2484_v7 = vmul.f32 -1.442695, %v2168_v6 }
0x10ea   :  { %v2175_v57 = vadd.f32 1.0, %v2711_v13 }
0x10ec   :  { %2712 = vrcp.f32 %v2175_v57  ;;  %v2188_v56 = vand.u32 2147483648, %v2175_v57  ;;  %vm2182_vm2 = vweird.f32 %v2175_v57  ;;  %v2186_v16 = vand.u32 2147483647, %v2175_v57 }
0x10ed   :  { %2714 = vpow2.f32 %v2480_v44 }
0x10ee   :  { %2716 = vpow2.f32 %v2481_v47  ;;  %v2189_v41 = vor.u32 1.1754944e-38, %v2188_v56  ;;  %vm2187_vm8 = vcmp.eq.f32.partialorder %v2186_v16, 8.507059e+37 }
0x10f2   :  { %v2713_v46 = vpop.eup %2712 }
0x10f3   :  { %v2178_v3 = vmul.f32 %v2713_v46, %v2175_v57  ;;  %v2715_v55 = vpop.eup %2714  ;;  %vm2183_vm1 = vweird.f32 %v2713_v46 }
0x10f4   :  { %v2058_v53 = vadd.f32 1.0, %v2715_v55  ;;  %v2717_v21 = vpop.eup %2716  ;;  %vm2184_vm4 = vmor %vm2182_vm2, %vm2183_vm1 }
0x10f5   :  { %v2179_v4 = vsub.f32 1.0, %v2178_v3  ;;  %v2059_v45 = vadd.f32 1.0, %v2717_v21 }
0x10f6   :  { %2718 = vrcp.f32 %v2058_v53  ;;  %vm2065_vm14 = vweird.f32 %v2058_v53  ;;  %v2069_v56 = vand.u32 2147483647, %v2058_v53 }
0x10f7   :  { %v2180_v2 = vmul.f32 %v2713_v46, %v2179_v4  ;;  %2720 = vpow2.f32 %v2484_v7  ;;  %vm2080_vm1 = vweird.f32 %v2059_v45 }
0x10f8   :  { %2722 = vrcp.f32 %v2059_v45  ;;  %vm2070_vm12 = vcmp.eq.f32.partialorder %v2069_v56, 8.507059e+37 }
0x10f9   :  { %v2181_v8 = vadd.f32 %v2713_v46, %v2180_v2 }
0x10fb   :  { %v2185_v25 = vsel %vm2184_vm4, %v2713_v46, %v2181_v8  ;;  %v2071_v8 = vand.u32 2147483648, %v2058_v53 }
0x10fc   :  { %v2719_v23 = vpop.eup %2718  ;;  %v3816_v3 = vsel %vm2187_vm8, %v2189_v41, %v2185_v25 }
0x10fd   :  { %v2721_v13 = vpop.eup %2720  ;;  %v2061_v44 = vmul.f32 %v2719_v23, %v2058_v53  ;;  %vm2066_vm3 = vweird.f32 %v2719_v23  ;;  %v2072_v41 = vor.u32 1.1754944e-38, %v2071_v8 }
0x10fe   :  { %v2176_v38 = vadd.f32 1.0, %v2721_v13  ;;  %v2723_v4 = vpop.eup %2722  ;;  %vm2067_vm5 = vmor %vm2065_vm14, %vm2066_vm3 }
0x10ff   :  { %v2062_v6 = vsub.f32 1.0, %v2061_v44  ;;  %v2076_v57 = vmul.f32 %v2723_v4, %v2059_v45  ;;  %vm2081_vm15 = vweird.f32 %v2723_v4 }
0x1100   :  { %2724 = vrcp.f32 %v2176_v38  ;;  %vm2082_vm2 = vmor %vm2080_vm1, %vm2081_vm15  ;;  %vm2197_vm3 = vweird.f32 %v2176_v38  ;;  %vm4035_vm15 = vcmp.eq.s32.totalorder %v3217_v39, 1  ;;  %vm4036_vm1 = vcmp.eq.s32.totalorder %v3311_v29, 1 }
0x1101   :  { %v2063_v7 = vmul.f32 %v2719_v23, %v2062_v6  ;;  %v2077_v46 = vsub.f32 1.0, %v2076_v57  ;;  %v2084_v57 = vand.u32 2147483647, %v2059_v45  ;;  %v1676_v39 = vsel %vm1079_vm6, %v3652_v34, 0.0 }
0x1102   :  { %vm4038_vm6 = vcmp.eq.s32.totalorder %v3115_v5, 1 }
0x1103   :  { %v2064_v21 = vadd.f32 %v2719_v23, %v2063_v7  ;;  %v2078_v25 = vmul.f32 %v2723_v4, %v2077_v46  ;;  %v2086_v7 = vand.u32 2147483648, %v2059_v45  ;;  %vm2085_vm4 = vcmp.eq.f32.partialorder %v2084_v57, 8.507059e+37 }
0x1105   :  { %v2068_v13 = vsel %vm2067_vm5, %v2719_v23, %v2064_v21  ;;  %v2079_v19 = vadd.f32 %v2723_v4, %v2078_v25  ;;  %v2087_v23 = vor.u32 1.1754944e-38, %v2086_v7 }
0x1106   :  { %v2725_v2 = vpop.eup %2724 }
0x1107   :  { %v2193_v16 = vmul.f32 %v2725_v2, %v2176_v38  ;;  %v2083_v61 = vsel %vm2082_vm2, %v2723_v4, %v2079_v19  ;;  %vm2198_vm8 = vweird.f32 %v2725_v2  ;;  %vm4039_vm2 = vcmp.eq.s32.totalorder %v3084_v51, 1 }
0x1108   :  { %v3824_v46 = vsel %vm2085_vm4, %v2087_v23, %v2083_v61  ;;  %vm2199_vm14 = vmor %vm2197_vm3, %vm2198_vm8  ;;  %vm4041_vm8 = vcmp.eq.s32.totalorder %v3097_v43, 1  ;;  %vm4042_vm3 = vcmask 523520  }
0x1109   :  { %vm4040_vm4 = vmmov %vm4038_vm6 }
0x113b   :  { %v2212_v47 = vpop.permute.xlu2 %2211 }
0x113c   :  { %v2217_v55 = vmul.f32 %v2212_v47, %v3816_v3  ;;  %v3820_v47 = vsel %vm2070_vm12, %v2072_v41, %v2068_v13  ;;  %v2201_v13 = vand.u32 2147483647, %v2176_v38  ;;  %vm4034_vm12 = vcmp.eq.s32.totalorder %v3190_v32, 1  ;;  %v2518_v32 = vld [vmem:[%s4007_s9] sm:$0xff] }
0x113e   :  { %2221 = vrot.lane.b32.xlu0 %v2217_v55, %s2799_s2  ;;  %v2194_v55 = vsub.f32 1.0, %v2193_v16  ;;  %v2203_v16 = vand.u32 2147483648, %v2176_v38  ;;  %vm2202_vm5 = vcmp.eq.f32.partialorder %v2201_v13, 8.507059e+37  ;;  %v2127_v13 = vmul.f32 %v3824_v46, %v3764_v28 }
0x1140   :  { %v2195_v53 = vmul.f32 %v2725_v2, %v2194_v55  ;;  %v2204_v45 = vor.u32 1.1754944e-38, %v2203_v16 }
0x1142   :  { %v2196_v8 = vadd.f32 %v2725_v2, %v2195_v53 }
0x1144   :  { %v2200_v25 = vsel %vm2199_vm14, %v2725_v2, %v2196_v8  ;;  %vm4043_vm14 = vcmp.eq.s32.totalorder %v3192_v35, 1 }
0x1145   :  { %v3828_v41 = vsel %vm2202_vm5, %v2204_v45, %v2200_v25  ;;  %v2243_v45 = vmul.f32 %v3816_v3, %v3779_v30  ;;  %vm4044_vm5 = vmmov %vm4034_vm12 }
0x1146   :  { %v2244_v5 = vmul.f32 %v3828_v41, %v3785_v11 }
0x114c   :  { %v2095_v44 = vpop.permute.xlu0 %2094 }
0x114d   :  { %v2100_v6 = vmul.f32 %v2095_v44, %v3820_v47 }
0x114f   :  { %2104 = vrot.lane.b32.xlu1 %v2100_v6, %s2799_s2 }
0x1154   :  { %v2097_v21 = vpop.permute.xlu1 %2096 }
0x1155   :  { %v2101_v56 = vmul.f32 %v2097_v21, %v3824_v46  ;;  %v2115_v21 = vsub.f32 1.0, %v3824_v46 }
0x1157   :  { %2106 = vrot.lane.b32.xlu2 %v2101_v56, %s2799_s2 }
0x115b   :  { %v2214_v19 = vpop.permute.xlu0 %2213 }
0x115c   :  { %v2218_v4 = vmul.f32 %v2214_v19, %v3828_v41 }
0x115e   :  { %2223 = vrot.lane.b32.xlu1 %v2218_v4, %s2799_s2 }
0x11b0   :  { %v2222_v61 = vpop.permute.xlu0 %2221 }
0x11b1   :  { %v2227_v44 = vadd.f32 %v2222_v61, %v3804_v33  ;;  %v2107_v55 = vpop.permute.xlu2 %2106  ;;  %v699_v33 = vsel %vm4034_vm12, %v3197_v42, 0.0  ;;  %v1449_v42 = vsel %vm1334_vm13, %v3562_v49, 0.0  ;;  %vm4037_vm13 = vcmp.eq.s32.totalorder %v3226_v60, 1  ;;  %vm4045_vm12 = vmmov %vm4042_vm3 }
0x11b2   :  { %v2111_v6 = vadd.f32 %v2107_v55, %v3810_v15  ;;  %v2114_v49 = vsub.f32 1.0, %v3820_v47  ;;  %v2126_v60 = vmul.f32 %v3820_v47, %v3758_v10 }
0x11b3   :  { %2726 = vtanh.f32 %v2227_v44 }
0x11b4   :  { %2728 = vtanh.f32 %v2111_v6 }
0x11b9   :  { %v2727_v38 = vpop.eup %2726 }
0x11ba   :  { %v2729_v7 = vpop.eup %2728  ;;  %2235 = vrot.lane.b32.xlu1 %v2727_v38, %s2800_s24  ;;  %v2232_v38 = vsub.f32 1.0, %v3828_v41 }
0x11bb   :  { %2120 = vrot.lane.b32.xlu0 %v2729_v7, %s2800_s24 }
0x11c1   :  { %v2105_v2 = vpop.permute.xlu1 %2104 }
0x11c2   :  { %v2110_v57 = vadd.f32 %v2105_v2, %v3807_v22  ;;  %440 = vrot.lane.b32.xlu1 %v3105_v0, %s2800_s24  ;;  %v1206_v22 = vsel %vm1202_vm10, %v3459_v31, 0.0  ;;  %v952_v31 = vsel %vm4036_vm1, %v3313_v24, 0.0  ;;  %v2521_v24 = vld [vmem:[%s4007_s9 + $0x18] sm:$0xff]  ;;  %v698_v2 = vsel %vm4043_vm14, %v3194_v40, 0.0  ;;  %vm4047_vm1 = vmmov %vm4042_vm3 }
0x11c3   :  { %2308 = vmatpush.bf16.msrb.mxu0 %v2521_v24 }
0x11c4   :  { %2730 = vtanh.f32 %v2110_v57 }
0x11c7   :  { %2309 = vmatpush.bf16.msrb.mxu0 %v2520_v50 }
0x11ca   :  { %v2731_v15 = vpop.eup %2730  ;;  %704 = vrot.lane.b32.xlu1 %v699_v33, %s2800_s24  ;;  %v2023_v33 = vsel %vm4044_vm5, %v3773_v18, 0.0 }
0x11cb   :  { %2118 = vrot.lane.b32.xlu2 %v2731_v15, %s2800_s24  ;;  %v2519_v15 = vld [vmem:[%s4007_s9 + $0x8] sm:$0xff]  ;;  %s2801_s9 = smov [#allocation4]  }
0x11cc   :  { %2310 = vmatpush.bf16.msrb.mxu0 %v2519_v15  ;;  %s2326_s22 = sshll.u32 %s2801_s9, 4  ;;  %s2327_s22 = int_to_ptr.vmem [resolvable:$true] %s2326_s22 }
0x11d0   :  { %v2224_v53 = vpop.permute.xlu1 %2223  ;;  %2311 = vmatpush.bf16.msrb.mxu0 %v2518_v32 }
0x11d1   :  { %v2228_v23 = vadd.f32 %v2224_v53, %v3813_v9  ;;  %v1904_v9 = vsel %vm4035_vm15, %v3748_v37, 0.0  ;;  %v2231_v37 = vsub.f32 1.0, %v3816_v3  ;;  %vm4046_vm15 = vcmp.eq.s32.totalorder %v3100_v63, 1 }
0x11d2   :  { %1210 = vrot.lane.b32.xlu1 %v1206_v22, %s2800_s24 }
0x11d3   :  { %2732 = vtanh.f32 %v2228_v23  ;;  %v1566_v23 = vsel %vm1202_vm10, %v3580_v52, 0.0  ;;  %vm4052_vm10 = vmmov %vm4047_vm1 }
0x11d9   :  { %v2733_v0 = vpop.eup %2732 }
0x11da   :  { %1454 = vrot.lane.b32.xlu1 %v1449_v42, %s2800_s24  ;;  %2237 = vrot.lane.b32.xlu2 %v2733_v0, %s2800_s24  ;;  %v1567_v0 = vsel %vm1203_vm9, %v3584_v20, 0.0  ;;  %v1677_v42 = vsel %vm1080_vm7, %v3655_v62, 0.0  ;;  %vm4055_vm7 = vmmov %vm4041_vm8 }
0x11db   :  { %vm4056_vm9 = vmmov %vm4046_vm15 }
0x11e2   :  { %1908 = vrot.lane.b32.xlu1 %v1904_v9, %s2800_s24  ;;  %442 = vrot.lane.b32.xlu2 %v3109_v1, %s2800_s24  ;;  %v1905_v1 = vsel %vm4037_vm13, %v3752_v17, 0.0  ;;  %vm4048_vm13 = vcmp.eq.s32.totalorder %v3309_v26, 1  ;;  %v2541_v26 = vld [vmem:[%s4008_s10] ss:$0 sm:$0xff] }
0x11e3   :  { %v953_v18 = vsel %vm4048_vm13, %v3316_v48, 0.0  ;;  %vm4061_vm5 = vmmov %vm4048_vm13 }
0x11ea   :  { %956 = vrot.lane.b32.xlu2 %v952_v31, %s2800_s24 }
0x11f2   :  { %1212 = vrot.lane.b32.xlu2 %v1207_v14, %s2800_s24 }
0x11fa   :  { %1680 = vrot.lane.b32.xlu2 %v1676_v39, %s2800_s24 }
0x1202   :  { %1910 = vrot.lane.b32.xlu2 %v1905_v1, %s2800_s24 }
0x1225   :  { %v2119_v36 = vpop.permute.xlu2 %2118 }
0x1226   :  { %v2124_v34 = vmul.f32 %v2119_v36, %v2114_v49  ;;  %v4057_v49 = vld [vmem:[#allocation12_spill] sm:$0xff] }
0x1228   :  { %v2128_v16 = vadd.f32 %v2126_v60, %v2124_v34 }
0x122a   :  { %v2130_v47 = vsel %vm4039_vm2, %v2128_v16, %v3758_v10  ;;  %vm4050_vm2 = vcmp.eq.s32.totalorder %v3311_v29, 1  ;;  %v2132_v27 = vsel %vm4054_vm11, %v2128_v16, 0.0 }
0x122b   :  { %v1794_v22 = vsel %vm4050_vm2, %v3673_v12, 0.0 }
0x122c   :  { %v2236_v17 = vpop.permute.xlu1 %2235 }
0x122d   :  { %v2241_v8 = vmul.f32 %v2236_v17, %v2231_v37  ;;  %v2121_v56 = vpop.permute.xlu0 %2120 }
0x122e   :  { %v2125_v25 = vmul.f32 %v2121_v56, %v2115_v21 }
0x122f   :  { %v3891_v4 = vadd.f32 %v2243_v45, %v2241_v8 }
0x1230   :  { %v2129_v19 = vadd.f32 %v2127_v13, %v2125_v25 }
0x1231   :  { %v2249_v3 = vsel %vm4041_vm8, %v3891_v4, 0.0  ;;  %v2247_v14 = vsel %vm4055_vm7, %v3891_v4, %v3779_v30  ;;  %vm2300_vm8 = vcmask 523264   ;;  %v4060_v30 = vld [vmem:[#allocation11_spill] sm:$0xff] }
0x1232   :  { %v2133_v61 = vsel %vm4038_vm6, %v2129_v19, 0.0  ;;  %v2131_v44 = vsel %vm4040_vm4, %v2129_v19, %v3764_v28  ;;  %vm4049_vm6 = vmmov %vm4047_vm1  ;;  %v1795_v63 = vsel %vm4061_vm5, %v4060_v30, 0.0 }
0x1233   :  { %2138 = vrot.lane.b32.xlu1 %v2133_v61, %s2800_s24  ;;  %v2532_v46 = vpack.i.bf16 %v2131_v44, %v2130_v47  ;;  %vm4051_vm4 = vmmov %vm4047_vm1 }
0x1234   :  { %v441_v55 = vpop.permute.xlu1 %440  ;;  %v2238_v6 = vpop.permute.xlu2 %2237 }
0x1235   :  { %446 = vst.msk [vmem:[#allocation4] sm:$0xff] %vm119_vm0, %v441_v55  ;;  %2533 = vrot.lane.b32.xlu0 %v2532_v46, %s2800_s24  ;;  %v2242_v10 = vmul.f32 %v2238_v6, %v2232_v38 }
0x1236   :  { %2251 = vst.msk [vmem:[#allocation4] sm:$0xff] %vm4042_vm3, %v2249_v3  ;;  %vm4058_vm3 = vmmov %vm4043_vm14 }
0x1237   :  { %v2246_v28 = vadd.f32 %v2244_v5, %v2242_v10  ;;  %v2022_v50 = vsel %vm4058_vm3, %v4057_v49, 0.0  ;;  %vm4059_vm14 = vmmov %vm4047_vm1 }
0x1239   :  { %v2250_v41 = vsel %vm4046_vm15, %v2246_v28, 0.0  ;;  %v2248_v51 = vsel %vm4056_vm9, %v2246_v28, %v3785_v11 }
0x123c   :  { %v705_v7 = vpop.permute.xlu1 %704  ;;  %v443_v57 = vpop.permute.xlu2 %442 }
0x123d   :  { %710 = vst.msk [vmem:[#allocation4 + $0x18] sm:$0xff] %vm119_vm0, %v705_v7  ;;  %702 = vrot.lane.b32.xlu0 %v698_v2, %s2800_s24 }
0x123e   :  { %2025 = vst.msk [vmem:[#allocation4 + $0x18] sm:$0xff] %vm4045_vm12, %v2023_v33  ;;  %vm4062_vm12 = vmmov %vm4047_vm1 }
0x123f   :  { %447 = vst.msk [vmem:[#allocation4 + $0x8] sm:$0xff] %vm119_vm0, %v443_v57 }
0x1240   :  { %2252 = vst.msk [vmem:[#allocation4 + $0x8] sm:$0xff] %vm4047_vm1, %v2250_v41 }
0x1244   :  { %v1211_v40 = vpop.permute.xlu1 %1210  ;;  %v957_v53 = vpop.permute.xlu2 %956 }
0x1245   :  { %1217 = vst.msk [vmem:[#allocation4 + $0x30] sm:$0xff] %vm119_vm0, %v1211_v40  ;;  %958 = vrot.lane.b32.xlu0 %v953_v18, %s2800_s24 }
0x1246   :  { %1568 = vst.msk [vmem:[#allocation4 + $0x30] sm:$0xff] %vm4049_vm6, %v1566_v23 }
0x1247   :  { %963 = vst.msk [vmem:[#allocation4 + $0x20] sm:$0xff] %vm119_vm0, %v957_v53 }
0x1248   :  { %1796 = vst.msk [vmem:[#allocation4 + $0x20] sm:$0xff] %vm4051_vm4, %v1794_v22 }
0x124c   :  { %v1455_v48 = vpop.permute.xlu1 %1454  ;;  %v1213_v52 = vpop.permute.xlu2 %1212 }
0x124d   :  { %1459 = vst.msk [vmem:[#allocation4 + $0x48] sm:$0xff] %vm119_vm0, %v1455_v48  ;;  %1452 = vrot.lane.b32.xlu0 %v1448_v58, %s2800_s24 }
0x124e   :  { %1218 = vst.msk [vmem:[#allocation4 + $0x38] sm:$0xff] %vm119_vm0, %v1213_v52 }
0x124f   :  { %1569 = vst.msk [vmem:[#allocation4 + $0x38] sm:$0xff] %vm4052_vm10, %v1567_v0 }
0x1254   :  { %v1909_v29 = vpop.permute.xlu1 %1908  ;;  %v1681_v54 = vpop.permute.xlu2 %1680 }
0x1255   :  { %1914 = vst.msk [vmem:[#allocation4 + $0x60] sm:$0xff] %vm119_vm0, %v1909_v29  ;;  %1682 = vrot.lane.b32.xlu0 %v1677_v42, %s2800_s24 }
0x1256   :  { %1686 = vst.msk [vmem:[#allocation4 + $0x50] sm:$0xff] %vm119_vm0, %v1681_v54 }
0x125c   :  { %v1911_v59 = vpop.permute.xlu2 %1910 }
0x125d   :  { %2136 = vrot.lane.b32.xlu0 %v2132_v27, %s2800_s24  ;;  %1915 = vst.msk [vmem:[#allocation4 + $0x68] sm:$0xff] %vm119_vm0, %v1911_v59 }
0x12a5   :  { %v2139_v20 = vpop.permute.xlu1 %2138 }
0x12a6   :  { %2143 = vst.msk [vmem:[#allocation4 + $0x78] sm:$0xff] %vm119_vm0, %v2139_v20 }
0x12a7   :  { %v2534_v9 = vpop.permute.xlu0 %2533 }
0x12a8   :  { %v2536_v62 = vunpack.i.h.bf16 %v2534_v9  ;;  %v2535_v31 = vunpack.i.l.bf16 %v2534_v9 }
0x12aa   :  { %v2261_v39 = vsel %vm119_vm0, %v2535_v31, %v2247_v14  ;;  %v2262_v1 = vsel %vm119_vm0, %v2536_v62, %v2248_v51 }
0x12ab   :  { %v2263_v24 = vpack.c.bf16 %v2262_v1, %v2261_v39 }
0x12ad   :  { %2501 = vmatmul.msk.bf16.vlgmr.msrb.gmra.mxu0 %vm2300_vm8, %v2263_v24 }
0x12af   :  { %v703_v36 = vpop.permute.xlu0 %702 }
0x12b0   :  { %709 = vst.msk [vmem:[#allocation4 + $0x10] sm:$0xff] %vm119_vm0, %v703_v36 }
0x12b1   :  { %2024 = vst.msk [vmem:[#allocation4 + $0x10] sm:$0xff] %vm4059_vm14, %v2022_v50 }
0x12b7   :  { %v959_v43 = vpop.permute.xlu0 %958 }
0x12b8   :  { %964 = vst.msk [vmem:[#allocation4 + $0x28] sm:$0xff] %vm119_vm0, %v959_v43 }
0x12b9   :  { %1797 = vst.msk [vmem:[#allocation4 + $0x28] sm:$0xff] %vm4062_vm12, %v1795_v63 }
0x12bf   :  { %v1453_v11 = vpop.permute.xlu0 %1452 }
0x12c0   :  { %1458 = vst.msk [vmem:[#allocation4 + $0x40] sm:$0xff] %vm119_vm0, %v1453_v11 }
0x12c7   :  { %v1683_v34 = vpop.permute.xlu0 %1682 }
0x12c8   :  { %1687 = vst.msk [vmem:[#allocation4 + $0x58] sm:$0xff] %vm119_vm0, %v1683_v34 }
0x12cf   :  { %v2137_v35 = vpop.permute.xlu0 %2136 }
0x12d0   :  { %2142 = vst.msk [vmem:[#allocation4 + $0x70] sm:$0xff] %vm119_vm0, %v2137_v35 }
0x12d1   :  { %2334 = dma.vmem_to_hbm [thread:$0]  %s2327_s22, 2048, %s2329_s25, [#allocation5], %s2802_s26, %s2802_s26, %s2803_s27  }
0x132a   :  { %v2313_v37 = vpop.f32.mrf.mxu0 }
0x132b   :  { %v2314_v60 = vadd.f32 %v2541_v26, %v2313_v37 }
0x132d   :  { %2734 = vtanh.f32 %v2314_v60 }
0x1332   :  { %v2315_v17 = vpop.f32.mrf.mxu0 }
0x1333   :  { %v2735_v21 = vpop.eup %2734  ;;  %v2316_v8 = vadd.f32 %v2541_v26, %v2315_v17 }
0x1334   :  { %2320 = vst.msk [vmem:[#allocation6] sm:$0xff] %vm119_vm0, %v2735_v21 }
0x1335   :  { %2736 = vtanh.f32 %v2316_v8 }
0x133b   :  { %v2737_v56 = vpop.eup %2736 }
0x133c   :  { %2321 = vst.msk [vmem:[#allocation6 + $0x8] sm:$0xff] %vm119_vm0, %v2737_v56 }
0x133d   :  { %2347 = dma.vmem_to_hbm [thread:$0]  %s2340_s30, 256, %s2342_s14, [#allocation7], %s2802_s26, %s2802_s26, %s2803_s27  }
0x133e   :  { %2794 = dma.done.wait [#allocation5], 2048  }
0x133f   :  { %2795 = vsyncadd [#allocation5], 4294965248 }
0x1340   :  { %2796 = dma.done.wait [#allocation7], 256  }
0x1341   :  { %2797 = vsyncadd [#allocation7], 4294967040 }
0x1342   :  { %2356 = vsyncpa [#allocation5], 1 }
0x1343   :  { %2357 = vsyncpa [#allocation7], 1 }

</bundles_post_ra>
